<compile_context>
chip_gen: v5e
topology: v5e:2x2
jax: 0.10.0
libtpu: 0.0.40
codegen_flags: <defaults>
</compile_context>

<pallas_src>
import functools

import jax
import jax.numpy as jnp
from jax.experimental import pallas as pl
from jax.experimental.pallas import tpu as pltpu

EPS = 1e-5
HIDDEN = (512, 256, 128, 64)
NUM_CLASSES = 10

# Conservative scoped-VMEM budget: safe on v5e/v6e (128 MiB physical) and on
# v7x (64 MiB physical, 32 MiB scoped default).  Per-tile live set at the
# default block_b is only a few MiB, so this leaves plenty of headroom.
_VMEM_LIMIT = 32 * 1024 * 1024


# ---------------------------------------------------------------------------
# In-kernel helpers
# ---------------------------------------------------------------------------

def _fold_bn(s, ss, gamma, beta, batch):
    """Fold training-mode BatchNorm into one scale/shift (biased batch variance)."""
    inv_n = 1.0 / batch
    mu = s * inv_n
    var = ss * inv_n - mu * mu
    scale = gamma * jax.lax.rsqrt(var + EPS)      # rsqrt runs on the EUP slot
    shift = beta - mu * scale
    return scale, shift


def _accum_stats(s_ref, ss_ref, y, tile_idx, block_b, batch):
    """Accumulate per-feature sum / sum-of-squares across batch tiles."""

    @pl.when(tile_idx == 0)
    def _():
        s_ref[...] = jnp.zeros_like(s_ref)
        ss_ref[...] = jnp.zeros_like(ss_ref)

    # Mask rows of a partial last tile so they do not pollute the statistics.
    rows = jax.lax.broadcasted_iota(jnp.int32, y.shape, 0) + tile_idx * block_b
    ym = jnp.where(rows < batch, y, 0.0)
    s_ref[...] += jnp.sum(ym, axis=0, keepdims=True)
    ss_ref[...] += jnp.sum(ym * ym, axis=0, keepdims=True)


def _log_softmax(logits):
    # Runs on the lane-padded (TB, 10) logits tile; NUM_CLASSES padding never
    # reaches HBM (output block width == full class dim).
    m = jnp.max(logits, axis=-1, keepdims=True)
    shifted = logits - m
    lse = jnp.log(jnp.sum(jnp.exp(shifted), axis=-1, keepdims=True))
    return shifted - lse


# ---------------------------------------------------------------------------
# Tiled-path kernels (one pallas_call per Linear layer, batch-tiled grid)
# ---------------------------------------------------------------------------

def _linear_stats_kernel(x_ref, w_ref, b_ref, y_ref, s_ref, ss_ref, *,
                         batch, block_b):
    i = pl.program_id(0)
    y = jnp.dot(x_ref[...].astype(jnp.bfloat16), w_ref[...],
                preferred_element_type=jnp.float32) + b_ref[...]
    y_ref[...] = y
    _accum_stats(s_ref, ss_ref, y, i, block_b, batch)


def _bn_relu_linear_stats_kernel(y_ref, s_ref, ss_ref, g_ref, be_ref,
                                 w_ref, b_ref,
                                 yo_ref, so_ref, sso_ref, *, batch, block_b):
    i = pl.program_id(0)
    scale, shift = _fold_bn(s_ref[...], ss_ref[...], g_ref[...], be_ref[...], batch)
    h = jnp.maximum(y_ref[...] * scale + shift, 0.0)          # BN + ReLU fused
    y = jnp.dot(h.astype(jnp.bfloat16), w_ref[...],
                preferred_element_type=jnp.float32) + b_ref[...]
    yo_ref[...] = y
    _accum_stats(so_ref, sso_ref, y, i, block_b, batch)


def _bn_relu_linear_logsoftmax_kernel(y_ref, s_ref, ss_ref, g_ref, be_ref,
                                      w_ref, b_ref, o_ref, *, batch):
    scale, shift = _fold_bn(s_ref[...], ss_ref[...], g_ref[...], be_ref[...], batch)
    h = jnp.maximum(y_ref[...] * scale + shift, 0.0)
    logits = jnp.dot(h.astype(jnp.bfloat16), w_ref[...],
                     preferred_element_type=jnp.float32) + b_ref[...]
    o_ref[...] = _log_softmax(logits).astype(o_ref.dtype)


# ---------------------------------------------------------------------------
# Fused-path kernel (whole batch resident in VMEM; used when B <= block_b)
# ---------------------------------------------------------------------------

def _fused_kernel(x_ref, *refs):
    o_ref = refs[-1]
    w5_ref, b5_ref = refs[16], refs[17]
    batch = x_ref.shape[0]

    h = x_ref[...]
    for layer in range(4):
        w_ref, b_ref, g_ref, be_ref = refs[4 * layer:4 * layer + 4]
        y = jnp.dot(h.astype(jnp.bfloat16), w_ref[...],
                    preferred_element_type=jnp.float32) + b_ref[...]
        s = jnp.sum(y, axis=0, keepdims=True)
        ss = jnp.sum(y * y, axis=0, keepdims=True)
        scale, shift = _fold_bn(s, ss, g_ref[...], be_ref[...], batch)
        h = jnp.maximum(y * scale + shift, 0.0)

    logits = jnp.dot(h.astype(jnp.bfloat16), w5_ref[...],
                     preferred_element_type=jnp.float32) + b5_ref[...]
    o_ref[...] = _log_softmax(logits).astype(o_ref.dtype)


# ---------------------------------------------------------------------------
# Host-side wrappers
# ---------------------------------------------------------------------------

def _forward_fused(x, params):
    batch = x.shape[0]
    vmem = pl.BlockSpec(memory_space=pltpu.MemorySpace.VMEM)
    return pl.pallas_call(
        _fused_kernel,
        out_shape=jax.ShapeDtypeStruct((batch, NUM_CLASSES), jnp.float32),
        in_specs=[vmem] * (1 + len(params)),
        out_specs=vmem,
        compiler_params=pltpu.CompilerParams(vmem_limit_bytes=_VMEM_LIMIT),
    )(x, *params)


def _forward_tiled(x, params, block_b):
    batch = x.shape[0]
    grid = (pl.cdiv(batch, block_b),)

    (w1, b1, g1, be1, w2, b2, g2, be2,
     w3, b3, g3, be3, w4, b4, g4, be4, w5, b5) = params

    def act_spec(d):                       # batch-tiled activation tile
        return pl.BlockSpec((block_b, d), lambda i: (i, 0))

    def rep_spec(shape):                   # VMEM-resident, constant block index
        return pl.BlockSpec(shape, lambda i: (0, 0))

    # Cross-tile statistics accumulation -> batch axis must run sequentially.
    seq_params = pltpu.CompilerParams(
        dimension_semantics=("arbitrary",), vmem_limit_bytes=_VMEM_LIMIT)
    # Final layer is purely row-wise -> safe to shard across v7x's 2 TensorCores.
    par_params = pltpu.CompilerParams(
        dimension_semantics=("parallel",), vmem_limit_bytes=_VMEM_LIMIT)

    def stats_shapes(d):
        return (jax.ShapeDtypeStruct((1, d), jnp.float32),
                jax.ShapeDtypeStruct((1, d), jnp.float32))

    # Layer 1: Linear(input_dim -> 512) + full-batch stat accumulation.
    din, d1 = w1.shape
    y1, s1, ss1 = pl.pallas_call(
        functools.partial(_linear_stats_kernel, batch=batch, block_b=block_b),
        grid=grid,
        out_shape=(jax.ShapeDtypeStruct((batch, d1), jnp.float32),) + stats_shapes(d1),
        in_specs=[act_spec(din), rep_spec(w1.shape), rep_spec(b1.shape)],
        out_specs=(act_spec(d1), rep_spec((1, d1)), rep_spec((1, d1))),
        compiler_params=seq_params,
    )(x, w1, b1)

    def mid_layer(y, s, ss, g, be, w, b):
        dprev, dout = w.shape
        return pl.pallas_call(
            functools.partial(_bn_relu_linear_stats_kernel,
                              batch=batch, block_b=block_b),
            grid=grid,
            out_shape=(jax.ShapeDtypeStruct((batch, dout), jnp.float32),)
                      + stats_shapes(dout),
            in_specs=[act_spec(dprev), rep_spec((1, dprev)), rep_spec((1, dprev)),
                      rep_spec(g.shape), rep_spec(be.shape),
                      rep_spec(w.shape), rep_spec(b.shape)],
            out_specs=(act_spec(dout), rep_spec((1, dout)), rep_spec((1, dout))),
            compiler_params=seq_params,
        )(y, s, ss, g, be, w, b)

    y2, s2, ss2 = mid_layer(y1, s1, ss1, g1, be1, w2, b2)
    y3, s3, ss3 = mid_layer(y2, s2, ss2, g2, be2, w3, b3)
    y4, s4, ss4 = mid_layer(y3, s3, ss3, g3, be3, w4, b4)

    # Final: BN4 + ReLU + Linear(64 -> 10) + LogSoftmax (row-wise only).
    d4, _ = w5.shape
    return pl.pallas_call(
        functools.partial(_bn_relu_linear_logsoftmax_kernel, batch=batch),
        grid=grid,
        out_shape=jax.ShapeDtypeStruct((batch, NUM_CLASSES), jnp.float32),
        in_specs=[act_spec(d4), rep_spec((1, d4)), rep_spec((1, d4)),
                  rep_spec(g4.shape), rep_spec(be4.shape),
                  rep_spec(w5.shape), rep_spec(b5.shape)],
        out_specs=act_spec(NUM_CLASSES),
        compiler_params=par_params,
    )(y4, s4, ss4, g4, be4, w5, b5)


@functools.partial(jax.jit, static_argnames=("block_b",))
def linear_classifier_forward(x, *params, block_b=1024):
    """Forward pass.  block_b <= ~2048 (f32 activations) stays within v7x VMEM."""
    x = x.astype(jnp.bfloat16)             # halve x DMA bytes; matmuls run bf16
    if x.shape[0] <= block_b:
        return _forward_fused(x, params)
    return _forward_tiled(x, params, block_b)


# ---------------------------------------------------------------------------
# Parameter init + pure-JAX reference
# ---------------------------------------------------------------------------

def init_params(key, input_dim):
    """Shapes match the PyTorch module; weights pre-transposed to (in, out), bf16."""
    dims = (input_dim,) + HIDDEN + (NUM_CLASSES,)
    params = []
    for i in range(len(dims) - 1):
        din, dout = dims[i], dims[i + 1]
        key, kw, kb, kg, kbe = jax.random.split(key, 5)
        bound = 1.0 / (din ** 0.5)
        w = jax.random.uniform(kw, (din, dout), jnp.float32, -bound, bound)
        b = jax.random.uniform(kb, (1, dout), jnp.float32, -bound, bound)
        params.append(w.astype(jnp.bfloat16))
        params.append(b)
        if i < len(dims) - 2:
            # BatchNorm affine params (fresh PyTorch module: gamma=1, beta=0;
            # randomized here to actually exercise the affine path).
            params.append(jax.random.uniform(kg, (1, dout), jnp.float32, 0.5, 1.5))
            params.append(jax.random.uniform(kbe, (1, dout), jnp.float32, -0.1, 0.1))
    return params


def _reference_forward(x, params):
    """Pure-JAX reference with matching numerics (bf16 matmuls, f32 BN/softmax)."""
    (w1, b1, g1, be1, w2, b2, g2, be2,
     w3, b3, g3, be3, w4, b4, g4, be4, w5, b5) = params
    h = x.astype(jnp.bfloat16)
    for w, b, g, be in ((w1, b1, g1, be1), (w2, b2, g2, be2),
                        (w3, b3, g3, be3), (w4, b4, g4, be4)):
        y = jnp.dot(h, w, preferred_element_type=jnp.float32) + b
        mu = jnp.mean(y, axis=0, keepdims=True)
        var = jnp.mean(y * y, axis=0, keepdims=True) - mu * mu
        h = jnp.maximum((y - mu) * jax.lax.rsqrt(var + EPS) * g + be,
                        0.0).astype(jnp.bfloat16)
    logits = jnp.dot(h, w5, preferred_element_type=jnp.float32) + b5
    return jax.nn.log_softmax(logits, axis=-1)


if __name__ == "__main__":
    key = jax.random.PRNGKey(0)
    k_x, k_p = jax.random.split(key)

    # Small shapes, but batch kept MXU-shaped (M = 256).
    batch, input_dim = 256, 64
    x = jax.random.normal(k_x, (batch, input_dim), jnp.float32)
    params = init_params(k_p, input_dim)

    ref = _reference_forward(x, params)

    # Tiled path: 2 batch tiles of 128, cross-tile (full-batch) BN statistics.
    out_tiled = linear_classifier_forward(x, *params, block_b=128)
    # Fused path: whole batch resident in VMEM (dispatcher picks it, B <= block_b).
    out_fused = linear_classifier_forward(x, *params, block_b=512)
    jax.block_until_ready((out_tiled, out_fused))

    assert out_tiled.shape == (batch, NUM_CLASSES)
    assert out_fused.shape == (batch, NUM_CLASSES)

    for out in (out_tiled, out_fused):
        # log-softmax rows exponentiate-and-sum to ~1
        row_sums = jnp.sum(jnp.exp(out), axis=1)
        assert bool(jnp.all(jnp.abs(row_sums - 1.0) < 1e-3))
        # matches the pure-JAX reference (bf16 matmuls -> loosened tolerance)
        assert bool(jnp.max(jnp.abs(out - ref)) < 5e-2)

    # the two Pallas paths agree with each other
    assert bool(jnp.max(jnp.abs(out_tiled - out_fused)) < 5e-2)

    print("KERNEL_OK")
</pallas_src>

<mosaic_0001>
module attributes {stable_mosaic.version = 11 : i64} {
  func.func @_bn_relu_linear_stats_kernel(%arg0: i32, %arg1: memref<128x256xf32, #tpu.memory_space<vmem>>, %arg2: memref<1x256xf32, #tpu.memory_space<vmem>>, %arg3: memref<1x256xf32, #tpu.memory_space<vmem>>, %arg4: memref<1x256xf32, #tpu.memory_space<vmem>>, %arg5: memref<1x256xf32, #tpu.memory_space<vmem>>, %arg6: memref<256x128xbf16, #tpu.memory_space<vmem>>, %arg7: memref<1x128xf32, #tpu.memory_space<vmem>>, %arg8: memref<128x128xf32, #tpu.memory_space<vmem>>, %arg9: memref<1x128xf32, #tpu.memory_space<vmem>>, %arg10: memref<1x128xf32, #tpu.memory_space<vmem>>) attributes {dimension_semantics = [#tpu.dimension_semantics<arbitrary>], iteration_bounds = array<i64: 2>, scalar_prefetch = 0 : i64, scratch_operands = 0 : i64, tpu.core_type = #tpu.core_type<tc>, window_params = [{transform_indices = @transform_0, window_bounds = array<i64: 128, 256>}, {pipeline_mode = #tpu.pipeline_mode<synchronous>, transform_indices = @transform_1, window_bounds = array<i64: 1, 256>}, {pipeline_mode = #tpu.pipeline_mode<synchronous>, transform_indices = @transform_2, window_bounds = array<i64: 1, 256>}, {pipeline_mode = #tpu.pipeline_mode<synchronous>, transform_indices = @transform_3, window_bounds = array<i64: 1, 256>}, {pipeline_mode = #tpu.pipeline_mode<synchronous>, transform_indices = @transform_4, window_bounds = array<i64: 1, 256>}, {pipeline_mode = #tpu.pipeline_mode<synchronous>, transform_indices = @transform_5, window_bounds = array<i64: 256, 128>}, {pipeline_mode = #tpu.pipeline_mode<synchronous>, transform_indices = @transform_6, window_bounds = array<i64: 1, 128>}, {transform_indices = @transform_7, window_bounds = array<i64: 128, 128>}, {pipeline_mode = #tpu.pipeline_mode<synchronous>, transform_indices = @transform_8, window_bounds = array<i64: 1, 128>}, {pipeline_mode = #tpu.pipeline_mode<synchronous>, transform_indices = @transform_9, window_bounds = array<i64: 1, 128>}]} {
    %c0 = arith.constant 0 : index
    %c0_0 = arith.constant 0 : index
    %0 = vector.load %arg2[%c0, %c0_0] : memref<1x256xf32, #tpu.memory_space<vmem>>, vector<1x256xf32>
    %c0_1 = arith.constant 0 : index
    %c0_2 = arith.constant 0 : index
    %1 = vector.load %arg3[%c0_1, %c0_2] : memref<1x256xf32, #tpu.memory_space<vmem>>, vector<1x256xf32>
    %c0_3 = arith.constant 0 : index
    %c0_4 = arith.constant 0 : index
    %2 = vector.load %arg4[%c0_3, %c0_4] : memref<1x256xf32, #tpu.memory_space<vmem>>, vector<1x256xf32>
    %c0_5 = arith.constant 0 : index
    %c0_6 = arith.constant 0 : index
    %3 = vector.load %arg5[%c0_5, %c0_6] : memref<1x256xf32, #tpu.memory_space<vmem>>, vector<1x256xf32>
    %cst = arith.constant 3.906250e-03 : f32
    %4 = vector.broadcast %cst : f32 to vector<1x256xf32>
    %5 = arith.mulf %0, %4 : vector<1x256xf32>
    %cst_7 = arith.constant 3.906250e-03 : f32
    %6 = vector.broadcast %cst_7 : f32 to vector<1x256xf32>
    %7 = arith.mulf %1, %6 : vector<1x256xf32>
    %8 = arith.mulf %5, %5 : vector<1x256xf32>
    %9 = arith.subf %7, %8 : vector<1x256xf32>
    %cst_8 = arith.constant 9.99999974E-6 : f32
    %10 = vector.broadcast %cst_8 : f32 to vector<1x256xf32>
    %11 = arith.addf %9, %10 : vector<1x256xf32>
    %12 = math.rsqrt %11 : vector<1x256xf32>
    %13 = arith.mulf %2, %12 : vector<1x256xf32>
    %14 = arith.mulf %5, %13 : vector<1x256xf32>
    %15 = arith.subf %3, %14 : vector<1x256xf32>
    %c0_9 = arith.constant 0 : index
    %c0_10 = arith.constant 0 : index
    %16 = vector.load %arg1[%c0_9, %c0_10] : memref<128x256xf32, #tpu.memory_space<vmem>>, vector<128x256xf32>
    %17 = vector.broadcast %13 : vector<1x256xf32> to vector<128x256xf32>
    %18 = arith.mulf %16, %17 : vector<128x256xf32>
    %19 = vector.broadcast %15 : vector<1x256xf32> to vector<128x256xf32>
    %20 = arith.addf %18, %19 : vector<128x256xf32>
    %cst_11 = arith.constant 0.000000e+00 : f32
    %21 = vector.broadcast %cst_11 : f32 to vector<128x256xf32>
    %22 = arith.maximumf %20, %21 : vector<128x256xf32>
    %23 = arith.truncf %22 : vector<128x256xf32> to vector<128x256xbf16>
    %c0_12 = arith.constant 0 : index
    %c0_13 = arith.constant 0 : index
    %24 = vector.load %arg6[%c0_12, %c0_13] : memref<256x128xbf16, #tpu.memory_space<vmem>>, vector<256x128xbf16>
    %cst_14 = arith.constant dense<0.000000e+00> : vector<128x128xf32>
    %25 = tpu.matmul %23, %24, %cst_14 {dimension_numbers = #tpu.dot_dimension_numbers<[1], [0], [0], [1], [0, 0, 1, 1], [], []>} : vector<128x256xbf16>, vector<256x128xbf16>, vector<128x128xf32> -> vector<128x128xf32>
    %c0_15 = arith.constant 0 : index
    %c0_16 = arith.constant 0 : index
    %26 = vector.load %arg7[%c0_15, %c0_16] : memref<1x128xf32, #tpu.memory_space<vmem>>, vector<1x128xf32>
    %27 = vector.broadcast %26 : vector<1x128xf32> to vector<128x128xf32>
    %28 = arith.addf %25, %27 : vector<128x128xf32>
    %c0_17 = arith.constant 0 : index
    %c0_18 = arith.constant 0 : index
    %29 = vector.load %arg8[%c0_17, %c0_18] : memref<128x128xf32, #tpu.memory_space<vmem>>, vector<128x128xf32>
    tpu.vector_store %arg8[%c0_17, %c0_18], %28 {strides = array<i32>} : memref<128x128xf32, #tpu.memory_space<vmem>>, vector<128x128xf32>,
    %c0_i32 = arith.constant 0 : i32
    %30 = arith.cmpi eq, %arg0, %c0_i32 : i32
    %31 = arith.extui %30 : i1 to i32
    %c0_i32_19 = arith.constant 0 : i32
    %32 = arith.cmpi ne, %31, %c0_i32_19 : i32
    scf.if %32 {
      %cst_31 = arith.constant 0.000000e+00 : f32
      %52 = vector.broadcast %cst_31 : f32 to vector<1x128xf32>
      %c0_32 = arith.constant 0 : index
      %c0_33 = arith.constant 0 : index
      %53 = vector.load %arg9[%c0_32, %c0_33] : memref<1x128xf32, #tpu.memory_space<vmem>>, vector<1x128xf32>
      tpu.vector_store %arg9[%c0_32, %c0_33], %52 {strides = array<i32>} : memref<1x128xf32, #tpu.memory_space<vmem>>, vector<1x128xf32>,
      %cst_34 = arith.constant 0.000000e+00 : f32
      %54 = vector.broadcast %cst_34 : f32 to vector<1x128xf32>
      %c0_35 = arith.constant 0 : index
      %c0_36 = arith.constant 0 : index
      %55 = vector.load %arg10[%c0_35, %c0_36] : memref<1x128xf32, #tpu.memory_space<vmem>>, vector<1x128xf32>
      tpu.vector_store %arg10[%c0_35, %c0_36], %54 {strides = array<i32>} : memref<1x128xf32, #tpu.memory_space<vmem>>, vector<1x128xf32>,
    } else {
    }
    %33 = tpu.iota {dimensions = array<i32: 0>} : vector<128x128xi32>
    %c128_i32 = arith.constant 128 : i32
    %34 = arith.muli %arg0, %c128_i32 : i32
    %35 = vector.broadcast %34 : i32 to vector<128x128xi32>
    %36 = arith.addi %33, %35 : vector<128x128xi32>
    %c256_i32 = arith.constant 256 : i32
    %37 = vector.broadcast %c256_i32 : i32 to vector<128x128xi32>
    %38 = arith.cmpi slt, %36, %37 : vector<128x128xi32>
    %cst_20 = arith.constant 0.000000e+00 : f32
    %39 = vector.broadcast %cst_20 : f32 to vector<128x128xf32>
    %40 = arith.select %38, %28, %39 : vector<128x128xi1>, vector<128x128xf32>
    %c0_21 = arith.constant 0 : index
    %c0_22 = arith.constant 0 : index
    %41 = vector.load %arg9[%c0_21, %c0_22] : memref<1x128xf32, #tpu.memory_space<vmem>>, vector<1x128xf32>
    %cst_23 = arith.constant dense<0.000000e+00> : vector<128xf32>
    %42 = vector.multi_reduction <add>, %40, %cst_23 [0] : vector<128x128xf32> to vector<128xf32>
    %43 = vector.shape_cast %42 : vector<128xf32> to vector<1x128xf32>
    %44 = arith.addf %41, %43 : vector<1x128xf32>
    %c0_24 = arith.constant 0 : index
    %c0_25 = arith.constant 0 : index
    %45 = vector.load %arg9[%c0_24, %c0_25] : memref<1x128xf32, #tpu.memory_space<vmem>>, vector<1x128xf32>
    tpu.vector_store %arg9[%c0_24, %c0_25], %44 {strides = array<i32>} : memref<1x128xf32, #tpu.memory_space<vmem>>, vector<1x128xf32>,
    %c0_26 = arith.constant 0 : index
    %c0_27 = arith.constant 0 : index
    %46 = vector.load %arg10[%c0_26, %c0_27] : memref<1x128xf32, #tpu.memory_space<vmem>>, vector<1x128xf32>
    %47 = arith.mulf %40, %40 : vector<128x128xf32>
    %cst_28 = arith.constant dense<0.000000e+00> : vector<128xf32>
    %48 = vector.multi_reduction <add>, %47, %cst_28 [0] : vector<128x128xf32> to vector<128xf32>
    %49 = vector.shape_cast %48 : vector<128xf32> to vector<1x128xf32>
    %50 = arith.addf %46, %49 : vector<1x128xf32>
    %c0_29 = arith.constant 0 : index
    %c0_30 = arith.constant 0 : index
    %51 = vector.load %arg10[%c0_29, %c0_30] : memref<1x128xf32, #tpu.memory_space<vmem>>, vector<1x128xf32>
    tpu.vector_store %arg10[%c0_29, %c0_30], %50 {strides = array<i32>} : memref<1x128xf32, #tpu.memory_space<vmem>>, vector<1x128xf32>,
    return
  }
  func.func @transform_0(%arg0: i32) -> (i32, i32) {
    %c0_i32 = arith.constant 0 : i32
    %c0_i32_0 = arith.constant 0 : i32
    return %arg0, %c0_i32 : i32, i32
  }
  func.func @transform_1(%arg0: i32) -> (i32, i32) {
    %c0_i32 = arith.constant 0 : i32
    %c0_i32_0 = arith.constant 0 : i32
    %c0_i32_1 = arith.constant 0 : i32
    return %c0_i32, %c0_i32_0 : i32, i32
  }
  func.func @transform_2(%arg0: i32) -> (i32, i32) {
    %c0_i32 = arith.constant 0 : i32
    %c0_i32_0 = arith.constant 0 : i32
    %c0_i32_1 = arith.constant 0 : i32
    return %c0_i32, %c0_i32_0 : i32, i32
  }
  func.func @transform_3(%arg0: i32) -> (i32, i32) {
    %c0_i32 = arith.constant 0 : i32
    %c0_i32_0 = arith.constant 0 : i32
    %c0_i32_1 = arith.constant 0 : i32
    return %c0_i32, %c0_i32_0 : i32, i32
  }
  func.func @transform_4(%arg0: i32) -> (i32, i32) {
    %c0_i32 = arith.constant 0 : i32
    %c0_i32_0 = arith.constant 0 : i32
    %c0_i32_1 = arith.constant 0 : i32
    return %c0_i32, %c0_i32_0 : i32, i32
  }
  func.func @transform_5(%arg0: i32) -> (i32, i32) {
    %c0_i32 = arith.constant 0 : i32
    %c0_i32_0 = arith.constant 0 : i32
    %c0_i32_1 = arith.constant 0 : i32
    return %c0_i32, %c0_i32_0 : i32, i32
  }
  func.func @transform_6(%arg0: i32) -> (i32, i32) {
    %c0_i32 = arith.constant 0 : i32
    %c0_i32_0 = arith.constant 0 : i32
    %c0_i32_1 = arith.constant 0 : i32
    return %c0_i32, %c0_i32_0 : i32, i32
  }
  func.func @transform_7(%arg0: i32) -> (i32, i32) {
    %c0_i32 = arith.constant 0 : i32
    %c0_i32_0 = arith.constant 0 : i32
    return %arg0, %c0_i32 : i32, i32
  }
  func.func @transform_8(%arg0: i32) -> (i32, i32) {
    %c0_i32 = arith.constant 0 : i32
    %c0_i32_0 = arith.constant 0 : i32
    %c0_i32_1 = arith.constant 0 : i32
    return %c0_i32, %c0_i32_0 : i32, i32
  }
  func.func @transform_9(%arg0: i32) -> (i32, i32) {
    %c0_i32 = arith.constant 0 : i32
    %c0_i32_0 = arith.constant 0 : i32
    %c0_i32_1 = arith.constant 0 : i32
    return %c0_i32, %c0_i32_0 : i32, i32
  }
}

module attributes {stable_mosaic.version = 11 : i64} {
  func.func @_linear_stats_kernel(%arg0: i32, %arg1: memref<128x64xbf16, #tpu.memory_space<vmem>>, %arg2: memref<64x512xbf16, #tpu.memory_space<vmem>>, %arg3: memref<1x512xf32, #tpu.memory_space<vmem>>, %arg4: memref<128x512xf32, #tpu.memory_space<vmem>>, %arg5: memref<1x512xf32, #tpu.memory_space<vmem>>, %arg6: memref<1x512xf32, #tpu.memory_space<vmem>>) attributes {dimension_semantics = [#tpu.dimension_semantics<arbitrary>], iteration_bounds = array<i64: 2>, scalar_prefetch = 0 : i64, scratch_operands = 0 : i64, tpu.core_type = #tpu.core_type<tc>, window_params = [{transform_indices = @transform_0, window_bounds = array<i64: 128, 64>}, {pipeline_mode = #tpu.pipeline_mode<synchronous>, transform_indices = @transform_1, window_bounds = array<i64: 64, 512>}, {pipeline_mode = #tpu.pipeline_mode<synchronous>, transform_indices = @transform_2, window_bounds = array<i64: 1, 512>}, {transform_indices = @transform_3, window_bounds = array<i64: 128, 512>}, {pipeline_mode = #tpu.pipeline_mode<synchronous>, transform_indices = @transform_4, window_bounds = array<i64: 1, 512>}, {pipeline_mode = #tpu.pipeline_mode<synchronous>, transform_indices = @transform_5, window_bounds = array<i64: 1, 512>}]} {
    %c0 = arith.constant 0 : index
    %c0_0 = arith.constant 0 : index
    %0 = vector.load %arg1[%c0, %c0_0] : memref<128x64xbf16, #tpu.memory_space<vmem>>, vector<128x64xbf16>
    %c0_1 = arith.constant 0 : index
    %c0_2 = arith.constant 0 : index
    %1 = vector.load %arg2[%c0_1, %c0_2] : memref<64x512xbf16, #tpu.memory_space<vmem>>, vector<64x512xbf16>
    %cst = arith.constant dense<0.000000e+00> : vector<128x512xf32>
    %2 = tpu.matmul %0, %1, %cst {dimension_numbers = #tpu.dot_dimension_numbers<[1], [0], [0], [1], [0, 0, 1, 1], [], []>} : vector<128x64xbf16>, vector<64x512xbf16>, vector<128x512xf32> -> vector<128x512xf32>
    %c0_3 = arith.constant 0 : index
    %c0_4 = arith.constant 0 : index
    %3 = vector.load %arg3[%c0_3, %c0_4] : memref<1x512xf32, #tpu.memory_space<vmem>>, vector<1x512xf32>
    %4 = vector.broadcast %3 : vector<1x512xf32> to vector<128x512xf32>
    %5 = arith.addf %2, %4 : vector<128x512xf32>
    %c0_5 = arith.constant 0 : index
    %c0_6 = arith.constant 0 : index
    %6 = vector.load %arg4[%c0_5, %c0_6] : memref<128x512xf32, #tpu.memory_space<vmem>>, vector<128x512xf32>
    tpu.vector_store %arg4[%c0_5, %c0_6], %5 {strides = array<i32>} : memref<128x512xf32, #tpu.memory_space<vmem>>, vector<128x512xf32>,
    %c0_i32 = arith.constant 0 : i32
    %7 = arith.cmpi eq, %arg0, %c0_i32 : i32
    %8 = arith.extui %7 : i1 to i32
    %c0_i32_7 = arith.constant 0 : i32
    %9 = arith.cmpi ne, %8, %c0_i32_7 : i32
    scf.if %9 {
      %cst_19 = arith.constant 0.000000e+00 : f32
      %29 = vector.broadcast %cst_19 : f32 to vector<1x512xf32>
      %c0_20 = arith.constant 0 : index
      %c0_21 = arith.constant 0 : index
      %30 = vector.load %arg5[%c0_20, %c0_21] : memref<1x512xf32, #tpu.memory_space<vmem>>, vector<1x512xf32>
      tpu.vector_store %arg5[%c0_20, %c0_21], %29 {strides = array<i32>} : memref<1x512xf32, #tpu.memory_space<vmem>>, vector<1x512xf32>,
      %cst_22 = arith.constant 0.000000e+00 : f32
      %31 = vector.broadcast %cst_22 : f32 to vector<1x512xf32>
      %c0_23 = arith.constant 0 : index
      %c0_24 = arith.constant 0 : index
      %32 = vector.load %arg6[%c0_23, %c0_24] : memref<1x512xf32, #tpu.memory_space<vmem>>, vector<1x512xf32>
      tpu.vector_store %arg6[%c0_23, %c0_24], %31 {strides = array<i32>} : memref<1x512xf32, #tpu.memory_space<vmem>>, vector<1x512xf32>,
    } else {
    }
    %10 = tpu.iota {dimensions = array<i32: 0>} : vector<128x512xi32>
    %c128_i32 = arith.constant 128 : i32
    %11 = arith.muli %arg0, %c128_i32 : i32
    %12 = vector.broadcast %11 : i32 to vector<128x512xi32>
    %13 = arith.addi %10, %12 : vector<128x512xi32>
    %c256_i32 = arith.constant 256 : i32
    %14 = vector.broadcast %c256_i32 : i32 to vector<128x512xi32>
    %15 = arith.cmpi slt, %13, %14 : vector<128x512xi32>
    %cst_8 = arith.constant 0.000000e+00 : f32
    %16 = vector.broadcast %cst_8 : f32 to vector<128x512xf32>
    %17 = arith.select %15, %5, %16 : vector<128x512xi1>, vector<128x512xf32>
    %c0_9 = arith.constant 0 : index
    %c0_10 = arith.constant 0 : index
    %18 = vector.load %arg5[%c0_9, %c0_10] : memref<1x512xf32, #tpu.memory_space<vmem>>, vector<1x512xf32>
    %cst_11 = arith.constant dense<0.000000e+00> : vector<512xf32>
    %19 = vector.multi_reduction <add>, %17, %cst_11 [0] : vector<128x512xf32> to vector<512xf32>
    %20 = vector.shape_cast %19 : vector<512xf32> to vector<1x512xf32>
    %21 = arith.addf %18, %20 : vector<1x512xf32>
    %c0_12 = arith.constant 0 : index
    %c0_13 = arith.constant 0 : index
    %22 = vector.load %arg5[%c0_12, %c0_13] : memref<1x512xf32, #tpu.memory_space<vmem>>, vector<1x512xf32>
    tpu.vector_store %arg5[%c0_12, %c0_13], %21 {strides = array<i32>} : memref<1x512xf32, #tpu.memory_space<vmem>>, vector<1x512xf32>,
    %c0_14 = arith.constant 0 : index
    %c0_15 = arith.constant 0 : index
    %23 = vector.load %arg6[%c0_14, %c0_15] : memref<1x512xf32, #tpu.memory_space<vmem>>, vector<1x512xf32>
    %24 = arith.mulf %17, %17 : vector<128x512xf32>
    %cst_16 = arith.constant dense<0.000000e+00> : vector<512xf32>
    %25 = vector.multi_reduction <add>, %24, %cst_16 [0] : vector<128x512xf32> to vector<512xf32>
    %26 = vector.shape_cast %25 : vector<512xf32> to vector<1x512xf32>
    %27 = arith.addf %23, %26 : vector<1x512xf32>
    %c0_17 = arith.constant 0 : index
    %c0_18 = arith.constant 0 : index
    %28 = vector.load %arg6[%c0_17, %c0_18] : memref<1x512xf32, #tpu.memory_space<vmem>>, vector<1x512xf32>
    tpu.vector_store %arg6[%c0_17, %c0_18], %27 {strides = array<i32>} : memref<1x512xf32, #tpu.memory_space<vmem>>, vector<1x512xf32>,
    return
  }
  func.func @transform_0(%arg0: i32) -> (i32, i32) {
    %c0_i32 = arith.constant 0 : i32
    %c0_i32_0 = arith.constant 0 : i32
    return %arg0, %c0_i32 : i32, i32
  }
  func.func @transform_1(%arg0: i32) -> (i32, i32) {
    %c0_i32 = arith.constant 0 : i32
    %c0_i32_0 = arith.constant 0 : i32
    %c0_i32_1 = arith.constant 0 : i32
    return %c0_i32, %c0_i32_0 : i32, i32
  }
  func.func @transform_2(%arg0: i32) -> (i32, i32) {
    %c0_i32 = arith.constant 0 : i32
    %c0_i32_0 = arith.constant 0 : i32
    %c0_i32_1 = arith.constant 0 : i32
    return %c0_i32, %c0_i32_0 : i32, i32
  }
  func.func @transform_3(%arg0: i32) -> (i32, i32) {
    %c0_i32 = arith.constant 0 : i32
    %c0_i32_0 = arith.constant 0 : i32
    return %arg0, %c0_i32 : i32, i32
  }
  func.func @transform_4(%arg0: i32) -> (i32, i32) {
    %c0_i32 = arith.constant 0 : i32
    %c0_i32_0 = arith.constant 0 : i32
    %c0_i32_1 = arith.constant 0 : i32
    return %c0_i32, %c0_i32_0 : i32, i32
  }
  func.func @transform_5(%arg0: i32) -> (i32, i32) {
    %c0_i32 = arith.constant 0 : i32
    %c0_i32_0 = arith.constant 0 : i32
    %c0_i32_1 = arith.constant 0 : i32
    return %c0_i32, %c0_i32_0 : i32, i32
  }
}

module attributes {stable_mosaic.version = 11 : i64} {
  func.func @_bn_relu_linear_stats_kernel(%arg0: i32, %arg1: memref<128x512xf32, #tpu.memory_space<vmem>>, %arg2: memref<1x512xf32, #tpu.memory_space<vmem>>, %arg3: memref<1x512xf32, #tpu.memory_space<vmem>>, %arg4: memref<1x512xf32, #tpu.memory_space<vmem>>, %arg5: memref<1x512xf32, #tpu.memory_space<vmem>>, %arg6: memref<512x256xbf16, #tpu.memory_space<vmem>>, %arg7: memref<1x256xf32, #tpu.memory_space<vmem>>, %arg8: memref<128x256xf32, #tpu.memory_space<vmem>>, %arg9: memref<1x256xf32, #tpu.memory_space<vmem>>, %arg10: memref<1x256xf32, #tpu.memory_space<vmem>>) attributes {dimension_semantics = [#tpu.dimension_semantics<arbitrary>], iteration_bounds = array<i64: 2>, scalar_prefetch = 0 : i64, scratch_operands = 0 : i64, tpu.core_type = #tpu.core_type<tc>, window_params = [{transform_indices = @transform_0, window_bounds = array<i64: 128, 512>}, {pipeline_mode = #tpu.pipeline_mode<synchronous>, transform_indices = @transform_1, window_bounds = array<i64: 1, 512>}, {pipeline_mode = #tpu.pipeline_mode<synchronous>, transform_indices = @transform_2, window_bounds = array<i64: 1, 512>}, {pipeline_mode = #tpu.pipeline_mode<synchronous>, transform_indices = @transform_3, window_bounds = array<i64: 1, 512>}, {pipeline_mode = #tpu.pipeline_mode<synchronous>, transform_indices = @transform_4, window_bounds = array<i64: 1, 512>}, {pipeline_mode = #tpu.pipeline_mode<synchronous>, transform_indices = @transform_5, window_bounds = array<i64: 512, 256>}, {pipeline_mode = #tpu.pipeline_mode<synchronous>, transform_indices = @transform_6, window_bounds = array<i64: 1, 256>}, {transform_indices = @transform_7, window_bounds = array<i64: 128, 256>}, {pipeline_mode = #tpu.pipeline_mode<synchronous>, transform_indices = @transform_8, window_bounds = array<i64: 1, 256>}, {pipeline_mode = #tpu.pipeline_mode<synchronous>, transform_indices = @transform_9, window_bounds = array<i64: 1, 256>}]} {
    %c0 = arith.constant 0 : index
    %c0_0 = arith.constant 0 : index
    %0 = vector.load %arg2[%c0, %c0_0] : memref<1x512xf32, #tpu.memory_space<vmem>>, vector<1x512xf32>
    %c0_1 = arith.constant 0 : index
    %c0_2 = arith.constant 0 : index
    %1 = vector.load %arg3[%c0_1, %c0_2] : memref<1x512xf32, #tpu.memory_space<vmem>>, vector<1x512xf32>
    %c0_3 = arith.constant 0 : index
    %c0_4 = arith.constant 0 : index
    %2 = vector.load %arg4[%c0_3, %c0_4] : memref<1x512xf32, #tpu.memory_space<vmem>>, vector<1x512xf32>
    %c0_5 = arith.constant 0 : index
    %c0_6 = arith.constant 0 : index
    %3 = vector.load %arg5[%c0_5, %c0_6] : memref<1x512xf32, #tpu.memory_space<vmem>>, vector<1x512xf32>
    %cst = arith.constant 3.906250e-03 : f32
    %4 = vector.broadcast %cst : f32 to vector<1x512xf32>
    %5 = arith.mulf %0, %4 : vector<1x512xf32>
    %cst_7 = arith.constant 3.906250e-03 : f32
    %6 = vector.broadcast %cst_7 : f32 to vector<1x512xf32>
    %7 = arith.mulf %1, %6 : vector<1x512xf32>
    %8 = arith.mulf %5, %5 : vector<1x512xf32>
    %9 = arith.subf %7, %8 : vector<1x512xf32>
    %cst_8 = arith.constant 9.99999974E-6 : f32
    %10 = vector.broadcast %cst_8 : f32 to vector<1x512xf32>
    %11 = arith.addf %9, %10 : vector<1x512xf32>
    %12 = math.rsqrt %11 : vector<1x512xf32>
    %13 = arith.mulf %2, %12 : vector<1x512xf32>
    %14 = arith.mulf %5, %13 : vector<1x512xf32>
    %15 = arith.subf %3, %14 : vector<1x512xf32>
    %c0_9 = arith.constant 0 : index
    %c0_10 = arith.constant 0 : index
    %16 = vector.load %arg1[%c0_9, %c0_10] : memref<128x512xf32, #tpu.memory_space<vmem>>, vector<128x512xf32>
    %17 = vector.broadcast %13 : vector<1x512xf32> to vector<128x512xf32>
    %18 = arith.mulf %16, %17 : vector<128x512xf32>
    %19 = vector.broadcast %15 : vector<1x512xf32> to vector<128x512xf32>
    %20 = arith.addf %18, %19 : vector<128x512xf32>
    %cst_11 = arith.constant 0.000000e+00 : f32
    %21 = vector.broadcast %cst_11 : f32 to vector<128x512xf32>
    %22 = arith.maximumf %20, %21 : vector<128x512xf32>
    %23 = arith.truncf %22 : vector<128x512xf32> to vector<128x512xbf16>
    %c0_12 = arith.constant 0 : index
    %c0_13 = arith.constant 0 : index
    %24 = vector.load %arg6[%c0_12, %c0_13] : memref<512x256xbf16, #tpu.memory_space<vmem>>, vector<512x256xbf16>
    %cst_14 = arith.constant dense<0.000000e+00> : vector<128x256xf32>
    %25 = tpu.matmul %23, %24, %cst_14 {dimension_numbers = #tpu.dot_dimension_numbers<[1], [0], [0], [1], [0, 0, 1, 1], [], []>} : vector<128x512xbf16>, vector<512x256xbf16>, vector<128x256xf32> -> vector<128x256xf32>
    %c0_15 = arith.constant 0 : index
    %c0_16 = arith.constant 0 : index
    %26 = vector.load %arg7[%c0_15, %c0_16] : memref<1x256xf32, #tpu.memory_space<vmem>>, vector<1x256xf32>
    %27 = vector.broadcast %26 : vector<1x256xf32> to vector<128x256xf32>
    %28 = arith.addf %25, %27 : vector<128x256xf32>
    %c0_17 = arith.constant 0 : index
    %c0_18 = arith.constant 0 : index
    %29 = vector.load %arg8[%c0_17, %c0_18] : memref<128x256xf32, #tpu.memory_space<vmem>>, vector<128x256xf32>
    tpu.vector_store %arg8[%c0_17, %c0_18], %28 {strides = array<i32>} : memref<128x256xf32, #tpu.memory_space<vmem>>, vector<128x256xf32>,
    %c0_i32 = arith.constant 0 : i32
    %30 = arith.cmpi eq, %arg0, %c0_i32 : i32
    %31 = arith.extui %30 : i1 to i32
    %c0_i32_19 = arith.constant 0 : i32
    %32 = arith.cmpi ne, %31, %c0_i32_19 : i32
    scf.if %32 {
      %cst_31 = arith.constant 0.000000e+00 : f32
      %52 = vector.broadcast %cst_31 : f32 to vector<1x256xf32>
      %c0_32 = arith.constant 0 : index
      %c0_33 = arith.constant 0 : index
      %53 = vector.load %arg9[%c0_32, %c0_33] : memref<1x256xf32, #tpu.memory_space<vmem>>, vector<1x256xf32>
      tpu.vector_store %arg9[%c0_32, %c0_33], %52 {strides = array<i32>} : memref<1x256xf32, #tpu.memory_space<vmem>>, vector<1x256xf32>,
      %cst_34 = arith.constant 0.000000e+00 : f32
      %54 = vector.broadcast %cst_34 : f32 to vector<1x256xf32>
      %c0_35 = arith.constant 0 : index
      %c0_36 = arith.constant 0 : index
      %55 = vector.load %arg10[%c0_35, %c0_36] : memref<1x256xf32, #tpu.memory_space<vmem>>, vector<1x256xf32>
      tpu.vector_store %arg10[%c0_35, %c0_36], %54 {strides = array<i32>} : memref<1x256xf32, #tpu.memory_space<vmem>>, vector<1x256xf32>,
    } else {
    }
    %33 = tpu.iota {dimensions = array<i32: 0>} : vector<128x256xi32>
    %c128_i32 = arith.constant 128 : i32
    %34 = arith.muli %arg0, %c128_i32 : i32
    %35 = vector.broadcast %34 : i32 to vector<128x256xi32>
    %36 = arith.addi %33, %35 : vector<128x256xi32>
    %c256_i32 = arith.constant 256 : i32
    %37 = vector.broadcast %c256_i32 : i32 to vector<128x256xi32>
    %38 = arith.cmpi slt, %36, %37 : vector<128x256xi32>
    %cst_20 = arith.constant 0.000000e+00 : f32
    %39 = vector.broadcast %cst_20 : f32 to vector<128x256xf32>
    %40 = arith.select %38, %28, %39 : vector<128x256xi1>, vector<128x256xf32>
    %c0_21 = arith.constant 0 : index
    %c0_22 = arith.constant 0 : index
    %41 = vector.load %arg9[%c0_21, %c0_22] : memref<1x256xf32, #tpu.memory_space<vmem>>, vector<1x256xf32>
    %cst_23 = arith.constant dense<0.000000e+00> : vector<256xf32>
    %42 = vector.multi_reduction <add>, %40, %cst_23 [0] : vector<128x256xf32> to vector<256xf32>
    %43 = vector.shape_cast %42 : vector<256xf32> to vector<1x256xf32>
    %44 = arith.addf %41, %43 : vector<1x256xf32>
    %c0_24 = arith.constant 0 : index
    %c0_25 = arith.constant 0 : index
    %45 = vector.load %arg9[%c0_24, %c0_25] : memref<1x256xf32, #tpu.memory_space<vmem>>, vector<1x256xf32>
    tpu.vector_store %arg9[%c0_24, %c0_25], %44 {strides = array<i32>} : memref<1x256xf32, #tpu.memory_space<vmem>>, vector<1x256xf32>,
    %c0_26 = arith.constant 0 : index
    %c0_27 = arith.constant 0 : index
    %46 = vector.load %arg10[%c0_26, %c0_27] : memref<1x256xf32, #tpu.memory_space<vmem>>, vector<1x256xf32>
    %47 = arith.mulf %40, %40 : vector<128x256xf32>
    %cst_28 = arith.constant dense<0.000000e+00> : vector<256xf32>
    %48 = vector.multi_reduction <add>, %47, %cst_28 [0] : vector<128x256xf32> to vector<256xf32>
    %49 = vector.shape_cast %48 : vector<256xf32> to vector<1x256xf32>
    %50 = arith.addf %46, %49 : vector<1x256xf32>
    %c0_29 = arith.constant 0 : index
    %c0_30 = arith.constant 0 : index
    %51 = vector.load %arg10[%c0_29, %c0_30] : memref<1x256xf32, #tpu.memory_space<vmem>>, vector<1x256xf32>
    tpu.vector_store %arg10[%c0_29, %c0_30], %50 {strides = array<i32>} : memref<1x256xf32, #tpu.memory_space<vmem>>, vector<1x256xf32>,
    return
  }
  func.func @transform_0(%arg0: i32) -> (i32, i32) {
    %c0_i32 = arith.constant 0 : i32
    %c0_i32_0 = arith.constant 0 : i32
    return %arg0, %c0_i32 : i32, i32
  }
  func.func @transform_1(%arg0: i32) -> (i32, i32) {
    %c0_i32 = arith.constant 0 : i32
    %c0_i32_0 = arith.constant 0 : i32
    %c0_i32_1 = arith.constant 0 : i32
    return %c0_i32, %c0_i32_0 : i32, i32
  }
  func.func @transform_2(%arg0: i32) -> (i32, i32) {
    %c0_i32 = arith.constant 0 : i32
    %c0_i32_0 = arith.constant 0 : i32
    %c0_i32_1 = arith.constant 0 : i32
    return %c0_i32, %c0_i32_0 : i32, i32
  }
  func.func @transform_3(%arg0: i32) -> (i32, i32) {
    %c0_i32 = arith.constant 0 : i32
    %c0_i32_0 = arith.constant 0 : i32
    %c0_i32_1 = arith.constant 0 : i32
    return %c0_i32, %c0_i32_0 : i32, i32
  }
  func.func @transform_4(%arg0: i32) -> (i32, i32) {
    %c0_i32 = arith.constant 0 : i32
    %c0_i32_0 = arith.constant 0 : i32
    %c0_i32_1 = arith.constant 0 : i32
    return %c0_i32, %c0_i32_0 : i32, i32
  }
  func.func @transform_5(%arg0: i32) -> (i32, i32) {
    %c0_i32 = arith.constant 0 : i32
    %c0_i32_0 = arith.constant 0 : i32
    %c0_i32_1 = arith.constant 0 : i32
    return %c0_i32, %c0_i32_0 : i32, i32
  }
  func.func @transform_6(%arg0: i32) -> (i32, i32) {
    %c0_i32 = arith.constant 0 : i32
    %c0_i32_0 = arith.constant 0 : i32
    %c0_i32_1 = arith.constant 0 : i32
    return %c0_i32, %c0_i32_0 : i32, i32
  }
  func.func @transform_7(%arg0: i32) -> (i32, i32) {
    %c0_i32 = arith.constant 0 : i32
    %c0_i32_0 = arith.constant 0 : i32
    return %arg0, %c0_i32 : i32, i32
  }
  func.func @transform_8(%arg0: i32) -> (i32, i32) {
    %c0_i32 = arith.constant 0 : i32
    %c0_i32_0 = arith.constant 0 : i32
    %c0_i32_1 = arith.constant 0 : i32
    return %c0_i32, %c0_i32_0 : i32, i32
  }
  func.func @transform_9(%arg0: i32) -> (i32, i32) {
    %c0_i32 = arith.constant 0 : i32
    %c0_i32_0 = arith.constant 0 : i32
    %c0_i32_1 = arith.constant 0 : i32
    return %c0_i32, %c0_i32_0 : i32, i32
  }
}

module attributes {stable_mosaic.version = 11 : i64} {
  func.func @_bn_relu_linear_stats_kernel(%arg0: i32, %arg1: memref<128x128xf32, #tpu.memory_space<vmem>>, %arg2: memref<1x128xf32, #tpu.memory_space<vmem>>, %arg3: memref<1x128xf32, #tpu.memory_space<vmem>>, %arg4: memref<1x128xf32, #tpu.memory_space<vmem>>, %arg5: memref<1x128xf32, #tpu.memory_space<vmem>>, %arg6: memref<128x64xbf16, #tpu.memory_space<vmem>>, %arg7: memref<1x64xf32, #tpu.memory_space<vmem>>, %arg8: memref<128x64xf32, #tpu.memory_space<vmem>>, %arg9: memref<1x64xf32, #tpu.memory_space<vmem>>, %arg10: memref<1x64xf32, #tpu.memory_space<vmem>>) attributes {dimension_semantics = [#tpu.dimension_semantics<arbitrary>], iteration_bounds = array<i64: 2>, scalar_prefetch = 0 : i64, scratch_operands = 0 : i64, tpu.core_type = #tpu.core_type<tc>, window_params = [{transform_indices = @transform_0, window_bounds = array<i64: 128, 128>}, {pipeline_mode = #tpu.pipeline_mode<synchronous>, transform_indices = @transform_1, window_bounds = array<i64: 1, 128>}, {pipeline_mode = #tpu.pipeline_mode<synchronous>, transform_indices = @transform_2, window_bounds = array<i64: 1, 128>}, {pipeline_mode = #tpu.pipeline_mode<synchronous>, transform_indices = @transform_3, window_bounds = array<i64: 1, 128>}, {pipeline_mode = #tpu.pipeline_mode<synchronous>, transform_indices = @transform_4, window_bounds = array<i64: 1, 128>}, {pipeline_mode = #tpu.pipeline_mode<synchronous>, transform_indices = @transform_5, window_bounds = array<i64: 128, 64>}, {pipeline_mode = #tpu.pipeline_mode<synchronous>, transform_indices = @transform_6, window_bounds = array<i64: 1, 64>}, {transform_indices = @transform_7, window_bounds = array<i64: 128, 64>}, {pipeline_mode = #tpu.pipeline_mode<synchronous>, transform_indices = @transform_8, window_bounds = array<i64: 1, 64>}, {pipeline_mode = #tpu.pipeline_mode<synchronous>, transform_indices = @transform_9, window_bounds = array<i64: 1, 64>}]} {
    %c0 = arith.constant 0 : index
    %c0_0 = arith.constant 0 : index
    %0 = vector.load %arg2[%c0, %c0_0] : memref<1x128xf32, #tpu.memory_space<vmem>>, vector<1x128xf32>
    %c0_1 = arith.constant 0 : index
    %c0_2 = arith.constant 0 : index
    %1 = vector.load %arg3[%c0_1, %c0_2] : memref<1x128xf32, #tpu.memory_space<vmem>>, vector<1x128xf32>
    %c0_3 = arith.constant 0 : index
    %c0_4 = arith.constant 0 : index
    %2 = vector.load %arg4[%c0_3, %c0_4] : memref<1x128xf32, #tpu.memory_space<vmem>>, vector<1x128xf32>
    %c0_5 = arith.constant 0 : index
    %c0_6 = arith.constant 0 : index
    %3 = vector.load %arg5[%c0_5, %c0_6] : memref<1x128xf32, #tpu.memory_space<vmem>>, vector<1x128xf32>
    %cst = arith.constant 3.906250e-03 : f32
    %4 = vector.broadcast %cst : f32 to vector<1x128xf32>
    %5 = arith.mulf %0, %4 : vector<1x128xf32>
    %cst_7 = arith.constant 3.906250e-03 : f32
    %6 = vector.broadcast %cst_7 : f32 to vector<1x128xf32>
    %7 = arith.mulf %1, %6 : vector<1x128xf32>
    %8 = arith.mulf %5, %5 : vector<1x128xf32>
    %9 = arith.subf %7, %8 : vector<1x128xf32>
    %cst_8 = arith.constant 9.99999974E-6 : f32
    %10 = vector.broadcast %cst_8 : f32 to vector<1x128xf32>
    %11 = arith.addf %9, %10 : vector<1x128xf32>
    %12 = math.rsqrt %11 : vector<1x128xf32>
    %13 = arith.mulf %2, %12 : vector<1x128xf32>
    %14 = arith.mulf %5, %13 : vector<1x128xf32>
    %15 = arith.subf %3, %14 : vector<1x128xf32>
    %c0_9 = arith.constant 0 : index
    %c0_10 = arith.constant 0 : index
    %16 = vector.load %arg1[%c0_9, %c0_10] : memref<128x128xf32, #tpu.memory_space<vmem>>, vector<128x128xf32>
    %17 = vector.broadcast %13 : vector<1x128xf32> to vector<128x128xf32>
    %18 = arith.mulf %16, %17 : vector<128x128xf32>
    %19 = vector.broadcast %15 : vector<1x128xf32> to vector<128x128xf32>
    %20 = arith.addf %18, %19 : vector<128x128xf32>
    %cst_11 = arith.constant 0.000000e+00 : f32
    %21 = vector.broadcast %cst_11 : f32 to vector<128x128xf32>
    %22 = arith.maximumf %20, %21 : vector<128x128xf32>
    %23 = arith.truncf %22 : vector<128x128xf32> to vector<128x128xbf16>
    %c0_12 = arith.constant 0 : index
    %c0_13 = arith.constant 0 : index
    %24 = vector.load %arg6[%c0_12, %c0_13] : memref<128x64xbf16, #tpu.memory_space<vmem>>, vector<128x64xbf16>
    %cst_14 = arith.constant dense<0.000000e+00> : vector<128x64xf32>
    %25 = tpu.matmul %23, %24, %cst_14 {dimension_numbers = #tpu.dot_dimension_numbers<[1], [0], [0], [1], [0, 0, 1, 1], [], []>} : vector<128x128xbf16>, vector<128x64xbf16>, vector<128x64xf32> -> vector<128x64xf32>
    %c0_15 = arith.constant 0 : index
    %c0_16 = arith.constant 0 : index
    %26 = vector.load %arg7[%c0_15, %c0_16] : memref<1x64xf32, #tpu.memory_space<vmem>>, vector<1x64xf32>
    %27 = vector.broadcast %26 : vector<1x64xf32> to vector<128x64xf32>
    %28 = arith.addf %25, %27 : vector<128x64xf32>
    %c0_17 = arith.constant 0 : index
    %c0_18 = arith.constant 0 : index
    %29 = vector.load %arg8[%c0_17, %c0_18] : memref<128x64xf32, #tpu.memory_space<vmem>>, vector<128x64xf32>
    tpu.vector_store %arg8[%c0_17, %c0_18], %28 {strides = array<i32>} : memref<128x64xf32, #tpu.memory_space<vmem>>, vector<128x64xf32>,
    %c0_i32 = arith.constant 0 : i32
    %30 = arith.cmpi eq, %arg0, %c0_i32 : i32
    %31 = arith.extui %30 : i1 to i32
    %c0_i32_19 = arith.constant 0 : i32
    %32 = arith.cmpi ne, %31, %c0_i32_19 : i32
    scf.if %32 {
      %cst_31 = arith.constant 0.000000e+00 : f32
      %52 = vector.broadcast %cst_31 : f32 to vector<1x64xf32>
      %c0_32 = arith.constant 0 : index
      %c0_33 = arith.constant 0 : index
      %53 = vector.load %arg9[%c0_32, %c0_33] : memref<1x64xf32, #tpu.memory_space<vmem>>, vector<1x64xf32>
      tpu.vector_store %arg9[%c0_32, %c0_33], %52 {strides = array<i32>} : memref<1x64xf32, #tpu.memory_space<vmem>>, vector<1x64xf32>,
      %cst_34 = arith.constant 0.000000e+00 : f32
      %54 = vector.broadcast %cst_34 : f32 to vector<1x64xf32>
      %c0_35 = arith.constant 0 : index
      %c0_36 = arith.constant 0 : index
      %55 = vector.load %arg10[%c0_35, %c0_36] : memref<1x64xf32, #tpu.memory_space<vmem>>, vector<1x64xf32>
      tpu.vector_store %arg10[%c0_35, %c0_36], %54 {strides = array<i32>} : memref<1x64xf32, #tpu.memory_space<vmem>>, vector<1x64xf32>,
    } else {
    }
    %33 = tpu.iota {dimensions = array<i32: 0>} : vector<128x64xi32>
    %c128_i32 = arith.constant 128 : i32
    %34 = arith.muli %arg0, %c128_i32 : i32
    %35 = vector.broadcast %34 : i32 to vector<128x64xi32>
    %36 = arith.addi %33, %35 : vector<128x64xi32>
    %c256_i32 = arith.constant 256 : i32
    %37 = vector.broadcast %c256_i32 : i32 to vector<128x64xi32>
    %38 = arith.cmpi slt, %36, %37 : vector<128x64xi32>
    %cst_20 = arith.constant 0.000000e+00 : f32
    %39 = vector.broadcast %cst_20 : f32 to vector<128x64xf32>
    %40 = arith.select %38, %28, %39 : vector<128x64xi1>, vector<128x64xf32>
    %c0_21 = arith.constant 0 : index
    %c0_22 = arith.constant 0 : index
    %41 = vector.load %arg9[%c0_21, %c0_22] : memref<1x64xf32, #tpu.memory_space<vmem>>, vector<1x64xf32>
    %cst_23 = arith.constant dense<0.000000e+00> : vector<64xf32>
    %42 = vector.multi_reduction <add>, %40, %cst_23 [0] : vector<128x64xf32> to vector<64xf32>
    %43 = vector.shape_cast %42 : vector<64xf32> to vector<1x64xf32>
    %44 = arith.addf %41, %43 : vector<1x64xf32>
    %c0_24 = arith.constant 0 : index
    %c0_25 = arith.constant 0 : index
    %45 = vector.load %arg9[%c0_24, %c0_25] : memref<1x64xf32, #tpu.memory_space<vmem>>, vector<1x64xf32>
    tpu.vector_store %arg9[%c0_24, %c0_25], %44 {strides = array<i32>} : memref<1x64xf32, #tpu.memory_space<vmem>>, vector<1x64xf32>,
    %c0_26 = arith.constant 0 : index
    %c0_27 = arith.constant 0 : index
    %46 = vector.load %arg10[%c0_26, %c0_27] : memref<1x64xf32, #tpu.memory_space<vmem>>, vector<1x64xf32>
    %47 = arith.mulf %40, %40 : vector<128x64xf32>
    %cst_28 = arith.constant dense<0.000000e+00> : vector<64xf32>
    %48 = vector.multi_reduction <add>, %47, %cst_28 [0] : vector<128x64xf32> to vector<64xf32>
    %49 = vector.shape_cast %48 : vector<64xf32> to vector<1x64xf32>
    %50 = arith.addf %46, %49 : vector<1x64xf32>
    %c0_29 = arith.constant 0 : index
    %c0_30 = arith.constant 0 : index
    %51 = vector.load %arg10[%c0_29, %c0_30] : memref<1x64xf32, #tpu.memory_space<vmem>>, vector<1x64xf32>
    tpu.vector_store %arg10[%c0_29, %c0_30], %50 {strides = array<i32>} : memref<1x64xf32, #tpu.memory_space<vmem>>, vector<1x64xf32>,
    return
  }
  func.func @transform_0(%arg0: i32) -> (i32, i32) {
    %c0_i32 = arith.constant 0 : i32
    %c0_i32_0 = arith.constant 0 : i32
    return %arg0, %c0_i32 : i32, i32
  }
  func.func @transform_1(%arg0: i32) -> (i32, i32) {
    %c0_i32 = arith.constant 0 : i32
    %c0_i32_0 = arith.constant 0 : i32
    %c0_i32_1 = arith.constant 0 : i32
    return %c0_i32, %c0_i32_0 : i32, i32
  }
  func.func @transform_2(%arg0: i32) -> (i32, i32) {
    %c0_i32 = arith.constant 0 : i32
    %c0_i32_0 = arith.constant 0 : i32
    %c0_i32_1 = arith.constant 0 : i32
    return %c0_i32, %c0_i32_0 : i32, i32
  }
  func.func @transform_3(%arg0: i32) -> (i32, i32) {
    %c0_i32 = arith.constant 0 : i32
    %c0_i32_0 = arith.constant 0 : i32
    %c0_i32_1 = arith.constant 0 : i32
    return %c0_i32, %c0_i32_0 : i32, i32
  }
  func.func @transform_4(%arg0: i32) -> (i32, i32) {
    %c0_i32 = arith.constant 0 : i32
    %c0_i32_0 = arith.constant 0 : i32
    %c0_i32_1 = arith.constant 0 : i32
    return %c0_i32, %c0_i32_0 : i32, i32
  }
  func.func @transform_5(%arg0: i32) -> (i32, i32) {
    %c0_i32 = arith.constant 0 : i32
    %c0_i32_0 = arith.constant 0 : i32
    %c0_i32_1 = arith.constant 0 : i32
    return %c0_i32, %c0_i32_0 : i32, i32
  }
  func.func @transform_6(%arg0: i32) -> (i32, i32) {
    %c0_i32 = arith.constant 0 : i32
    %c0_i32_0 = arith.constant 0 : i32
    %c0_i32_1 = arith.constant 0 : i32
    return %c0_i32, %c0_i32_0 : i32, i32
  }
  func.func @transform_7(%arg0: i32) -> (i32, i32) {
    %c0_i32 = arith.constant 0 : i32
    %c0_i32_0 = arith.constant 0 : i32
    return %arg0, %c0_i32 : i32, i32
  }
  func.func @transform_8(%arg0: i32) -> (i32, i32) {
    %c0_i32 = arith.constant 0 : i32
    %c0_i32_0 = arith.constant 0 : i32
    %c0_i32_1 = arith.constant 0 : i32
    return %c0_i32, %c0_i32_0 : i32, i32
  }
  func.func @transform_9(%arg0: i32) -> (i32, i32) {
    %c0_i32 = arith.constant 0 : i32
    %c0_i32_0 = arith.constant 0 : i32
    %c0_i32_1 = arith.constant 0 : i32
    return %c0_i32, %c0_i32_0 : i32, i32
  }
}

module attributes {stable_mosaic.version = 11 : i64} {
  func.func @_bn_relu_linear_logsoftmax_kernel(%arg0: i32, %arg1: memref<128x64xf32, #tpu.memory_space<vmem>>, %arg2: memref<1x64xf32, #tpu.memory_space<vmem>>, %arg3: memref<1x64xf32, #tpu.memory_space<vmem>>, %arg4: memref<1x64xf32, #tpu.memory_space<vmem>>, %arg5: memref<1x64xf32, #tpu.memory_space<vmem>>, %arg6: memref<64x10xbf16, #tpu.memory_space<vmem>>, %arg7: memref<1x10xf32, #tpu.memory_space<vmem>>, %arg8: memref<128x10xf32, #tpu.memory_space<vmem>>) attributes {dimension_semantics = [#tpu.dimension_semantics<parallel>], iteration_bounds = array<i64: 2>, scalar_prefetch = 0 : i64, scratch_operands = 0 : i64, tpu.core_type = #tpu.core_type<tc>, window_params = [{transform_indices = @transform_0, window_bounds = array<i64: 128, 64>}, {pipeline_mode = #tpu.pipeline_mode<synchronous>, transform_indices = @transform_1, window_bounds = array<i64: 1, 64>}, {pipeline_mode = #tpu.pipeline_mode<synchronous>, transform_indices = @transform_2, window_bounds = array<i64: 1, 64>}, {pipeline_mode = #tpu.pipeline_mode<synchronous>, transform_indices = @transform_3, window_bounds = array<i64: 1, 64>}, {pipeline_mode = #tpu.pipeline_mode<synchronous>, transform_indices = @transform_4, window_bounds = array<i64: 1, 64>}, {pipeline_mode = #tpu.pipeline_mode<synchronous>, transform_indices = @transform_5, window_bounds = array<i64: 64, 10>}, {pipeline_mode = #tpu.pipeline_mode<synchronous>, transform_indices = @transform_6, window_bounds = array<i64: 1, 10>}, {transform_indices = @transform_7, window_bounds = array<i64: 128, 10>}]} {
    %c0 = arith.constant 0 : index
    %c0_0 = arith.constant 0 : index
    %0 = vector.load %arg2[%c0, %c0_0] : memref<1x64xf32, #tpu.memory_space<vmem>>, vector<1x64xf32>
    %c0_1 = arith.constant 0 : index
    %c0_2 = arith.constant 0 : index
    %1 = vector.load %arg3[%c0_1, %c0_2] : memref<1x64xf32, #tpu.memory_space<vmem>>, vector<1x64xf32>
    %c0_3 = arith.constant 0 : index
    %c0_4 = arith.constant 0 : index
    %2 = vector.load %arg4[%c0_3, %c0_4] : memref<1x64xf32, #tpu.memory_space<vmem>>, vector<1x64xf32>
    %c0_5 = arith.constant 0 : index
    %c0_6 = arith.constant 0 : index
    %3 = vector.load %arg5[%c0_5, %c0_6] : memref<1x64xf32, #tpu.memory_space<vmem>>, vector<1x64xf32>
    %cst = arith.constant 3.906250e-03 : f32
    %4 = vector.broadcast %cst : f32 to vector<1x64xf32>
    %5 = arith.mulf %0, %4 : vector<1x64xf32>
    %cst_7 = arith.constant 3.906250e-03 : f32
    %6 = vector.broadcast %cst_7 : f32 to vector<1x64xf32>
    %7 = arith.mulf %1, %6 : vector<1x64xf32>
    %8 = arith.mulf %5, %5 : vector<1x64xf32>
    %9 = arith.subf %7, %8 : vector<1x64xf32>
    %cst_8 = arith.constant 9.99999974E-6 : f32
    %10 = vector.broadcast %cst_8 : f32 to vector<1x64xf32>
    %11 = arith.addf %9, %10 : vector<1x64xf32>
    %12 = math.rsqrt %11 : vector<1x64xf32>
    %13 = arith.mulf %2, %12 : vector<1x64xf32>
    %14 = arith.mulf %5, %13 : vector<1x64xf32>
    %15 = arith.subf %3, %14 : vector<1x64xf32>
    %c0_9 = arith.constant 0 : index
    %c0_10 = arith.constant 0 : index
    %16 = vector.load %arg1[%c0_9, %c0_10] : memref<128x64xf32, #tpu.memory_space<vmem>>, vector<128x64xf32>
    %17 = vector.broadcast %13 : vector<1x64xf32> to vector<128x64xf32>
    %18 = arith.mulf %16, %17 : vector<128x64xf32>
    %19 = vector.broadcast %15 : vector<1x64xf32> to vector<128x64xf32>
    %20 = arith.addf %18, %19 : vector<128x64xf32>
    %cst_11 = arith.constant 0.000000e+00 : f32
    %21 = vector.broadcast %cst_11 : f32 to vector<128x64xf32>
    %22 = arith.maximumf %20, %21 : vector<128x64xf32>
    %23 = arith.truncf %22 : vector<128x64xf32> to vector<128x64xbf16>
    %c0_12 = arith.constant 0 : index
    %c0_13 = arith.constant 0 : index
    %24 = vector.load %arg6[%c0_12, %c0_13] : memref<64x10xbf16, #tpu.memory_space<vmem>>, vector<64x10xbf16>
    %cst_14 = arith.constant dense<0.000000e+00> : vector<128x10xf32>
    %25 = tpu.matmul %23, %24, %cst_14 {dimension_numbers = #tpu.dot_dimension_numbers<[1], [0], [0], [1], [0, 0, 1, 1], [], []>} : vector<128x64xbf16>, vector<64x10xbf16>, vector<128x10xf32> -> vector<128x10xf32>
    %c0_15 = arith.constant 0 : index
    %c0_16 = arith.constant 0 : index
    %26 = vector.load %arg7[%c0_15, %c0_16] : memref<1x10xf32, #tpu.memory_space<vmem>>, vector<1x10xf32>
    %27 = vector.broadcast %26 : vector<1x10xf32> to vector<128x10xf32>
    %28 = arith.addf %25, %27 : vector<128x10xf32>
    %cst_17 = arith.constant dense<0xFF800000> : vector<128xf32>
    %29 = vector.multi_reduction <maximumf>, %28, %cst_17 [1] : vector<128x10xf32> to vector<128xf32>
    %30 = vector.shape_cast %29 : vector<128xf32> to vector<128x1xf32>
    %31 = vector.broadcast %30 : vector<128x1xf32> to vector<128x10xf32>
    %32 = arith.subf %28, %31 : vector<128x10xf32>
    %33 = math.exp %32 : vector<128x10xf32>
    %cst_18 = arith.constant dense<0.000000e+00> : vector<128xf32>
    %34 = vector.multi_reduction <add>, %33, %cst_18 [1] : vector<128x10xf32> to vector<128xf32>
    %35 = vector.shape_cast %34 : vector<128xf32> to vector<128x1xf32>
    %36 = math.log %35 : vector<128x1xf32>
    %37 = vector.broadcast %36 : vector<128x1xf32> to vector<128x10xf32>
    %38 = arith.subf %32, %37 : vector<128x10xf32>
    %c0_19 = arith.constant 0 : index
    %c0_20 = arith.constant 0 : index
    %39 = vector.load %arg8[%c0_19, %c0_20] : memref<128x10xf32, #tpu.memory_space<vmem>>, vector<128x10xf32>
    tpu.vector_store %arg8[%c0_19, %c0_20], %38 {strides = array<i32>} : memref<128x10xf32, #tpu.memory_space<vmem>>, vector<128x10xf32>,
    return
  }
  func.func @transform_0(%arg0: i32) -> (i32, i32) {
    %c0_i32 = arith.constant 0 : i32
    %c0_i32_0 = arith.constant 0 : i32
    return %arg0, %c0_i32 : i32, i32
  }
  func.func @transform_1(%arg0: i32) -> (i32, i32) {
    %c0_i32 = arith.constant 0 : i32
    %c0_i32_0 = arith.constant 0 : i32
    %c0_i32_1 = arith.constant 0 : i32
    return %c0_i32, %c0_i32_0 : i32, i32
  }
  func.func @transform_2(%arg0: i32) -> (i32, i32) {
    %c0_i32 = arith.constant 0 : i32
    %c0_i32_0 = arith.constant 0 : i32
    %c0_i32_1 = arith.constant 0 : i32
    return %c0_i32, %c0_i32_0 : i32, i32
  }
  func.func @transform_3(%arg0: i32) -> (i32, i32) {
    %c0_i32 = arith.constant 0 : i32
    %c0_i32_0 = arith.constant 0 : i32
    %c0_i32_1 = arith.constant 0 : i32
    return %c0_i32, %c0_i32_0 : i32, i32
  }
  func.func @transform_4(%arg0: i32) -> (i32, i32) {
    %c0_i32 = arith.constant 0 : i32
    %c0_i32_0 = arith.constant 0 : i32
    %c0_i32_1 = arith.constant 0 : i32
    return %c0_i32, %c0_i32_0 : i32, i32
  }
  func.func @transform_5(%arg0: i32) -> (i32, i32) {
    %c0_i32 = arith.constant 0 : i32
    %c0_i32_0 = arith.constant 0 : i32
    %c0_i32_1 = arith.constant 0 : i32
    return %c0_i32, %c0_i32_0 : i32, i32
  }
  func.func @transform_6(%arg0: i32) -> (i32, i32) {
    %c0_i32 = arith.constant 0 : i32
    %c0_i32_0 = arith.constant 0 : i32
    %c0_i32_1 = arith.constant 0 : i32
    return %c0_i32, %c0_i32_0 : i32, i32
  }
  func.func @transform_7(%arg0: i32) -> (i32, i32) {
    %c0_i32 = arith.constant 0 : i32
    %c0_i32_0 = arith.constant 0 : i32
    return %arg0, %c0_i32 : i32, i32
  }
}

</mosaic_0001>

<bundles_post_ra>
// kernel: linear_classifier_forward.7
= control target key start
LH: loop header
LB: loop body
LE: loop exit
PB: predicated region body
PF: predicated region fallthrough
CT: control target
= control target key end

     0   :  { %s1143_s30 = smov 0   ;;  %s1497_s0 = inlined_call_operand.vmem [shape: f32[256,256], index: 0, kind: input, shape index: {}]   ;;  %s1498_s1 = inlined_call_operand.vmem [shape: f32[1,256], index: 1, kind: input, shape index: {}]   ;;  %s1499_s2 = inlined_call_operand.vmem [shape: f32[1,256], index: 2, kind: input, shape index: {}]   ;;  %s1500_s3 = inlined_call_operand.vmem [shape: f32[1,256], index: 3, kind: input, shape index: {}]   ;;  %s1501_s4 = inlined_call_operand.vmem [shape: f32[1,256], index: 4, kind: input, shape index: {}]   ;;  %s1502_s5 = inlined_call_operand.vmem [shape: bf16[256,128], index: 5, kind: input, shape index: {}]   ;;  %s1503_s6 = inlined_call_operand.vmem [shape: f32[1,128], index: 6, kind: input, shape index: {}]   ;;  %s1504_s7 = inlined_call_operand.vmem [shape: f32[256,128], index: 7, kind: output, shape index: {0}]   ;;  %s1505_s8 = inlined_call_operand.vmem [shape: f32[1,128], index: 8, kind: output, shape index: {1}]   ;;  %s1506_s9 = inlined_call_operand.vmem [shape: f32[1,128], index: 9, kind: output, shape index: {2}]  }
   0x1 LB: > { %s1149_s10 = sadd.s32 4294967295, %s1090_s30   ;;  %p965_p0 = scmp.ge.s32.totalorder %s1090_s30, 1  ;;  %s1090_s30 = sphi %s1143_s30, %s20_s30  }
   0x2   : > { %p284_p1 = scmp.lt.s32.totalorder %s1090_s30, 3 }
   0x4   : > { %p285_p2 = pnand %p965_p0, %p284_p1 }
   0x5   : > { %s966_s16 = sshll.u32 (!%p285_p2), %s1149_s10, 4  ;;  %p1035_p4 = scmp.ne.s32.totalorder (!%p285_p2), %s1149_s10, 0 }
   0x6   : > { %288 = sbr.rel (%p285_p2) target bundleno = 306 (0x132), region = 48  ;;  %p322_p3 = scmp.lt.s32.totalorder (!%p285_p2), %s966_s16, 31 }
   0xb   : > { %v1047_v0 = vld [vmem:[%s1502_s5 + $0x38] sm:$0xff]  ;;  %v1046_v2 = vld [vmem:[%s1502_s5 + $0x30] sm:$0xff]  ;;  %v334_v4 = vld [vmem:[%s1498_s1] sm:$0x3]  ;;  %s1508_s16 = smov (!%p322_p3, %s966_s16), 31 }
   0xc   : > { %v1055_v1 = vld [vmem:[%s1502_s5 + $0x78] sm:$0xff]  ;;  %642 = vmatpush.bf16.msra.mxu0 %v1047_v0  ;;  %1056 = vmatpush.bf16.msra.mxu2 %v1047_v0  ;;  %v1054_v3 = vld [vmem:[%s1502_s5 + $0x70] sm:$0xff]  ;;  %v335_v5 = vld [vmem:[%s1499_s2] sm:$0x3]  ;;  %v1174_v7 = vmul.f32 0.00390625, %v334_v4  ;;  %s1039_s27 = sshll.u32 %s1508_s16, 4 }
   0xd   : > { %691 = vmatpush.bf16.msra.mxu1 %v1055_v1  ;;  %1064 = vmatpush.bf16.msra.mxu3 %v1055_v1  ;;  %v1045_v6 = vld [vmem:[%s1502_s5 + $0x28] sm:$0xff]  ;;  %v339_v8 = vmul.f32 0.00390625, %v335_v5  ;;  %v1044_v11 = vld [vmem:[%s1502_s5 + $0x20] sm:$0xff]  ;;  %v1043_v15 = vld [vmem:[%s1502_s5 + $0x18] sm:$0xff]  ;;  %s1218_s13 = scalar_lea.vmem %s1497_s0, %s1039_s27  ;;  %s970_s21 = sshll.u32 %s1508_s16, 3 }
   0xe   : > { %v1053_v9 = vld [vmem:[%s1502_s5 + $0x68] sm:$0xff]  ;;  %v340_v10 = vmul.f32 %v1174_v7, %v1174_v7  ;;  %v1052_v13 = vld [vmem:[%s1502_s5 + $0x60] sm:$0xff]  ;;  %v1051_v16 = vld [vmem:[%s1502_s5 + $0x58] sm:$0xff]  ;;  %s1341_s24 = scalar_lea.vmem %s1504_s7, %s970_s21 }
   0xf   : > { %v1042_v17 = vld [vmem:[%s1502_s5 + $0x10] sm:$0xff]  ;;  %v1041_v21 = vld [vmem:[%s1502_s5 + $0x8] sm:$0xff]  ;;  %v1040_v25 = vld [vmem:[%s1502_s5] sm:$0xff] }
  0x10   : > { %643 = vmatpush.bf16.msra.mxu0 %v1046_v2  ;;  %1057 = vmatpush.bf16.msra.mxu2 %v1046_v2  ;;  %v341_v12 = vsub.f32 %v339_v8, %v340_v10  ;;  %v1050_v18 = vld [vmem:[%s1502_s5 + $0x50] sm:$0xff]  ;;  %v1049_v22 = vld [vmem:[%s1502_s5 + $0x48] sm:$0xff]  ;;  %v1048_v26 = vld [vmem:[%s1502_s5 + $0x40] sm:$0xff] }
  0x11   : > { %692 = vmatpush.bf16.msra.mxu1 %v1054_v3  ;;  %1065 = vmatpush.bf16.msra.mxu3 %v1054_v3  ;;  %v336_v28 = vld [vmem:[%s1500_s3] sm:$0x3]  ;;  %v358_v34 = vld [vmem:[%s1218_s13 + $0x10] sm:$0xff]  ;;  %v357_v39 = vld [vmem:[%s1218_s13 + $0x8] sm:$0xff] }
  0x12   : > { %v342_v14 = vadd.f32 1e-05, %v341_v12  ;;  %v337_v31 = vld [vmem:[%s1501_s4] sm:$0x3]  ;;  %v374_v36 = vld [vmem:[%s1218_s13 + $0x90] sm:$0xff]  ;;  %v359_v40 = vld [vmem:[%s1218_s13 + $0x18] sm:$0xff] }
  0x13   : > { %v356_v33 = vld [vmem:[%s1218_s13] sm:$0xff]  ;;  %v373_v42 = vld [vmem:[%s1218_s13 + $0x88] sm:$0xff]  ;;  %v375_v43 = vld [vmem:[%s1218_s13 + $0x98] sm:$0xff] }
  0x14   : > { %644 = vmatpush.bf16.msra.mxu0 %v1045_v6  ;;  %1058 = vmatpush.bf16.msra.mxu2 %v1045_v6  ;;  %1082 = vrsqrt.f32 %v342_v14  ;;  %vm349_vm0 = vweird.f32 %v342_v14  ;;  %v372_v35 = vld [vmem:[%s1218_s13 + $0x80] sm:$0xff]  ;;  %v362_v4 = vld [vmem:[%s1218_s13 + $0x30] sm:$0xff] }
  0x15   : > { %693 = vmatpush.bf16.msra.mxu1 %v1053_v9  ;;  %1066 = vmatpush.bf16.msra.mxu3 %v1053_v9  ;;  %v360_v63 = vld [vmem:[%s1218_s13 + $0x20] sm:$0xff]  ;;  %v378_v10 = vld [vmem:[%s1218_s13 + $0xb0] sm:$0xff] }
  0x16   : > { %v376_v5 = vld [vmem:[%s1218_s13 + $0xa0] sm:$0xff] }
  0x18   : > { %645 = vmatpush.bf16.msra.mxu0 %v1044_v11  ;;  %1059 = vmatpush.bf16.msra.mxu2 %v1044_v11  ;;  %v361_v11 = vld [vmem:[%s1218_s13 + $0x28] sm:$0xff] }
  0x19   : > { %694 = vmatpush.bf16.msra.mxu1 %v1052_v13  ;;  %1067 = vmatpush.bf16.msra.mxu3 %v1052_v13 }
  0x1a   : > { %v1083_v19 = vpop.eup %1082 }
  0x1b   : > { %v344_v20 = vmul.f32 %v1083_v19, %v342_v14  ;;  %vm350_vm1 = vweird.f32 %v1083_v19  ;;  %v363_v14 = vld [vmem:[%s1218_s13 + $0x38] sm:$0xff] }
  0x1c   : > { %646 = vmatpush.bf16.msra.mxu0 %v1043_v15  ;;  %1060 = vmatpush.bf16.msra.mxu2 %v1043_v15  ;;  %vm351_vm2 = vmor %vm349_vm0, %vm350_vm1  ;;  %v377_v15 = vld [vmem:[%s1218_s13 + $0xa8] sm:$0xff] }
  0x1d   : > { %695 = vmatpush.bf16.msra.mxu1 %v1051_v16  ;;  %1068 = vmatpush.bf16.msra.mxu3 %v1051_v16  ;;  %v345_v23 = vmul.f32 %v1083_v19, %v344_v20  ;;  %v379_v16 = vld [vmem:[%s1218_s13 + $0xb8] sm:$0xff] }
  0x1f   : > { %v346_v24 = vmul.f32 0.5, %v345_v23 }
  0x20   : > { %647 = vmatpush.bf16.msra.mxu0 %v1042_v17  ;;  %1061 = vmatpush.bf16.msra.mxu2 %v1042_v17 }
  0x21   : > { %696 = vmatpush.bf16.msra.mxu1 %v1050_v18  ;;  %1069 = vmatpush.bf16.msra.mxu3 %v1050_v18  ;;  %v347_v27 = vsub.f32 1.5, %v346_v24 }
  0x23   : > { %v348_v29 = vmul.f32 %v1083_v19, %v347_v27 }
  0x24   : > { %648 = vmatpush.bf16.msra.mxu0 %v1041_v21  ;;  %1062 = vmatpush.bf16.msra.mxu2 %v1041_v21 }
  0x25   : > { %697 = vmatpush.bf16.msra.mxu1 %v1049_v22  ;;  %1070 = vmatpush.bf16.msra.mxu3 %v1049_v22  ;;  %v352_v30 = vsel %vm351_vm2, %v1083_v19, %v348_v29 }
  0x26   : > { %v353_v32 = vmul.f32 %v352_v30, %v336_v28 }
  0x28   : > { %649 = vmatpush.bf16.msra.mxu0 %v1040_v25  ;;  %1063 = vmatpush.bf16.msra.mxu2 %v1040_v25  ;;  %v354_v37 = vmul.f32 %v353_v32, %v1174_v7  ;;  %v1231_v38 = vperm.slane %v353_v32, 0  ;;  %v1235_v41 = vperm.slane %v353_v32, 1 }
  0x29   : > { %698 = vmatpush.bf16.msra.mxu1 %v1048_v26  ;;  %1071 = vmatpush.bf16.msra.mxu3 %v1048_v26 }
  0x2a   : > { %v355_v44 = vsub.f32 %v337_v31, %v354_v37  ;;  %v393_v45 = vmul.f32 %v1231_v38, %v356_v33  ;;  %v395_v46 = vmul.f32 %v1231_v38, %v358_v34  ;;  %v409_v47 = vmul.f32 %v1231_v38, %v372_v35 }
  0x2b   : > { %v411_v48 = vmul.f32 %v1231_v38, %v374_v36  ;;  %v394_v49 = vmul.f32 %v1235_v41, %v357_v39  ;;  %v396_v50 = vmul.f32 %v1235_v41, %v359_v40  ;;  %v410_v51 = vmul.f32 %v1235_v41, %v373_v42 }
  0x2c   : > { %v1246_v52 = vperm.slane %v355_v44, 0  ;;  %v1248_v53 = vperm.slane %v355_v44, 1  ;;  %v412_v54 = vmul.f32 %v1235_v41, %v375_v43  ;;  %v397_v19 = vmul.f32 %v1231_v38, %v360_v63 }
  0x2d   : > { %v399_v20 = vmul.f32 %v1231_v38, %v362_v4  ;;  %v413_v21 = vmul.f32 %v1231_v38, %v376_v5  ;;  %v415_v22 = vmul.f32 %v1231_v38, %v378_v10  ;;  %v398_v23 = vmul.f32 %v1235_v41, %v361_v11 }
  0x2e   : > { %v430_v55 = vadd.f32 %v1246_v52, %v393_v45  ;;  %v432_v56 = vadd.f32 %v1246_v52, %v395_v46  ;;  %v446_v57 = vadd.f32 %v1246_v52, %v409_v47  ;;  %v448_v58 = vadd.f32 %v1246_v52, %v411_v48  ;;  %v364_v47 = vld [vmem:[%s1218_s13 + $0x40] sm:$0xff]  ;;  %v366_v48 = vld [vmem:[%s1218_s13 + $0x50] sm:$0xff] }
  0x2f   : > { %v431_v59 = vadd.f32 %v1248_v53, %v394_v49  ;;  %v433_v60 = vadd.f32 %v1248_v53, %v396_v50  ;;  %v447_v61 = vadd.f32 %v1248_v53, %v410_v51  ;;  %v449_v62 = vadd.f32 %v1248_v53, %v412_v54  ;;  %v380_v51 = vld [vmem:[%s1218_s13 + $0xc0] sm:$0xff]  ;;  %v382_v54 = vld [vmem:[%s1218_s13 + $0xd0] sm:$0xff] }
  0x30   : > { %v462_v0 = vmax.f32 %v430_v55, 0.0  ;;  %v464_v1 = vmax.f32 %v432_v56, 0.0  ;;  %v478_v2 = vmax.f32 %v446_v57, 0.0  ;;  %v480_v3 = vmax.f32 %v448_v58, 0.0  ;;  %v365_v55 = vld [vmem:[%s1218_s13 + $0x48] sm:$0xff]  ;;  %v367_v56 = vld [vmem:[%s1218_s13 + $0x58] sm:$0xff] }
  0x31   : > { %v463_v6 = vmax.f32 %v431_v59, 0.0  ;;  %v465_v7 = vmax.f32 %v433_v60, 0.0  ;;  %v479_v8 = vmax.f32 %v447_v61, 0.0  ;;  %v481_v9 = vmax.f32 %v449_v62, 0.0  ;;  %v381_v57 = vld [vmem:[%s1218_s13 + $0xc8] sm:$0xff]  ;;  %v383_v58 = vld [vmem:[%s1218_s13 + $0xd8] sm:$0xff] }
  0x32   : > { %v494_v12 = vpack.c.bf16 %v464_v1, %v462_v0  ;;  %v502_v13 = vpack.c.bf16 %v480_v3, %v478_v2  ;;  %v400_v24 = vmul.f32 %v1235_v41, %v363_v14  ;;  %v414_v25 = vmul.f32 %v1235_v41, %v377_v15 }
  0x33   : > { %v495_v17 = vpack.c.bf16 %v465_v7, %v463_v6  ;;  %v503_v18 = vpack.c.bf16 %v481_v9, %v479_v8  ;;  %v416_v26 = vmul.f32 %v1235_v41, %v379_v16  ;;  %v434_v27 = vadd.f32 %v1246_v52, %v397_v19 }
  0x34   : > { %650 = vmatmul.bf16.vlgmr.msra.gmra.mxu0 %v494_v12  ;;  %670 = vmatmul.bf16.vlgmr.msra.gmra.mxu2 %v502_v13  ;;  %v436_v28 = vadd.f32 %v1246_v52, %v399_v20  ;;  %v450_v29 = vadd.f32 %v1246_v52, %v413_v21  ;;  %v452_v30 = vadd.f32 %v1246_v52, %v415_v22  ;;  %v368_v21 = vld [vmem:[%s1218_s13 + $0x60] sm:$0xff]  ;;  %v370_v22 = vld [vmem:[%s1218_s13 + $0x70] sm:$0xff] }
  0x35   : > { %699 = vmatmul.bf16.vlgmr.msra.gmra.mxu1 %v495_v17  ;;  %719 = vmatmul.bf16.vlgmr.msra.gmra.mxu3 %v503_v18  ;;  %v435_v31 = vadd.f32 %v1248_v53, %v398_v23  ;;  %v437_v32 = vadd.f32 %v1248_v53, %v400_v24  ;;  %v451_v33 = vadd.f32 %v1248_v53, %v414_v25  ;;  %v466_v35 = vmax.f32 %v434_v27, 0.0  ;;  %v384_v25 = vld [vmem:[%s1218_s13 + $0xe0] sm:$0xff]  ;;  %v369_v27 = vld [vmem:[%s1218_s13 + $0x68] sm:$0xff] }
  0x36   : > { %v453_v34 = vadd.f32 %v1248_v53, %v416_v26  ;;  %v468_v36 = vmax.f32 %v436_v28, 0.0  ;;  %v482_v37 = vmax.f32 %v450_v29, 0.0  ;;  %v484_v39 = vmax.f32 %v452_v30, 0.0  ;;  %v386_v26 = vld [vmem:[%s1218_s13 + $0xf0] sm:$0xff]  ;;  %v371_v28 = vld [vmem:[%s1218_s13 + $0x78] sm:$0xff]  ;;  %v385_v29 = vld [vmem:[%s1218_s13 + $0xe8] sm:$0xff] }
  0x37   : > { %v467_v40 = vmax.f32 %v435_v31, 0.0  ;;  %v469_v42 = vmax.f32 %v437_v32, 0.0  ;;  %v483_v43 = vmax.f32 %v451_v33, 0.0  ;;  %v401_v59 = vmul.f32 %v1231_v38, %v364_v47  ;;  %v387_v30 = vld [vmem:[%s1218_s13 + $0xf8] sm:$0xff] }
  0x38   : > { %v485_v44 = vmax.f32 %v453_v34, 0.0  ;;  %v496_v45 = vpack.c.bf16 %v468_v36, %v466_v35  ;;  %v504_v46 = vpack.c.bf16 %v484_v39, %v482_v37  ;;  %v403_v60 = vmul.f32 %v1231_v38, %v366_v48 }
  0x39   : > { %v497_v49 = vpack.c.bf16 %v469_v42, %v467_v40  ;;  %v417_v61 = vmul.f32 %v1231_v38, %v380_v51  ;;  %v419_v62 = vmul.f32 %v1231_v38, %v382_v54  ;;  %v402_v63 = vmul.f32 %v1235_v41, %v365_v55 }
  0x3a   : > { %v505_v50 = vpack.c.bf16 %v485_v44, %v483_v43  ;;  %v404_v0 = vmul.f32 %v1235_v41, %v367_v56  ;;  %v418_v1 = vmul.f32 %v1235_v41, %v381_v57  ;;  %v420_v2 = vmul.f32 %v1235_v41, %v383_v58 }
  0x3b   : > { %v438_v3 = vadd.f32 %v1246_v52, %v401_v59  ;;  %v440_v4 = vadd.f32 %v1246_v52, %v403_v60  ;;  %v454_v5 = vadd.f32 %v1246_v52, %v417_v61  ;;  %v456_v6 = vadd.f32 %v1246_v52, %v419_v62 }
  0x3c   : > { %v439_v7 = vadd.f32 %v1248_v53, %v402_v63  ;;  %v441_v8 = vadd.f32 %v1248_v53, %v404_v0  ;;  %v455_v9 = vadd.f32 %v1248_v53, %v418_v1  ;;  %v457_v10 = vadd.f32 %v1248_v53, %v420_v2 }
  0x3d   : > { %v470_v11 = vmax.f32 %v438_v3, 0.0  ;;  %v472_v12 = vmax.f32 %v440_v4, 0.0  ;;  %v486_v13 = vmax.f32 %v454_v5, 0.0  ;;  %v488_v14 = vmax.f32 %v456_v6, 0.0 }
  0x3e   : > { %v471_v15 = vmax.f32 %v439_v7, 0.0  ;;  %v473_v16 = vmax.f32 %v441_v8, 0.0  ;;  %v487_v17 = vmax.f32 %v455_v9, 0.0  ;;  %v489_v18 = vmax.f32 %v457_v10, 0.0 }
  0x3f   : > { %v498_v19 = vpack.c.bf16 %v472_v12, %v470_v11  ;;  %v506_v20 = vpack.c.bf16 %v488_v14, %v486_v13  ;;  %v405_v31 = vmul.f32 %v1231_v38, %v368_v21  ;;  %v407_v32 = vmul.f32 %v1231_v38, %v370_v22 }
  0x40   : > { %v499_v23 = vpack.c.bf16 %v473_v16, %v471_v15  ;;  %v507_v24 = vpack.c.bf16 %v489_v18, %v487_v17  ;;  %v421_v33 = vmul.f32 %v1231_v38, %v384_v25  ;;  %v423_v34 = vmul.f32 %v1231_v38, %v386_v26 }
  0x41   : > { %v406_v35 = vmul.f32 %v1235_v41, %v369_v27  ;;  %v408_v36 = vmul.f32 %v1235_v41, %v371_v28  ;;  %v422_v37 = vmul.f32 %v1235_v41, %v385_v29  ;;  %v424_v39 = vmul.f32 %v1235_v41, %v387_v30 }
  0x42   : > { %v442_v40 = vadd.f32 %v1246_v52, %v405_v31  ;;  %v444_v42 = vadd.f32 %v1246_v52, %v407_v32  ;;  %v458_v43 = vadd.f32 %v1246_v52, %v421_v33  ;;  %v460_v44 = vadd.f32 %v1246_v52, %v423_v34 }
  0x43   : > { %v443_v38 = vadd.f32 %v1248_v53, %v406_v35  ;;  %v461_v47 = vadd.f32 %v1248_v53, %v424_v39 }
  0x44   : > { %655 = vmatmul.bf16.gmra.mxu0 %v496_v45  ;;  %675 = vmatmul.bf16.gmra.mxu2 %v504_v46  ;;  %v445_v45 = vadd.f32 %v1248_v53, %v408_v36  ;;  %v459_v46 = vadd.f32 %v1248_v53, %v422_v37  ;;  %v474_v48 = vmax.f32 %v442_v40, 0.0  ;;  %v490_v41 = vmax.f32 %v458_v43, 0.0  ;;  %v1334_v53 = vld [vmem:[%s1503_s6] ss:$0 sm:$0xff] }
  0x45   : > { %704 = vmatmul.bf16.gmra.mxu1 %v497_v49  ;;  %724 = vmatmul.bf16.gmra.mxu3 %v505_v50  ;;  %v476_v49 = vmax.f32 %v444_v42, 0.0  ;;  %v492_v50 = vmax.f32 %v460_v44, 0.0  ;;  %v475_v51 = vmax.f32 %v443_v38, 0.0  ;;  %v493_v56 = vmax.f32 %v461_v47, 0.0 }
  0x46   : > { %v477_v54 = vmax.f32 %v445_v45, 0.0  ;;  %v491_v55 = vmax.f32 %v459_v46, 0.0 }
  0x47   : > { %v500_v57 = vpack.c.bf16 %v476_v49, %v474_v48  ;;  %v508_v58 = vpack.c.bf16 %v492_v50, %v490_v41 }
  0x48   : > { %v501_v52 = vpack.c.bf16 %v477_v54, %v475_v51  ;;  %v509_v59 = vpack.c.bf16 %v493_v56, %v491_v55 }
  0x54   : > { %660 = vmatmul.bf16.gmra.mxu0 %v498_v19  ;;  %680 = vmatmul.bf16.gmra.mxu2 %v506_v20 }
  0x55   : > { %709 = vmatmul.bf16.gmra.mxu1 %v499_v23  ;;  %729 = vmatmul.bf16.gmra.mxu3 %v507_v24 }
  0x64   : > { %665 = vmatmul.bf16.gmra.mxu0 %v500_v57  ;;  %685 = vmatmul.bf16.gmra.mxu2 %v508_v58 }
  0x65   : > { %714 = vmatmul.bf16.gmra.mxu1 %v501_v52  ;;  %734 = vmatmul.bf16.gmra.mxu3 %v509_v59 }
  0xb1   : > { %v651_v60 = vpop.f32.mrf.mxu0 }
  0xb2   : > { %v652_v61 = vadd.f32 %v1334_v53, %v651_v60  ;;  %v700_v62 = vpop.f32.mrf.mxu1 }
  0xb4   : > { %v1343_v63 = vadd.f32 %v700_v62, %v652_v61 }
  0xb6   : > { %740 = vst [vmem:[%s1341_s24] sm:$0xff] %v1343_v63 }
  0xb7   : > { %v671_v0 = vpop.f32.mrf.mxu2 }
  0xb8   : > { %v672_v1 = vadd.f32 %v1334_v53, %v671_v0  ;;  %v720_v2 = vpop.f32.mrf.mxu3 }
  0xb9   : > { %v653_v3 = vpop.f32.mrf.mxu0 }
  0xba   : > { %v1348_v4 = vadd.f32 %v720_v2, %v672_v1  ;;  %v654_v5 = vadd.f32 %v1334_v53, %v653_v3  ;;  %v702_v6 = vpop.f32.mrf.mxu1 }
  0xbc   : > { %748 = vst [vmem:[%s1341_s24 + $0x40] sm:$0xff] %v1348_v4  ;;  %v1353_v7 = vadd.f32 %v702_v6, %v654_v5 }
  0xbe   : > { %741 = vst [vmem:[%s1341_s24 + $0x8] sm:$0xff] %v1353_v7 }
  0xbf   : > { %v673_v8 = vpop.f32.mrf.mxu2 }
  0xc0   : > { %v674_v9 = vadd.f32 %v1334_v53, %v673_v8  ;;  %v722_v10 = vpop.f32.mrf.mxu3 }
  0xc1   : > { %v656_v11 = vpop.f32.mrf.mxu0 }
  0xc2   : > { %v1358_v12 = vadd.f32 %v722_v10, %v674_v9  ;;  %v657_v13 = vadd.f32 %v1334_v53, %v656_v11  ;;  %v705_v14 = vpop.f32.mrf.mxu1 }
  0xc4   : > { %749 = vst [vmem:[%s1341_s24 + $0x48] sm:$0xff] %v1358_v12  ;;  %v1363_v15 = vadd.f32 %v705_v14, %v657_v13 }
  0xc6   : > { %742 = vst [vmem:[%s1341_s24 + $0x10] sm:$0xff] %v1363_v15 }
  0xc7   : > { %v676_v16 = vpop.f32.mrf.mxu2 }
  0xc8   : > { %v677_v17 = vadd.f32 %v1334_v53, %v676_v16  ;;  %v725_v18 = vpop.f32.mrf.mxu3 }
  0xc9   : > { %v658_v19 = vpop.f32.mrf.mxu0 }
  0xca   : > { %v1368_v20 = vadd.f32 %v725_v18, %v677_v17  ;;  %v659_v21 = vadd.f32 %v1334_v53, %v658_v19  ;;  %v707_v22 = vpop.f32.mrf.mxu1 }
  0xcc   : > { %750 = vst [vmem:[%s1341_s24 + $0x50] sm:$0xff] %v1368_v20  ;;  %v1373_v23 = vadd.f32 %v707_v22, %v659_v21 }
  0xce   : > { %743 = vst [vmem:[%s1341_s24 + $0x18] sm:$0xff] %v1373_v23 }
  0xcf   : > { %v678_v24 = vpop.f32.mrf.mxu2 }
  0xd0   : > { %v679_v25 = vadd.f32 %v1334_v53, %v678_v24  ;;  %v727_v26 = vpop.f32.mrf.mxu3 }
  0xd1   : > { %v661_v27 = vpop.f32.mrf.mxu0 }
  0xd2   : > { %v1378_v28 = vadd.f32 %v727_v26, %v679_v25  ;;  %v662_v29 = vadd.f32 %v1334_v53, %v661_v27  ;;  %v710_v30 = vpop.f32.mrf.mxu1 }
  0xd4   : > { %751 = vst [vmem:[%s1341_s24 + $0x58] sm:$0xff] %v1378_v28  ;;  %v1383_v31 = vadd.f32 %v710_v30, %v662_v29 }
  0xd6   : > { %744 = vst [vmem:[%s1341_s24 + $0x20] sm:$0xff] %v1383_v31 }
  0xd7   : > { %v681_v32 = vpop.f32.mrf.mxu2 }
  0xd8   : > { %v682_v33 = vadd.f32 %v1334_v53, %v681_v32  ;;  %v730_v34 = vpop.f32.mrf.mxu3 }
  0xd9   : > { %v663_v35 = vpop.f32.mrf.mxu0 }
  0xda   : > { %v1388_v36 = vadd.f32 %v730_v34, %v682_v33  ;;  %v664_v37 = vadd.f32 %v1334_v53, %v663_v35  ;;  %v712_v39 = vpop.f32.mrf.mxu1 }
  0xdc   : > { %752 = vst [vmem:[%s1341_s24 + $0x60] sm:$0xff] %v1388_v36  ;;  %v1393_v40 = vadd.f32 %v712_v39, %v664_v37 }
  0xde   : > { %745 = vst [vmem:[%s1341_s24 + $0x28] sm:$0xff] %v1393_v40 }
  0xdf   : > { %v683_v42 = vpop.f32.mrf.mxu2 }
  0xe0   : > { %v684_v43 = vadd.f32 %v1334_v53, %v683_v42  ;;  %v732_v44 = vpop.f32.mrf.mxu3 }
  0xe1   : > { %v666_v38 = vpop.f32.mrf.mxu0 }
  0xe2   : > { %v1398_v45 = vadd.f32 %v732_v44, %v684_v43  ;;  %v667_v46 = vadd.f32 %v1334_v53, %v666_v38  ;;  %v715_v47 = vpop.f32.mrf.mxu1 }
  0xe4   : > { %753 = vst [vmem:[%s1341_s24 + $0x68] sm:$0xff] %v1398_v45  ;;  %v1403_v48 = vadd.f32 %v715_v47, %v667_v46 }
  0xe6   : > { %746 = vst [vmem:[%s1341_s24 + $0x30] sm:$0xff] %v1403_v48 }
  0xe7   : > { %v686_v49 = vpop.f32.mrf.mxu2 }
  0xe8   : > { %v687_v41 = vadd.f32 %v1334_v53, %v686_v49  ;;  %v735_v50 = vpop.f32.mrf.mxu3 }
  0xe9   : > { %v668_v51 = vpop.f32.mrf.mxu0 }
  0xea   : > { %v1408_v54 = vadd.f32 %v735_v50, %v687_v41  ;;  %v669_v55 = vadd.f32 %v1334_v53, %v668_v51  ;;  %v717_v56 = vpop.f32.mrf.mxu1 }
  0xec   : > { %754 = vst [vmem:[%s1341_s24 + $0x70] sm:$0xff] %v1408_v54  ;;  %v1413_v57 = vadd.f32 %v717_v56, %v669_v55 }
  0xee   : > { %747 = vst [vmem:[%s1341_s24 + $0x38] sm:$0xff] %v1413_v57 }
  0xef   : > { %v688_v58 = vpop.f32.mrf.mxu2 }
  0xf0   : > { %v689_v52 = vadd.f32 %v1334_v53, %v688_v58  ;;  %v737_v59 = vpop.f32.mrf.mxu3  ;;  %759 = sbr.rel (%p1035_p4) target bundleno = 248 (0xf8), region = 52 }
  0xf2   : > { %v1418_v60 = vadd.f32 %v737_v59, %v689_v52 }
  0xf4   : > { %755 = vst [vmem:[%s1341_s24 + $0x78] sm:$0xff] %v1418_v60 }
  0xf5   : > { %v1092_v61 = vmov 0.0  }
  0xf6   : > { %760 = vst [vmem:[%s1505_s8] sm:$0x1] %v1092_v61 }
  0xf7   : > { %761 = vst [vmem:[%s1506_s9] sm:$0x1] %v1092_v61 }
  0xf8 PF: > { %v762_v62 = vlaneseq  ;;  %s1036_s28 = sshll.u32 %s1149_s10, 7 }
  0xf9   : > { %v1433_v1 = vstv %s1036_s28 }
  0xfa   : > { %v1429_v53 = vshrl.u32 %v762_v62, 7 }
  0xfc   : > { %v764_v0 = vadd.s32 8, %v1429_v53  ;;  %v765_v2 = vadd.s32 16, %v1429_v53  ;;  %v766_v3 = vadd.s32 24, %v1429_v53  ;;  %v781_v5 = vadd.s32 %v1433_v1, %v1429_v53 }
  0xfd   : > { %v767_v8 = vadd.s32 32, %v1429_v53  ;;  %v768_v10 = vadd.s32 40, %v1429_v53  ;;  %v769_v13 = vadd.s32 48, %v1429_v53  ;;  %v770_v18 = vadd.s32 56, %v1429_v53 }
  0xfe   : > { %v782_v6 = vadd.s32 %v1433_v1, %v764_v0  ;;  %v783_v9 = vadd.s32 %v1433_v1, %v765_v2  ;;  %v784_v11 = vadd.s32 %v1433_v1, %v766_v3  ;;  %vm797_vm3 = vcmp.lt.s32.totalorder %v781_v5, 256 }
  0xff   : > { %v785_v14 = vadd.s32 %v1433_v1, %v767_v8  ;;  %v813_v16 = vsel %vm797_vm3, %v1343_v63, 0.0  ;;  %v786_v19 = vadd.s32 %v1433_v1, %v768_v10  ;;  %v771_v21 = vadd.s32 64, %v1429_v53 }
 0x100   : > { %vm798_vm4 = vcmp.lt.s32.totalorder %v782_v6, 256  ;;  %vm799_vm5 = vcmp.lt.s32.totalorder %v783_v9, 256  ;;  %vm800_vm6 = vcmp.lt.s32.totalorder %v784_v11, 256  ;;  %v787_v25 = vadd.s32 %v1433_v1, %v769_v13 }
 0x101   : > { %v814_v17 = vsel %vm798_vm4, %v1353_v7, 0.0  ;;  %v815_v22 = vsel %vm799_vm5, %v1363_v15, 0.0  ;;  %vm801_vm7 = vcmp.lt.s32.totalorder %v785_v14, 256  ;;  %v854_v26 = vmul.f32 %v813_v16, %v813_v16 }
 0x102   : > { %v830_v24 = vadd.f32 %v814_v17, %v813_v16  ;;  %v855_v27 = vmul.f32 %v814_v17, %v814_v17  ;;  %v816_v29 = vsel %vm800_vm6, %v1373_v23, 0.0  ;;  %v772_v7 = vadd.s32 72, %v1429_v53 }
 0x103   : > { %v788_v30 = vadd.s32 %v1433_v1, %v770_v18  ;;  %vm802_vm8 = vcmp.lt.s32.totalorder %v786_v19, 256  ;;  %v856_v32 = vmul.f32 %v815_v22, %v815_v22  ;;  %v773_v33 = vadd.s32 80, %v1429_v53 }
 0x104   : > { %v831_v63 = vadd.f32 %v830_v24, %v815_v22  ;;  %v817_v34 = vsel %vm801_vm7, %v1383_v31, 0.0  ;;  %v789_v35 = vadd.s32 %v1433_v1, %v771_v21  ;;  %vm803_vm9 = vcmp.lt.s32.totalorder %v787_v25, 256 }
 0x105   : > { %v857_v37 = vmul.f32 %v816_v29, %v816_v29  ;;  %v870_v39 = vadd.f32 %v855_v27, %v854_v26  ;;  %v774_v42 = vadd.s32 88, %v1429_v53  ;;  %v818_v23 = vsel %vm802_vm8, %v1393_v40, 0.0 }
 0x106   : > { %v832_v15 = vadd.f32 %v831_v63, %v816_v29  ;;  %v790_v44 = vadd.s32 %v1433_v1, %v772_v7  ;;  %vm804_vm10 = vcmp.lt.s32.totalorder %v788_v30, 256  ;;  %v858_v38 = vmul.f32 %v817_v34, %v817_v34 }
 0x107   : > { %v871_v46 = vadd.f32 %v870_v39, %v856_v32  ;;  %v775_v47 = vadd.s32 96, %v1429_v53  ;;  %v819_v31 = vsel %vm803_vm9, %v1403_v48, 0.0  ;;  %v791_v41 = vadd.s32 %v1433_v1, %v773_v33 }
 0x108   : > { %v833_v43 = vadd.f32 %v832_v15, %v817_v34  ;;  %vm805_vm11 = vcmp.lt.s32.totalorder %v789_v35, 256  ;;  %v859_v50 = vmul.f32 %v818_v23, %v818_v23  ;;  %v776_v55 = vadd.s32 104, %v1429_v53 }
 0x109   : > { %v872_v51 = vadd.f32 %v871_v46, %v857_v37  ;;  %v820_v40 = vsel %vm804_vm10, %v1413_v57, 0.0  ;;  %v792_v58 = vadd.s32 %v1433_v1, %v774_v42  ;;  %vm806_vm12 = vcmp.lt.s32.totalorder %v790_v44, 256  ;;  %v829_v46 = vld [vmem:[%s1505_s8] sm:$0x1] }
 0x10a   : > { %v834_v49 = vadd.f32 %v833_v43, %v818_v23  ;;  %v860_v52 = vmul.f32 %v819_v31, %v819_v31  ;;  %v777_v61 = vadd.s32 112, %v1429_v53  ;;  %v821_v48 = vsel %vm805_vm11, %v1348_v4, 0.0 }
 0x10b   : > { %v873_v59 = vadd.f32 %v872_v51, %v858_v38  ;;  %v793_v0 = vadd.s32 %v1433_v1, %v775_v47  ;;  %vm807_vm13 = vcmp.lt.s32.totalorder %v791_v41, 256  ;;  %v861_v2 = vmul.f32 %v820_v40, %v820_v40 }
 0x10c   : > { %v835_v56 = vadd.f32 %v834_v49, %v819_v31  ;;  %v778_v5 = vadd.s32 120, %v1429_v53  ;;  %v822_v57 = vsel %vm806_vm12, %v1358_v12, 0.0  ;;  %v794_v8 = vadd.s32 %v1433_v1, %v776_v55 }
 0x10d   : > { %v874_v3 = vadd.f32 %v873_v59, %v859_v50  ;;  %vm808_vm14 = vcmp.lt.s32.totalorder %v792_v58, 256  ;;  %v862_v9 = vmul.f32 %v821_v48, %v821_v48  ;;  %v823_v11 = vsel %vm807_vm13, %v1368_v20, 0.0  ;;  %v853_v50 = vld [vmem:[%s1506_s9] sm:$0x1] }
 0x10e   : > { %v836_v62 = vadd.f32 %v835_v56, %v820_v40  ;;  %v795_v4 = vadd.s32 %v1433_v1, %v777_v61  ;;  %vm809_vm15 = vcmp.lt.s32.totalorder %v793_v0, 256  ;;  %v863_v14 = vmul.f32 %v822_v57, %v822_v57 }
 0x10f   : > { %v875_v10 = vadd.f32 %v874_v3, %v860_v52  ;;  %v824_v17 = vsel %vm808_vm14, %v1378_v28, 0.0  ;;  %v796_v53 = vadd.s32 %v1433_v1, %v778_v5  ;;  %vm810_vm0 = vcmp.lt.s32.totalorder %v794_v8, 256 }
 0x110   : > { %v837_v6 = vadd.f32 %v836_v62, %v821_v48  ;;  %v864_v12 = vmul.f32 %v823_v11, %v823_v11  ;;  %v825_v21 = vsel %vm809_vm15, %v1388_v36, 0.0  ;;  %vm811_vm1 = vcmp.lt.s32.totalorder %v795_v4, 256 }
 0x111   : > { %v876_v16 = vadd.f32 %v875_v10, %v861_v2  ;;  %v865_v24 = vmul.f32 %v824_v17, %v824_v17  ;;  %v826_v25 = vsel %vm810_vm0, %v1398_v45, 0.0  ;;  %vm812_vm2 = vcmp.lt.s32.totalorder %v796_v53, 256 }
 0x112   : > { %v838_v13 = vadd.f32 %v837_v6, %v822_v57  ;;  %v866_v27 = vmul.f32 %v825_v21, %v825_v21  ;;  %v827_v28 = vsel %vm811_vm1, %v1408_v54, 0.0  ;;  %v867_v7 = vmul.f32 %v826_v25, %v826_v25 }
 0x113   : > { %v877_v19 = vadd.f32 %v876_v16, %v862_v9  ;;  %v828_v30 = vsel %vm812_vm2, %v1418_v60, 0.0  ;;  %v868_v33 = vmul.f32 %v827_v28, %v827_v28 }
 0x114   : > { %v839_v18 = vadd.f32 %v838_v13, %v823_v11  ;;  %v869_v15 = vmul.f32 %v828_v30, %v828_v30 }
 0x115   : > { %v878_v20 = vadd.f32 %v877_v19, %v863_v14 }
 0x116   : > { %v840_v22 = vadd.f32 %v839_v18, %v824_v17 }
 0x117   : > { %v879_v29 = vadd.f32 %v878_v20, %v864_v12 }
 0x118   : > { %v841_v26 = vadd.f32 %v840_v22, %v825_v21 }
 0x119   : > { %v880_v1 = vadd.f32 %v879_v29, %v865_v24 }
 0x11a   : > { %v842_v63 = vadd.f32 %v841_v26, %v826_v25 }
 0x11b   : > { %v881_v36 = vadd.f32 %v880_v1, %v866_v27 }
 0x11c   : > { %v843_v32 = vadd.f32 %v842_v63, %v827_v28 }
 0x11d   : > { %v882_v35 = vadd.f32 %v881_v36, %v867_v7 }
 0x11e   : > { %v844_v34 = vadd.f32 %v843_v32, %v828_v30 }
 0x11f   : > { %v883_v39 = vadd.f32 %v882_v35, %v868_v33 }
 0x120   : > { %v845_v37 = vrot.slane %v844_v34, 4 }
 0x121   : > { %v884_v42 = vadd.f32 %v883_v39, %v869_v15 }
 0x122   : > { %v846_v45 = vadd.f32 %v845_v37, %v844_v34 }
 0x123   : > { %v885_v43 = vrot.slane %v884_v42, 4 }
 0x124   : > { %v847_v23 = vrot.slane %v846_v45, 2 }
 0x125   : > { %v886_v38 = vadd.f32 %v885_v43, %v884_v42 }
 0x126   : > { %v848_v44 = vadd.f32 %v847_v23, %v846_v45 }
 0x127   : > { %v887_v60 = vrot.slane %v886_v38, 2 }
 0x128   : > { %v849_v54 = vrot.slane %v848_v44, 1 }
 0x129   : > { %v888_v31 = vadd.f32 %v887_v60, %v886_v38 }
 0x12a   : > { %v850_v47 = vadd.f32 %v849_v54, %v848_v44 }
 0x12b   : > { %v889_v41 = vrot.slane %v888_v31, 1 }
 0x12c   : > { %v851_v49 = vadd.f32 %v850_v47, %v829_v46 }
 0x12d   : > { %v890_v51 = vadd.f32 %v889_v41, %v888_v31 }
 0x12e   : > { %852 = vst [vmem:[%s1505_s8] sm:$0x1] %v851_v49 }
 0x12f   : > { %v891_v55 = vadd.f32 %v890_v51, %v853_v50 }
 0x131   : > { %892 = vst [vmem:[%s1506_s9] sm:$0x1] %v891_v55 }
 0x132 PF: > { %s20_s30 = sadd.s32 1, %s1090_s30  }
 0x133   : > { %p17_p5 = scmp.ge.s32.totalorder %s20_s30, 4  }
 0x135   :  { %19 = sbr.rel (!%p17_p5) target bundleno = 1 (0x1), region = 98 }

// kernel: linear_classifier_forward.8
= control target key start
LH: loop header
LB: loop body
LE: loop exit
PB: predicated region body
PF: predicated region fallthrough
CT: control target
= control target key end

     0   :  { %s952_s30 = smov 0   ;;  %s1197_s0 = inlined_call_operand.vmem [shape: f32[256,128], index: 0, kind: input, shape index: {}]   ;;  %s1198_s1 = inlined_call_operand.vmem [shape: f32[1,128], index: 1, kind: input, shape index: {}]   ;;  %s1199_s2 = inlined_call_operand.vmem [shape: f32[1,128], index: 2, kind: input, shape index: {}]   ;;  %s1200_s3 = inlined_call_operand.vmem [shape: f32[1,128], index: 3, kind: input, shape index: {}]   ;;  %s1201_s4 = inlined_call_operand.vmem [shape: f32[1,128], index: 4, kind: input, shape index: {}]   ;;  %s1202_s5 = inlined_call_operand.vmem [shape: bf16[128,64], index: 5, kind: input, shape index: {}]   ;;  %s1203_s6 = inlined_call_operand.vmem [shape: f32[1,64], index: 6, kind: input, shape index: {}]   ;;  %s1204_s7 = inlined_call_operand.vmem [shape: f32[256,64], index: 7, kind: output, shape index: {0}]   ;;  %s1205_s8 = inlined_call_operand.vmem [shape: f32[1,64], index: 8, kind: output, shape index: {1}]   ;;  %s1206_s9 = inlined_call_operand.vmem [shape: f32[1,64], index: 9, kind: output, shape index: {2}]  }
   0x1 LB: > { %s958_s10 = sadd.s32 4294967295, %s899_s30   ;;  %p808_p0 = scmp.ge.s32.totalorder %s899_s30, 1  ;;  %s899_s30 = sphi %s952_s30, %s20_s30  }
   0x2   : > { %p283_p1 = scmp.lt.s32.totalorder %s899_s30, 3 }
   0x4   : > { %p284_p2 = pnand %p808_p0, %p283_p1 }
   0x5   : > { %s809_s23 = sshll.u32 (!%p284_p2), %s958_s10, 4  ;;  %p845_p4 = scmp.ne.s32.totalorder (!%p284_p2), %s958_s10, 0 }
   0x6   : > { %287 = sbr.rel (%p284_p2) target bundleno = 281 (0x119), region = 48  ;;  %p320_p3 = scmp.lt.s32.totalorder (!%p284_p2), %s809_s23, 31 }
   0xb   : > { %v856_v0 = vld [vmem:[%s1202_s5 + $0x38] sm:$0xff]  ;;  %v855_v1 = vld [vmem:[%s1202_s5 + $0x30] sm:$0xff]  ;;  %v331_v2 = vld [vmem:[%s1198_s1] sm:$0x1]  ;;  %s1208_s23 = smov (!%p320_p3, %s809_s23), 31  ;;  %vm548_vm3 = vcmask 523264  }
   0xc   : > { %499 = vmatpush.bf16.msra.mxu0 %v856_v0  ;;  %857 = vmatpush.bf16.msra.mxu1 %v856_v0  ;;  %v332_v3 = vld [vmem:[%s1199_s2] sm:$0x1]  ;;  %v335_v4 = vmul.f32 0.00390625, %v331_v2  ;;  %v854_v7 = vld [vmem:[%s1202_s5 + $0x28] sm:$0xff]  ;;  %v852_v11 = vld [vmem:[%s1202_s5 + $0x18] sm:$0xff]  ;;  %s810_s11 = sshll.u32 %s1208_s23, 3 }
   0xd   : > { %858 = vmatpush.bf16.msra.mxu2 %v856_v0  ;;  %859 = vmatpush.bf16.msra.mxu3 %v856_v0  ;;  %v336_v5 = vmul.f32 0.00390625, %v332_v3  ;;  %v853_v10 = vld [vmem:[%s1202_s5 + $0x20] sm:$0xff]  ;;  %v851_v13 = vld [vmem:[%s1202_s5 + $0x10] sm:$0xff]  ;;  %v850_v16 = vld [vmem:[%s1202_s5 + $0x8] sm:$0xff]  ;;  %s1001_s16 = scalar_lea.vmem %s1197_s0, %s810_s11  ;;  %s1033_s26 = scalar_lea.vmem %s1204_s7, %s810_s11 }
   0xe   : > { %v337_v6 = vmul.f32 %v335_v4, %v335_v4  ;;  %v849_v19 = vld [vmem:[%s1202_s5] sm:$0xff]  ;;  %v354_v26 = vld [vmem:[%s1001_s16 + $0x8] sm:$0xff]  ;;  %v355_v53 = vld [vmem:[%s1001_s16 + $0x10] sm:$0xff] }
   0xf   : > { %v333_v20 = vld [vmem:[%s1200_s3] sm:$0x1]  ;;  %v358_v28 = vld [vmem:[%s1001_s16 + $0x28] sm:$0xff]  ;;  %v356_v58 = vld [vmem:[%s1001_s16 + $0x18] sm:$0xff] }
  0x10   : > { %500 = vmatpush.bf16.msra.mxu0 %v855_v1  ;;  %860 = vmatpush.bf16.msra.mxu1 %v855_v1  ;;  %v338_v8 = vsub.f32 %v336_v5, %v337_v6  ;;  %v334_v23 = vld [vmem:[%s1201_s4] sm:$0x1]  ;;  %v362_v32 = vld [vmem:[%s1001_s16 + $0x48] sm:$0xff]  ;;  %v359_v59 = vld [vmem:[%s1001_s16 + $0x30] sm:$0xff] }
  0x11   : > { %861 = vmatpush.bf16.msra.mxu2 %v855_v1  ;;  %862 = vmatpush.bf16.msra.mxu3 %v855_v1  ;;  %v353_v25 = vld [vmem:[%s1001_s16] sm:$0xff]  ;;  %v366_v34 = vld [vmem:[%s1001_s16 + $0x68] sm:$0xff]  ;;  %v360_v0 = vld [vmem:[%s1001_s16 + $0x38] sm:$0xff] }
  0x12   : > { %v339_v9 = vadd.f32 1e-05, %v338_v8  ;;  %v357_v27 = vld [vmem:[%s1001_s16 + $0x20] sm:$0xff]  ;;  %v363_v1 = vld [vmem:[%s1001_s16 + $0x50] sm:$0xff]  ;;  %v368_v6 = vld [vmem:[%s1001_s16 + $0x78] sm:$0xff] }
  0x13   : > { %v361_v31 = vld [vmem:[%s1001_s16 + $0x40] sm:$0xff]  ;;  %v367_v5 = vld [vmem:[%s1001_s16 + $0x70] sm:$0xff] }
  0x14   : > { %501 = vmatpush.bf16.msra.mxu0 %v854_v7  ;;  %863 = vmatpush.bf16.msra.mxu1 %v854_v7  ;;  %891 = vrsqrt.f32 %v339_v9  ;;  %vm346_vm0 = vweird.f32 %v339_v9  ;;  %v365_v33 = vld [vmem:[%s1001_s16 + $0x60] sm:$0xff] }
  0x15   : > { %864 = vmatpush.bf16.msra.mxu2 %v854_v7  ;;  %865 = vmatpush.bf16.msra.mxu3 %v854_v7 }
  0x18   : > { %502 = vmatpush.bf16.msra.mxu0 %v853_v10  ;;  %866 = vmatpush.bf16.msra.mxu1 %v853_v10 }
  0x19   : > { %867 = vmatpush.bf16.msra.mxu2 %v853_v10  ;;  %868 = vmatpush.bf16.msra.mxu3 %v853_v10 }
  0x1a   : > { %v892_v12 = vpop.eup %891 }
  0x1b   : > { %v341_v14 = vmul.f32 %v892_v12, %v339_v9  ;;  %vm347_vm1 = vweird.f32 %v892_v12 }
  0x1c   : > { %503 = vmatpush.bf16.msra.mxu0 %v852_v11  ;;  %869 = vmatpush.bf16.msra.mxu1 %v852_v11  ;;  %vm348_vm2 = vmor %vm346_vm0, %vm347_vm1 }
  0x1d   : > { %870 = vmatpush.bf16.msra.mxu2 %v852_v11  ;;  %871 = vmatpush.bf16.msra.mxu3 %v852_v11  ;;  %v342_v15 = vmul.f32 %v892_v12, %v341_v14 }
  0x1f   : > { %v343_v17 = vmul.f32 0.5, %v342_v15 }
  0x20   : > { %504 = vmatpush.bf16.msra.mxu0 %v851_v13  ;;  %872 = vmatpush.bf16.msra.mxu1 %v851_v13 }
  0x21   : > { %873 = vmatpush.bf16.msra.mxu2 %v851_v13  ;;  %874 = vmatpush.bf16.msra.mxu3 %v851_v13  ;;  %v344_v18 = vsub.f32 1.5, %v343_v17 }
  0x23   : > { %v345_v21 = vmul.f32 %v892_v12, %v344_v18 }
  0x24   : > { %505 = vmatpush.bf16.msra.mxu0 %v850_v16  ;;  %875 = vmatpush.bf16.msra.mxu1 %v850_v16 }
  0x25   : > { %876 = vmatpush.bf16.msra.mxu2 %v850_v16  ;;  %877 = vmatpush.bf16.msra.mxu3 %v850_v16  ;;  %v349_v22 = vsel %vm348_vm2, %v892_v12, %v345_v21 }
  0x26   : > { %v350_v24 = vmul.f32 %v349_v22, %v333_v20 }
  0x28   : > { %506 = vmatpush.bf16.msra.mxu0 %v849_v19  ;;  %878 = vmatpush.bf16.msra.mxu1 %v849_v19  ;;  %v351_v29 = vmul.f32 %v350_v24, %v335_v4  ;;  %v370_v30 = vperm.slane %v350_v24, 0  ;;  %v364_v4 = vld [vmem:[%s1001_s16 + $0x58] sm:$0xff] }
  0x29   : > { %879 = vmatpush.bf16.msra.mxu2 %v849_v19  ;;  %880 = vmatpush.bf16.msra.mxu3 %v849_v19 }
  0x2a   : > { %v352_v35 = vsub.f32 %v334_v23, %v351_v29  ;;  %v372_v36 = vmul.f32 %v370_v30, %v353_v25  ;;  %v373_v37 = vmul.f32 %v370_v30, %v354_v26  ;;  %v376_v38 = vmul.f32 %v370_v30, %v357_v27 }
  0x2b   : > { %v377_v39 = vmul.f32 %v370_v30, %v358_v28  ;;  %v380_v40 = vmul.f32 %v370_v30, %v361_v31  ;;  %v381_v41 = vmul.f32 %v370_v30, %v362_v32  ;;  %v384_v42 = vmul.f32 %v370_v30, %v365_v33 }
  0x2c   : > { %v389_v43 = vperm.slane %v352_v35, 0  ;;  %v385_v44 = vmul.f32 %v370_v30, %v366_v34  ;;  %v374_v9 = vmul.f32 %v370_v30, %v355_v53  ;;  %v375_v10 = vmul.f32 %v370_v30, %v356_v58 }
  0x2d   : > { %v378_v11 = vmul.f32 %v370_v30, %v359_v59  ;;  %v379_v12 = vmul.f32 %v370_v30, %v360_v0  ;;  %v382_v13 = vmul.f32 %v370_v30, %v363_v1  ;;  %v383_v14 = vmul.f32 %v370_v30, %v364_v4 }
  0x2e   : > { %v391_v45 = vadd.f32 %v389_v43, %v372_v36  ;;  %v392_v46 = vadd.f32 %v389_v43, %v373_v37  ;;  %v395_v47 = vadd.f32 %v389_v43, %v376_v38  ;;  %v396_v48 = vadd.f32 %v389_v43, %v377_v39  ;;  %v890_v37 = vld [vmem:[%s1203_s6] ss:$0 sm:$0xff] }
  0x2f   : > { %v399_v49 = vadd.f32 %v389_v43, %v380_v40  ;;  %v400_v50 = vadd.f32 %v389_v43, %v381_v41  ;;  %v403_v51 = vadd.f32 %v389_v43, %v384_v42  ;;  %v404_v52 = vadd.f32 %v389_v43, %v385_v44 }
  0x30   : > { %v407_v54 = vmax.f32 %v391_v45, 0.0  ;;  %v408_v55 = vmax.f32 %v392_v46, 0.0  ;;  %v411_v56 = vmax.f32 %v395_v47, 0.0  ;;  %v412_v57 = vmax.f32 %v396_v48, 0.0 }
  0x31   : > { %v415_v60 = vmax.f32 %v399_v49, 0.0  ;;  %v416_v61 = vmax.f32 %v400_v50, 0.0  ;;  %v419_v62 = vmax.f32 %v403_v51, 0.0  ;;  %v420_v63 = vmax.f32 %v404_v52, 0.0 }
  0x32   : > { %v423_v2 = vpack.c.bf16 %v408_v55, %v407_v54  ;;  %v425_v3 = vpack.c.bf16 %v412_v57, %v411_v56  ;;  %v386_v15 = vmul.f32 %v370_v30, %v367_v5  ;;  %v387_v16 = vmul.f32 %v370_v30, %v368_v6 }
  0x33   : > { %v427_v7 = vpack.c.bf16 %v416_v61, %v415_v60  ;;  %v429_v8 = vpack.c.bf16 %v420_v63, %v419_v62  ;;  %v393_v17 = vadd.f32 %v389_v43, %v374_v9  ;;  %v394_v18 = vadd.f32 %v389_v43, %v375_v10 }
  0x34   : > { %507 = vmatmul.bf16.vlgmr.msra.gmra.mxu0 %v423_v2  ;;  %517 = vmatmul.bf16.vlgmr.msra.gmra.mxu1 %v425_v3  ;;  %v397_v19 = vadd.f32 %v389_v43, %v378_v11  ;;  %v398_v20 = vadd.f32 %v389_v43, %v379_v12  ;;  %v401_v21 = vadd.f32 %v389_v43, %v382_v13 }
  0x35   : > { %527 = vmatmul.bf16.vlgmr.msra.gmra.mxu2 %v427_v7  ;;  %537 = vmatmul.bf16.vlgmr.msra.gmra.mxu3 %v429_v8  ;;  %v402_v22 = vadd.f32 %v389_v43, %v383_v14  ;;  %v405_v23 = vadd.f32 %v389_v43, %v386_v15  ;;  %v406_v24 = vadd.f32 %v389_v43, %v387_v16  ;;  %v409_v25 = vmax.f32 %v393_v17, 0.0 }
  0x36   : > { %v410_v26 = vmax.f32 %v394_v18, 0.0  ;;  %v413_v27 = vmax.f32 %v397_v19, 0.0  ;;  %v414_v28 = vmax.f32 %v398_v20, 0.0  ;;  %v417_v29 = vmax.f32 %v401_v21, 0.0 }
  0x37   : > { %v418_v31 = vmax.f32 %v402_v22, 0.0  ;;  %v421_v32 = vmax.f32 %v405_v23, 0.0  ;;  %v422_v33 = vmax.f32 %v406_v24, 0.0 }
  0x38   : > { %v424_v34 = vpack.c.bf16 %v410_v26, %v409_v25  ;;  %v426_v35 = vpack.c.bf16 %v414_v28, %v413_v27 }
  0x39   : > { %v428_v30 = vpack.c.bf16 %v418_v31, %v417_v29  ;;  %v430_v36 = vpack.c.bf16 %v422_v33, %v421_v32 }
  0x44   : > { %512 = vmatmul.bf16.gmra.mxu0 %v424_v34  ;;  %522 = vmatmul.bf16.gmra.mxu1 %v426_v35 }
  0x45   : > { %532 = vmatmul.bf16.gmra.mxu2 %v428_v30  ;;  %542 = vmatmul.bf16.gmra.mxu3 %v430_v36 }
  0xb1   : > { %v508_v38 = vpop.f32.mrf.mxu0  ;;  %v518_v39 = vpop.f32.mrf.mxu1 }
  0xb2   : > { %v1035_v40 = vadd.f32 %v890_v37, %v508_v38  ;;  %v1037_v41 = vadd.f32 %v890_v37, %v518_v39 }
  0xb4   : > { %549 = vst.msk [vmem:[%s1033_s26] sm:$0xff] %vm548_vm3, %v1035_v40 }
  0xb5   : > { %553 = vst.msk [vmem:[%s1033_s26 + $0x20] sm:$0xff] %vm548_vm3, %v1037_v41 }
  0xb8   : > { %v528_v42 = vpop.f32.mrf.mxu2  ;;  %v538_v43 = vpop.f32.mrf.mxu3 }
  0xb9   : > { %v1045_v44 = vadd.f32 %v890_v37, %v528_v42  ;;  %v1047_v45 = vadd.f32 %v890_v37, %v538_v43  ;;  %v510_v46 = vpop.f32.mrf.mxu0  ;;  %v520_v47 = vpop.f32.mrf.mxu1 }
  0xba   : > { %v1049_v48 = vadd.f32 %v890_v37, %v510_v46  ;;  %v1051_v49 = vadd.f32 %v890_v37, %v520_v47 }
  0xbb   : > { %557 = vst.msk [vmem:[%s1033_s26 + $0x40] sm:$0xff] %vm548_vm3, %v1045_v44 }
  0xbc   : > { %561 = vst.msk [vmem:[%s1033_s26 + $0x60] sm:$0xff] %vm548_vm3, %v1047_v45 }
  0xbd   : > { %550 = vst.msk [vmem:[%s1033_s26 + $0x8] sm:$0xff] %vm548_vm3, %v1049_v48 }
  0xbe   : > { %554 = vst.msk [vmem:[%s1033_s26 + $0x28] sm:$0xff] %vm548_vm3, %v1051_v49 }
  0xc0   : > { %v530_v50 = vpop.f32.mrf.mxu2  ;;  %v540_v51 = vpop.f32.mrf.mxu3 }
  0xc1   : > { %v1065_v52 = vadd.f32 %v890_v37, %v530_v50  ;;  %v1067_v53 = vadd.f32 %v890_v37, %v540_v51  ;;  %v513_v54 = vpop.f32.mrf.mxu0  ;;  %v523_v55 = vpop.f32.mrf.mxu1 }
  0xc2   : > { %v514_v56 = vadd.f32 %v890_v37, %v513_v54  ;;  %v1069_v57 = vadd.f32 %v890_v37, %v523_v55 }
  0xc3   : > { %558 = vst.msk [vmem:[%s1033_s26 + $0x48] sm:$0xff] %vm548_vm3, %v1065_v52 }
  0xc4   : > { %562 = vst.msk [vmem:[%s1033_s26 + $0x68] sm:$0xff] %vm548_vm3, %v1067_v53 }
  0xc5   : > { %551 = vst.msk [vmem:[%s1033_s26 + $0x10] sm:$0xff] %vm548_vm3, %v514_v56 }
  0xc6   : > { %555 = vst.msk [vmem:[%s1033_s26 + $0x30] sm:$0xff] %vm548_vm3, %v1069_v57 }
  0xc8   : > { %v533_v58 = vpop.f32.mrf.mxu2  ;;  %v543_v59 = vpop.f32.mrf.mxu3 }
  0xc9   : > { %v1082_v60 = vadd.f32 %v890_v37, %v533_v58  ;;  %v1084_v61 = vadd.f32 %v890_v37, %v543_v59  ;;  %v515_v62 = vpop.f32.mrf.mxu0  ;;  %v525_v63 = vpop.f32.mrf.mxu1 }
  0xca   : > { %v516_v0 = vadd.f32 %v890_v37, %v515_v62  ;;  %v1086_v1 = vadd.f32 %v890_v37, %v525_v63 }
  0xcb   : > { %559 = vst.msk [vmem:[%s1033_s26 + $0x50] sm:$0xff] %vm548_vm3, %v1082_v60 }
  0xcc   : > { %563 = vst.msk [vmem:[%s1033_s26 + $0x70] sm:$0xff] %vm548_vm3, %v1084_v61 }
  0xcd   : > { %552 = vst.msk [vmem:[%s1033_s26 + $0x18] sm:$0xff] %vm548_vm3, %v516_v0 }
  0xce   : > { %556 = vst.msk [vmem:[%s1033_s26 + $0x38] sm:$0xff] %vm548_vm3, %v1086_v1 }
  0xd0   : > { %v535_v2 = vpop.f32.mrf.mxu2  ;;  %v545_v3 = vpop.f32.mrf.mxu3  ;;  %568 = sbr.rel (%p845_p4) target bundleno = 216 (0xd8), region = 52 }
  0xd1   : > { %v1099_v4 = vadd.f32 %v890_v37, %v535_v2  ;;  %v1101_v5 = vadd.f32 %v890_v37, %v545_v3 }
  0xd3   : > { %560 = vst.msk [vmem:[%s1033_s26 + $0x58] sm:$0xff] %vm548_vm3, %v1099_v4 }
  0xd4   : > { %564 = vst.msk [vmem:[%s1033_s26 + $0x78] sm:$0xff] %vm548_vm3, %v1101_v5 }
  0xd5   : > { %vm569_vm4 = vcmask 516096   ;;  %v901_v6 = vmov 0.0  }
  0xd6   : > { %570 = vst.msk [vmem:[%s1205_s8] sm:$0x1] %vm569_vm4, %v901_v6 }
  0xd7   : > { %571 = vst.msk [vmem:[%s1206_s9] sm:$0x1] %vm569_vm4, %v901_v6 }
  0xd8 PF: > { %v572_v7 = vlaneseq  ;;  %s846_s11 = sshll.u32 %s958_s10, 7 }
  0xd9   : > { %v1117_v11 = vstv %s846_s11 }
  0xda   : > { %v573_v8 = vshrl.u32 %v572_v7, 7 }
  0xdc   : > { %v574_v9 = vadd.s32 8, %v573_v8  ;;  %v575_v10 = vadd.s32 16, %v573_v8  ;;  %v576_v12 = vadd.s32 24, %v573_v8  ;;  %v591_v13 = vadd.s32 %v1117_v11, %v573_v8 }
  0xdd   : > { %v577_v14 = vadd.s32 32, %v573_v8  ;;  %v578_v17 = vadd.s32 40, %v573_v8  ;;  %v579_v19 = vadd.s32 48, %v573_v8  ;;  %v580_v20 = vadd.s32 56, %v573_v8 }
  0xde   : > { %v592_v15 = vadd.s32 %v1117_v11, %v574_v9  ;;  %v593_v16 = vadd.s32 %v1117_v11, %v575_v10  ;;  %v594_v18 = vadd.s32 %v1117_v11, %v576_v12  ;;  %vm607_vm5 = vcmp.lt.s32.totalorder %v591_v13, 256 }
  0xdf   : > { %v595_v21 = vadd.s32 %v1117_v11, %v577_v14  ;;  %v581_v22 = vadd.s32 64, %v573_v8  ;;  %v596_v23 = vadd.s32 %v1117_v11, %v578_v17  ;;  %v623_v24 = vsel %vm607_vm5, %v1035_v40, 0.0 }
  0xe0   : > { %vm608_vm6 = vcmp.lt.s32.totalorder %v592_v15, 256  ;;  %vm609_vm7 = vcmp.lt.s32.totalorder %v593_v16, 256  ;;  %vm610_vm8 = vcmp.lt.s32.totalorder %v594_v18, 256  ;;  %v597_v25 = vadd.s32 %v1117_v11, %v579_v19 }
  0xe1   : > { %v624_v26 = vsel %vm608_vm6, %v1049_v48, 0.0  ;;  %v625_v27 = vsel %vm609_vm7, %v514_v56, 0.0  ;;  %v640_v28 = vsel %vm548_vm3, %v623_v24, 0.0  ;;  %v598_v29 = vadd.s32 %v1117_v11, %v580_v20 }
  0xe2   : > { %vm611_vm9 = vcmp.lt.s32.totalorder %v595_v21, 256  ;;  %v641_v31 = vsel %vm548_vm3, %v624_v26, 0.0  ;;  %v643_v32 = vsel %vm548_vm3, %v625_v27, 0.0  ;;  %v582_v33 = vadd.s32 72, %v573_v8 }
  0xe3   : > { %v583_v34 = vadd.s32 80, %v573_v8  ;;  %v626_v35 = vsel %vm610_vm8, %v516_v0, 0.0  ;;  %v642_v30 = vadd.f32 %v641_v31, %v640_v28  ;;  %v584_v36 = vadd.s32 88, %v573_v8 }
  0xe4   : > { %v585_v37 = vadd.s32 96, %v573_v8  ;;  %vm612_vm10 = vcmp.lt.s32.totalorder %v596_v23, 256  ;;  %v645_v38 = vsel %vm548_vm3, %v626_v35, 0.0  ;;  %v586_v39 = vadd.s32 104, %v573_v8 }
  0xe5   : > { %v599_v40 = vadd.s32 %v1117_v11, %v581_v22  ;;  %v627_v42 = vsel %vm611_vm9, %v1037_v41, 0.0  ;;  %v644_v43 = vadd.f32 %v643_v32, %v642_v30  ;;  %vm613_vm11 = vcmp.lt.s32.totalorder %v597_v25, 256 }
  0xe6   : > { %vm614_vm12 = vcmp.lt.s32.totalorder %v598_v29, 256  ;;  %v647_v46 = vsel %vm548_vm3, %v627_v42, 0.0  ;;  %v681_v47 = vmul.f32 %v623_v24, %v623_v24  ;;  %v628_v48 = vsel %vm612_vm10, %v1051_v49, 0.0 }
  0xe7   : > { %v646_v50 = vadd.f32 %v645_v38, %v644_v43  ;;  %v682_v51 = vmul.f32 %v624_v26, %v624_v26  ;;  %v683_v54 = vmul.f32 %v625_v27, %v625_v27  ;;  %v587_v55 = vadd.s32 112, %v573_v8 }
  0xe8   : > { %v588_v56 = vadd.s32 120, %v573_v8  ;;  %v600_v58 = vadd.s32 %v1117_v11, %v582_v33  ;;  %v649_v59 = vsel %vm548_vm3, %v628_v48, 0.0  ;;  %v601_v62 = vadd.s32 %v1117_v11, %v583_v34 }
  0xe9   : > { %v629_v41 = vsel %vm613_vm11, %v1069_v57, 0.0  ;;  %v648_v63 = vadd.f32 %v647_v46, %v646_v50  ;;  %v684_v0 = vmul.f32 %v626_v35, %v626_v35  ;;  %vm615_vm13 = vcmp.lt.s32.totalorder %v599_v40, 256 }
  0xea   : > { %v630_v2 = vsel %vm614_vm12, %v1086_v1, 0.0  ;;  %v651_v49 = vsel %vm548_vm3, %v629_v41, 0.0  ;;  %v697_v3 = vsel %vm548_vm3, %v681_v47, 0.0  ;;  %v685_v7 = vmul.f32 %v627_v42, %v627_v42 }
  0xeb   : > { %v650_v6 = vadd.f32 %v649_v59, %v648_v63  ;;  %v698_v8 = vsel %vm548_vm3, %v682_v51, 0.0  ;;  %v700_v9 = vsel %vm548_vm3, %v683_v54, 0.0  ;;  %v602_v10 = vadd.s32 %v1117_v11, %v584_v36 }
  0xec   : > { %vm616_vm14 = vcmp.lt.s32.totalorder %v600_v58, 256  ;;  %v653_v57 = vsel %vm548_vm3, %v630_v2, 0.0  ;;  %v699_v12 = vadd.f32 %v698_v8, %v697_v3  ;;  %v631_v13 = vsel %vm615_vm13, %v1045_v44, 0.0 }
  0xed   : > { %v652_v14 = vadd.f32 %v651_v49, %v650_v6  ;;  %v686_v1 = vmul.f32 %v628_v48, %v628_v48  ;;  %v702_v15 = vsel %vm548_vm3, %v684_v0, 0.0  ;;  %v603_v16 = vadd.s32 %v1117_v11, %v585_v37 }
  0xee   : > { %vm617_vm15 = vcmp.lt.s32.totalorder %v601_v62, 256  ;;  %v655_v17 = vsel %vm548_vm3, %v631_v13, 0.0  ;;  %v701_v18 = vadd.f32 %v700_v9, %v699_v12  ;;  %v632_v19 = vsel %vm616_vm14, %v1065_v52, 0.0 }
  0xef   : > { %v654_v20 = vadd.f32 %v653_v57, %v652_v14  ;;  %v687_v21 = vmul.f32 %v629_v41, %v629_v41  ;;  %v704_v22 = vsel %vm548_vm3, %v685_v7, 0.0  ;;  %v604_v23 = vadd.s32 %v1117_v11, %v586_v39 }
  0xf0   : > { %vm618_vm0 = vcmp.lt.s32.totalorder %v602_v10, 256  ;;  %v657_v44 = vsel %vm548_vm3, %v632_v19, 0.0  ;;  %v703_v24 = vadd.f32 %v702_v15, %v701_v18  ;;  %v633_v25 = vsel %vm617_vm15, %v1082_v60, 0.0 }
  0xf1   : > { %v656_v26 = vadd.f32 %v655_v17, %v654_v20  ;;  %v688_v27 = vmul.f32 %v630_v2, %v630_v2  ;;  %v706_v28 = vsel %vm548_vm3, %v686_v1, 0.0  ;;  %v605_v29 = vadd.s32 %v1117_v11, %v587_v55 }
  0xf2   : > { %vm619_vm1 = vcmp.lt.s32.totalorder %v603_v16, 256  ;;  %v659_v52 = vsel %vm548_vm3, %v633_v25, 0.0  ;;  %v705_v31 = vadd.f32 %v704_v22, %v703_v24  ;;  %v634_v32 = vsel %vm618_vm0, %v1099_v4, 0.0 }
  0xf3   : > { %v658_v33 = vadd.f32 %v657_v44, %v656_v26  ;;  %v689_v34 = vmul.f32 %v631_v13, %v631_v13  ;;  %v708_v35 = vsel %vm548_vm3, %v687_v21, 0.0  ;;  %v606_v30 = vadd.s32 %v1117_v11, %v588_v56  ;;  %v639_v21 = vld [vmem:[%s1205_s8] sm:$0x1] }
  0xf4   : > { %vm620_vm2 = vcmp.lt.s32.totalorder %v604_v23, 256  ;;  %v661_v60 = vsel %vm548_vm3, %v634_v32, 0.0  ;;  %v707_v36 = vadd.f32 %v706_v28, %v705_v31  ;;  %v635_v37 = vsel %vm619_vm1, %v1047_v45, 0.0  ;;  %v680_v28 = vld [vmem:[%s1206_s9] sm:$0x1] }
  0xf5   : > { %v660_v38 = vadd.f32 %v659_v52, %v658_v33  ;;  %v690_v39 = vmul.f32 %v632_v19, %v632_v19  ;;  %v710_v40 = vsel %vm548_vm3, %v688_v27, 0.0  ;;  %vm621_vm4 = vcmp.lt.s32.totalorder %v605_v29, 256 }
  0xf6   : > { %v663_v42 = vsel %vm548_vm3, %v635_v37, 0.0  ;;  %v709_v4 = vadd.f32 %v708_v35, %v707_v36  ;;  %v636_v43 = vsel %vm620_vm2, %v1067_v53, 0.0  ;;  %v691_v47 = vmul.f32 %v633_v25, %v633_v25 }
  0xf7   : > { %v662_v46 = vadd.f32 %v661_v60, %v660_v38  ;;  %v712_v11 = vsel %vm548_vm3, %v689_v34, 0.0  ;;  %vm622_vm5 = vcmp.lt.s32.totalorder %v606_v30, 256  ;;  %v665_v48 = vsel %vm548_vm3, %v636_v43, 0.0 }
  0xf8   : > { %v711_v50 = vadd.f32 %v710_v40, %v709_v4  ;;  %v637_v45 = vsel %vm621_vm4, %v1084_v61, 0.0  ;;  %v692_v54 = vmul.f32 %v634_v32, %v634_v32  ;;  %v714_v55 = vsel %vm548_vm3, %v690_v39, 0.0 }
  0xf9   : > { %v664_v51 = vadd.f32 %v663_v42, %v662_v46  ;;  %v667_v56 = vsel %vm548_vm3, %v637_v45, 0.0  ;;  %v638_v59 = vsel %vm622_vm5, %v1101_v5, 0.0  ;;  %v693_v62 = vmul.f32 %v635_v37, %v635_v37 }
  0xfa   : > { %v713_v58 = vadd.f32 %v712_v11, %v711_v50  ;;  %v716_v41 = vsel %vm548_vm3, %v691_v47, 0.0  ;;  %v669_v63 = vsel %vm548_vm3, %v638_v59, 0.0  ;;  %v694_v49 = vmul.f32 %v636_v43, %v636_v43 }
  0xfb   : > { %v666_v53 = vadd.f32 %v665_v48, %v664_v51  ;;  %v718_v61 = vsel %vm548_vm3, %v692_v54, 0.0  ;;  %v695_v7 = vmul.f32 %v637_v45, %v637_v45  ;;  %v720_v8 = vsel %vm548_vm3, %v693_v62, 0.0 }
  0xfc   : > { %v715_v0 = vadd.f32 %v714_v55, %v713_v58  ;;  %v696_v57 = vmul.f32 %v638_v59, %v638_v59  ;;  %v722_v5 = vsel %vm548_vm3, %v694_v49, 0.0  ;;  %vm678_vm6 = vcmask 516096  }
  0xfd   : > { %v668_v2 = vadd.f32 %v667_v56, %v666_v53  ;;  %v724_v14 = vsel %vm548_vm3, %v695_v7, 0.0 }
  0xfe   : > { %v717_v3 = vadd.f32 %v716_v41, %v715_v0  ;;  %v726_v16 = vsel %vm548_vm3, %v696_v57, 0.0 }
  0xff   : > { %v670_v6 = vadd.f32 %v669_v63, %v668_v2 }
 0x100   : > { %v719_v9 = vadd.f32 %v718_v61, %v717_v3 }
 0x101   : > { %v671_v10 = vrot.slane %v670_v6, 4 }
 0x102   : > { %v721_v12 = vadd.f32 %v720_v8, %v719_v9 }
 0x103   : > { %v672_v13 = vadd.f32 %v671_v10, %v670_v6 }
 0x104   : > { %v723_v1 = vadd.f32 %v722_v5, %v721_v12 }
 0x105   : > { %v673_v15 = vrot.slane %v672_v13, 2 }
 0x106   : > { %v725_v17 = vadd.f32 %v724_v14, %v723_v1 }
 0x107   : > { %v674_v18 = vadd.f32 %v673_v15, %v672_v13 }
 0x108   : > { %v727_v19 = vadd.f32 %v726_v16, %v725_v17 }
 0x109   : > { %v675_v20 = vrot.slane %v674_v18, 1 }
 0x10a   : > { %v728_v22 = vrot.slane %v727_v19, 4 }
 0x10b   : > { %v676_v23 = vadd.f32 %v675_v20, %v674_v18 }
 0x10c   : > { %v729_v44 = vadd.f32 %v728_v22, %v727_v19 }
 0x10d   : > { %v677_v24 = vadd.f32 %v676_v23, %v639_v21 }
 0x10e   : > { %v730_v25 = vrot.slane %v729_v44, 2 }
 0x10f   : > { %679 = vst.msk [vmem:[%s1205_s8] sm:$0x1] %vm678_vm6, %v677_v24 }
 0x110   : > { %v731_v26 = vadd.f32 %v730_v25, %v729_v44 }
 0x112   : > { %v732_v27 = vrot.slane %v731_v26, 1 }
 0x114   : > { %v733_v29 = vadd.f32 %v732_v27, %v731_v26 }
 0x116   : > { %v734_v52 = vadd.f32 %v733_v29, %v680_v28 }
 0x118   : > { %735 = vst.msk [vmem:[%s1206_s9] sm:$0x1] %vm678_vm6, %v734_v52 }
 0x119 PF: > { %s20_s30 = sadd.s32 1, %s899_s30  }
 0x11a   : > { %p17_p5 = scmp.ge.s32.totalorder %s20_s30, 4  }
 0x11c   :  { %19 = sbr.rel (!%p17_p5) target bundleno = 1 (0x1), region = 98 }

// kernel: linear_classifier_forward.5
= control target key start
LH: loop header
LB: loop body
LE: loop exit
PB: predicated region body
PF: predicated region fallthrough
CT: control target
= control target key end

     0   :  { %s1350_s18 = smov 0   ;;  %s2465_s0 = inlined_call_operand.vmem [shape: bf16[256,64], index: 0, kind: input, shape index: {}]   ;;  %s2466_s1 = inlined_call_operand.vmem [shape: bf16[64,512], index: 1, kind: input, shape index: {}]   ;;  %s2467_s2 = inlined_call_operand.vmem [shape: f32[1,512], index: 2, kind: input, shape index: {}]   ;;  %s2468_s3 = inlined_call_operand.vmem [shape: f32[256,512], index: 3, kind: output, shape index: {0}]   ;;  %s2469_s4 = inlined_call_operand.vmem [shape: f32[1,512], index: 4, kind: output, shape index: {1}]   ;;  %s2470_s5 = inlined_call_operand.vmem [shape: f32[1,512], index: 5, kind: output, shape index: {2}]  }
   0x1 LB: > { %s1356_s19 = sadd.s32 4294967295, %s1317_s18   ;;  %p1139_p0 = scmp.ge.s32.totalorder %s1317_s18, 1  ;;  %s1317_s18 = sphi %s1350_s18, %s16_s18  }
   0x2   : > { %p183_p1 = scmp.lt.s32.totalorder %s1317_s18, 3 }
   0x4   : > { %p184_p2 = pnand %p1139_p0, %p183_p1 }
   0x6   : > { %187 = sbr.rel (%p184_p2) target bundleno = 402 (0x192), region = 32 }
   0xb   : > { %v1227_v0 = vld [vmem:[%s2466_s1 + $0x60] sm:$0xf]  ;;  %v1300_v1 = vld [vmem:[%s2466_s1 + $0x6c] sm:$0xf0]  ;;  %v1298_v2 = vld [vmem:[%s2466_s1 + $0x64] sm:$0xf] }
   0xc   : > { %v1228_v3 = vor.u32 %v1300_v1, %v1227_v0  ;;  %v1229_v4 = vld [vmem:[%s2466_s1 + $0x70] sm:$0xf0]  ;;  %v1235_v5 = vld [vmem:[%s2466_s1 + $0x68] sm:$0xf]  ;;  %v1301_v6 = vld [vmem:[%s2466_s1 + $0x74] sm:$0xf0] }
   0xd   : > { %v1232_v7 = vor.u32 %v1298_v2, %v1229_v4  ;;  %v1236_v8 = vor.u32 %v1301_v6, %v1235_v5  ;;  %v1299_v9 = vld [vmem:[%s2466_s1 + $0x6c] sm:$0xf]  ;;  %v1237_v10 = vld [vmem:[%s2466_s1 + $0x78] sm:$0xf0]  ;;  %v1211_v11 = vld [vmem:[%s2466_s1 + $0x40] sm:$0xf] }
   0xe   : > { %417 = vmatpush.bf16.msra.mxu0 %v1228_v3  ;;  %v1240_v12 = vor.u32 %v1299_v9, %v1237_v10  ;;  %v1296_v13 = vld [vmem:[%s2466_s1 + $0x4c] sm:$0xf0]  ;;  %v1294_v14 = vld [vmem:[%s2466_s1 + $0x44] sm:$0xf]  ;;  %v1213_v15 = vld [vmem:[%s2466_s1 + $0x50] sm:$0xf0] }
   0xf   : > { %466 = vmatpush.bf16.msra.mxu1 %v1232_v7  ;;  %515 = vmatpush.bf16.msra.mxu2 %v1236_v8  ;;  %v1212_v16 = vor.u32 %v1296_v13, %v1211_v11  ;;  %v1216_v17 = vor.u32 %v1294_v14, %v1213_v15  ;;  %v1219_v18 = vld [vmem:[%s2466_s1 + $0x48] sm:$0xf]  ;;  %v1297_v19 = vld [vmem:[%s2466_s1 + $0x54] sm:$0xf0]  ;;  %v1295_v20 = vld [vmem:[%s2466_s1 + $0x4c] sm:$0xf] }
  0x10   : > { %564 = vmatpush.bf16.msra.mxu3 %v1240_v12  ;;  %v1220_v21 = vor.u32 %v1297_v19, %v1219_v18  ;;  %v1221_v22 = vld [vmem:[%s2466_s1 + $0x58] sm:$0xf0]  ;;  %v1195_v23 = vld [vmem:[%s2466_s1 + $0x20] sm:$0xf]  ;;  %v1292_v24 = vld [vmem:[%s2466_s1 + $0x2c] sm:$0xf0] }
  0x11   : > { %v1224_v25 = vor.u32 %v1295_v20, %v1221_v22  ;;  %v1290_v26 = vld [vmem:[%s2466_s1 + $0x24] sm:$0xf]  ;;  %v1197_v27 = vld [vmem:[%s2466_s1 + $0x30] sm:$0xf0]  ;;  %v1203_v28 = vld [vmem:[%s2466_s1 + $0x28] sm:$0xf]  ;;  %v1196_v29 = vor.u32 %v1292_v24, %v1195_v23 }
  0x12   : > { %418 = vmatpush.bf16.msra.mxu0 %v1212_v16  ;;  %v1293_v30 = vld [vmem:[%s2466_s1 + $0x34] sm:$0xf0]  ;;  %v1291_v31 = vld [vmem:[%s2466_s1 + $0x2c] sm:$0xf]  ;;  %v1205_v32 = vld [vmem:[%s2466_s1 + $0x38] sm:$0xf0]  ;;  %v1200_v33 = vor.u32 %v1290_v26, %v1197_v27 }
  0x13   : > { %467 = vmatpush.bf16.msra.mxu1 %v1216_v17  ;;  %516 = vmatpush.bf16.msra.mxu2 %v1220_v21  ;;  %v1204_v34 = vor.u32 %v1293_v30, %v1203_v28  ;;  %v1179_v35 = vld [vmem:[%s2466_s1] sm:$0xf]  ;;  %v1288_v36 = vld [vmem:[%s2466_s1 + $0xc] sm:$0xf0]  ;;  %v1286_v37 = vld [vmem:[%s2466_s1 + $0x4] sm:$0xf]  ;;  %v1208_v38 = vor.u32 %v1291_v31, %v1205_v32 }
  0x14   : > { %565 = vmatpush.bf16.msra.mxu3 %v1224_v25  ;;  %v1181_v39 = vld [vmem:[%s2466_s1 + $0x10] sm:$0xf0]  ;;  %v1187_v40 = vld [vmem:[%s2466_s1 + $0x8] sm:$0xf]  ;;  %v1289_v41 = vld [vmem:[%s2466_s1 + $0x14] sm:$0xf0]  ;;  %v1180_v44 = vor.u32 %v1288_v36, %v1179_v35 }
  0x15   : > { %v1287_v42 = vld [vmem:[%s2466_s1 + $0xc] sm:$0xf]  ;;  %v1189_v43 = vld [vmem:[%s2466_s1 + $0x18] sm:$0xf0]  ;;  %s1140_s13 = sshll.u32 %s1356_s19, 4  ;;  %v1184_v45 = vor.u32 %v1286_v37, %v1181_v39  ;;  %v1188_v46 = vor.u32 %v1289_v41, %v1187_v40  ;;  %vm388_vm0 = vcmask 523264  }
  0x16   : > { %419 = vmatpush.bf16.msra.mxu0 %v1196_v29  ;;  %p213_p3 = scmp.lt.s32.totalorder %s1140_s13, 31  ;;  %v1192_v47 = vor.u32 %v1287_v42, %v1189_v43  ;;  %v258_v56 = vld [vmem:[%s2467_s2] sm:$0xf]  ;;  %p1273_p4 = scmp.ne.s32.totalorder %s1356_s19, 0 }
  0x17   : > { %468 = vmatpush.bf16.msra.mxu1 %v1200_v33  ;;  %517 = vmatpush.bf16.msra.mxu2 %v1204_v34  ;;  %v1509_v57 = vperm.slane %v258_v56, 0  ;;  %v1511_v58 = vperm.slane %v258_v56, 1  ;;  %v1528_v63 = vperm.slane %v258_v56, 2  ;;  %v1530_v0 = vperm.slane %v258_v56, 3 }
  0x18   : > { %566 = vmatpush.bf16.msra.mxu3 %v1208_v38  ;;  %s2659_s13 = smov (!%p213_p3, %s1140_s13), 31 }
  0x19   : > { %s1141_s14 = sshll.u32 %s2659_s13, 2  ;;  %s1277_s22 = sshll.u32 %s2659_s13, 5 }
  0x1a   : > { %420 = vmatpush.bf16.msra.mxu0 %v1180_v44  ;;  %s1463_s17 = scalar_lea.vmem %s2465_s0, %s1141_s14  ;;  %s1516_s25 = scalar_lea.vmem %s2468_s3, %s1277_s22 }
  0x1b   : > { %469 = vmatpush.bf16.msra.mxu1 %v1184_v45  ;;  %518 = vmatpush.bf16.msra.mxu2 %v1188_v46  ;;  %v1278_v48 = vld [vmem:[%s1463_s17] sm:$0xff]  ;;  %v1279_v49 = vld [vmem:[%s1463_s17 + $0x8] sm:$0xff]  ;;  %v1280_v50 = vld [vmem:[%s1463_s17 + $0x10] sm:$0xff] }
  0x1c   : > { %567 = vmatpush.bf16.msra.mxu3 %v1192_v47  ;;  %v1281_v51 = vld [vmem:[%s1463_s17 + $0x18] sm:$0xff]  ;;  %v1282_v52 = vld [vmem:[%s1463_s17 + $0x20] sm:$0xff]  ;;  %v1283_v53 = vld [vmem:[%s1463_s17 + $0x28] sm:$0xff] }
  0x1d   : > { %1241 = vmatmul.msk.bf16.vlgmr.msra.gmra.mxu0 %vm388_vm0, %v1278_v48  ;;  %v1284_v54 = vld [vmem:[%s1463_s17 + $0x30] sm:$0xff]  ;;  %v1285_v55 = vld [vmem:[%s1463_s17 + $0x38] sm:$0xff] }
  0x1e   : > { %1249 = vmatmul.msk.bf16.vlgmr.msra.gmra.mxu1 %vm388_vm0, %v1278_v48  ;;  %1257 = vmatmul.msk.bf16.vlgmr.msra.gmra.mxu2 %vm388_vm0, %v1278_v48 }
  0x1f   : > { %1265 = vmatmul.msk.bf16.vlgmr.msra.gmra.mxu3 %vm388_vm0, %v1278_v48 }
  0x2d   : > { %1242 = vmatmul.msk.bf16.gmra.mxu0 %vm388_vm0, %v1279_v49 }
  0x2e   : > { %1250 = vmatmul.msk.bf16.gmra.mxu1 %vm388_vm0, %v1279_v49  ;;  %1258 = vmatmul.msk.bf16.gmra.mxu2 %vm388_vm0, %v1279_v49 }
  0x2f   : > { %1266 = vmatmul.msk.bf16.gmra.mxu3 %vm388_vm0, %v1279_v49 }
  0x3d   : > { %1243 = vmatmul.msk.bf16.gmra.mxu0 %vm388_vm0, %v1280_v50 }
  0x3e   : > { %1251 = vmatmul.msk.bf16.gmra.mxu1 %vm388_vm0, %v1280_v50  ;;  %1259 = vmatmul.msk.bf16.gmra.mxu2 %vm388_vm0, %v1280_v50 }
  0x3f   : > { %1267 = vmatmul.msk.bf16.gmra.mxu3 %vm388_vm0, %v1280_v50 }
  0x4d   : > { %1244 = vmatmul.msk.bf16.gmra.mxu0 %vm388_vm0, %v1281_v51 }
  0x4e   : > { %1252 = vmatmul.msk.bf16.gmra.mxu1 %vm388_vm0, %v1281_v51  ;;  %1260 = vmatmul.msk.bf16.gmra.mxu2 %vm388_vm0, %v1281_v51 }
  0x4f   : > { %1268 = vmatmul.msk.bf16.gmra.mxu3 %vm388_vm0, %v1281_v51 }
  0x5d   : > { %1245 = vmatmul.msk.bf16.gmra.mxu0 %vm388_vm0, %v1282_v52 }
  0x5e   : > { %1253 = vmatmul.msk.bf16.gmra.mxu1 %vm388_vm0, %v1282_v52  ;;  %1261 = vmatmul.msk.bf16.gmra.mxu2 %vm388_vm0, %v1282_v52 }
  0x5f   : > { %1269 = vmatmul.msk.bf16.gmra.mxu3 %vm388_vm0, %v1282_v52 }
  0x6d   : > { %1246 = vmatmul.msk.bf16.gmra.mxu0 %vm388_vm0, %v1283_v53 }
  0x6e   : > { %1254 = vmatmul.msk.bf16.gmra.mxu1 %vm388_vm0, %v1283_v53  ;;  %1262 = vmatmul.msk.bf16.gmra.mxu2 %vm388_vm0, %v1283_v53 }
  0x6f   : > { %1270 = vmatmul.msk.bf16.gmra.mxu3 %vm388_vm0, %v1283_v53 }
  0x7d   : > { %1247 = vmatmul.msk.bf16.gmra.mxu0 %vm388_vm0, %v1284_v54 }
  0x7e   : > { %1255 = vmatmul.msk.bf16.gmra.mxu1 %vm388_vm0, %v1284_v54  ;;  %1263 = vmatmul.msk.bf16.gmra.mxu2 %vm388_vm0, %v1284_v54 }
  0x7f   : > { %1271 = vmatmul.msk.bf16.gmra.mxu3 %vm388_vm0, %v1284_v54 }
  0x8d   : > { %1248 = vmatmul.msk.bf16.gmra.mxu0 %vm388_vm0, %v1285_v55 }
  0x8e   : > { %1256 = vmatmul.msk.bf16.gmra.mxu1 %vm388_vm0, %v1285_v55  ;;  %1264 = vmatmul.msk.bf16.gmra.mxu2 %vm388_vm0, %v1285_v55 }
  0x8f   : > { %1272 = vmatmul.msk.bf16.gmra.mxu3 %vm388_vm0, %v1285_v55 }
  0x9a   : > { %v422_v59 = vpop.f32.mrf.mxu0 }
  0x9b   : > { %v471_v60 = vpop.f32.mrf.mxu1  ;;  %v1519_v61 = vadd.f32 %v422_v59, %v1509_v57 }
  0x9c   : > { %v1522_v62 = vadd.f32 %v471_v60, %v1511_v58 }
  0x9d   : > { %609 = vst [vmem:[%s1516_s25] sm:$0xff] %v1519_v61 }
  0x9e   : > { %610 = vst [vmem:[%s1516_s25 + $0x8] sm:$0xff] %v1522_v62 }
  0xa1   : > { %v520_v1 = vpop.f32.mrf.mxu2 }
  0xa2   : > { %v569_v2 = vpop.f32.mrf.mxu3  ;;  %v1533_v3 = vadd.f32 %v520_v1, %v1528_v63  ;;  %v424_v5 = vpop.f32.mrf.mxu0 }
  0xa3   : > { %v1536_v4 = vadd.f32 %v569_v2, %v1530_v0  ;;  %v473_v6 = vpop.f32.mrf.mxu1  ;;  %v1539_v7 = vadd.f32 %v424_v5, %v1509_v57 }
  0xa4   : > { %v1542_v8 = vadd.f32 %v473_v6, %v1511_v58  ;;  %611 = vst [vmem:[%s1516_s25 + $0x10] sm:$0xff] %v1533_v3 }
  0xa5   : > { %612 = vst [vmem:[%s1516_s25 + $0x18] sm:$0xff] %v1536_v4 }
  0xa6   : > { %613 = vst [vmem:[%s1516_s25 + $0x20] sm:$0xff] %v1539_v7 }
  0xa7   : > { %614 = vst [vmem:[%s1516_s25 + $0x28] sm:$0xff] %v1542_v8 }
  0xa9   : > { %v522_v9 = vpop.f32.mrf.mxu2 }
  0xaa   : > { %v571_v10 = vpop.f32.mrf.mxu3  ;;  %v1553_v11 = vadd.f32 %v522_v9, %v1528_v63  ;;  %v427_v13 = vpop.f32.mrf.mxu0 }
  0xab   : > { %v1556_v12 = vadd.f32 %v571_v10, %v1530_v0  ;;  %v476_v14 = vpop.f32.mrf.mxu1  ;;  %v1559_v15 = vadd.f32 %v427_v13, %v1509_v57 }
  0xac   : > { %v1562_v16 = vadd.f32 %v476_v14, %v1511_v58  ;;  %615 = vst [vmem:[%s1516_s25 + $0x30] sm:$0xff] %v1553_v11 }
  0xad   : > { %616 = vst [vmem:[%s1516_s25 + $0x38] sm:$0xff] %v1556_v12 }
  0xae   : > { %617 = vst [vmem:[%s1516_s25 + $0x40] sm:$0xff] %v1559_v15 }
  0xaf   : > { %618 = vst [vmem:[%s1516_s25 + $0x48] sm:$0xff] %v1562_v16 }
  0xb1   : > { %v525_v17 = vpop.f32.mrf.mxu2 }
  0xb2   : > { %v574_v18 = vpop.f32.mrf.mxu3  ;;  %v1573_v19 = vadd.f32 %v525_v17, %v1528_v63  ;;  %v429_v21 = vpop.f32.mrf.mxu0 }
  0xb3   : > { %v1576_v20 = vadd.f32 %v574_v18, %v1530_v0  ;;  %v478_v22 = vpop.f32.mrf.mxu1  ;;  %v1579_v23 = vadd.f32 %v429_v21, %v1509_v57 }
  0xb4   : > { %v1582_v24 = vadd.f32 %v478_v22, %v1511_v58  ;;  %619 = vst [vmem:[%s1516_s25 + $0x50] sm:$0xff] %v1573_v19 }
  0xb5   : > { %620 = vst [vmem:[%s1516_s25 + $0x58] sm:$0xff] %v1576_v20 }
  0xb6   : > { %621 = vst [vmem:[%s1516_s25 + $0x60] sm:$0xff] %v1579_v23 }
  0xb7   : > { %622 = vst [vmem:[%s1516_s25 + $0x68] sm:$0xff] %v1582_v24 }
  0xb9   : > { %v527_v25 = vpop.f32.mrf.mxu2 }
  0xba   : > { %v576_v26 = vpop.f32.mrf.mxu3  ;;  %v1593_v27 = vadd.f32 %v527_v25, %v1528_v63  ;;  %v432_v29 = vpop.f32.mrf.mxu0 }
  0xbb   : > { %v1596_v28 = vadd.f32 %v576_v26, %v1530_v0  ;;  %v481_v30 = vpop.f32.mrf.mxu1  ;;  %v1599_v31 = vadd.f32 %v432_v29, %v1509_v57 }
  0xbc   : > { %v1602_v32 = vadd.f32 %v481_v30, %v1511_v58  ;;  %623 = vst [vmem:[%s1516_s25 + $0x70] sm:$0xff] %v1593_v27 }
  0xbd   : > { %624 = vst [vmem:[%s1516_s25 + $0x78] sm:$0xff] %v1596_v28 }
  0xbe   : > { %625 = vst [vmem:[%s1516_s25 + $0x80] sm:$0xff] %v1599_v31 }
  0xbf   : > { %626 = vst [vmem:[%s1516_s25 + $0x88] sm:$0xff] %v1602_v32 }
  0xc1   : > { %v530_v33 = vpop.f32.mrf.mxu2 }
  0xc2   : > { %v579_v34 = vpop.f32.mrf.mxu3  ;;  %v1613_v35 = vadd.f32 %v530_v33, %v1528_v63  ;;  %v434_v37 = vpop.f32.mrf.mxu0 }
  0xc3   : > { %v1616_v36 = vadd.f32 %v579_v34, %v1530_v0  ;;  %v483_v38 = vpop.f32.mrf.mxu1  ;;  %v1619_v39 = vadd.f32 %v434_v37, %v1509_v57 }
  0xc4   : > { %v1622_v40 = vadd.f32 %v483_v38, %v1511_v58  ;;  %627 = vst [vmem:[%s1516_s25 + $0x90] sm:$0xff] %v1613_v35 }
  0xc5   : > { %628 = vst [vmem:[%s1516_s25 + $0x98] sm:$0xff] %v1616_v36 }
  0xc6   : > { %629 = vst [vmem:[%s1516_s25 + $0xa0] sm:$0xff] %v1619_v39 }
  0xc7   : > { %630 = vst [vmem:[%s1516_s25 + $0xa8] sm:$0xff] %v1622_v40 }
  0xc9   : > { %v532_v41 = vpop.f32.mrf.mxu2 }
  0xca   : > { %v581_v42 = vpop.f32.mrf.mxu3  ;;  %v1633_v43 = vadd.f32 %v532_v41, %v1528_v63  ;;  %v437_v45 = vpop.f32.mrf.mxu0 }
  0xcb   : > { %v1636_v44 = vadd.f32 %v581_v42, %v1530_v0  ;;  %v486_v46 = vpop.f32.mrf.mxu1  ;;  %v1639_v47 = vadd.f32 %v437_v45, %v1509_v57 }
  0xcc   : > { %v1642_v48 = vadd.f32 %v486_v46, %v1511_v58  ;;  %631 = vst [vmem:[%s1516_s25 + $0xb0] sm:$0xff] %v1633_v43 }
  0xcd   : > { %632 = vst [vmem:[%s1516_s25 + $0xb8] sm:$0xff] %v1636_v44 }
  0xce   : > { %633 = vst [vmem:[%s1516_s25 + $0xc0] sm:$0xff] %v1639_v47 }
  0xcf   : > { %634 = vst [vmem:[%s1516_s25 + $0xc8] sm:$0xff] %v1642_v48 }
  0xd1   : > { %v535_v49 = vpop.f32.mrf.mxu2 }
  0xd2   : > { %v584_v50 = vpop.f32.mrf.mxu3  ;;  %v1653_v51 = vadd.f32 %v535_v49, %v1528_v63  ;;  %v439_v53 = vpop.f32.mrf.mxu0 }
  0xd3   : > { %v1656_v52 = vadd.f32 %v584_v50, %v1530_v0  ;;  %v488_v54 = vpop.f32.mrf.mxu1  ;;  %v1659_v55 = vadd.f32 %v439_v53, %v1509_v57 }
  0xd4   : > { %v1662_v56 = vadd.f32 %v488_v54, %v1511_v58  ;;  %635 = vst [vmem:[%s1516_s25 + $0xd0] sm:$0xff] %v1653_v51 }
  0xd5   : > { %636 = vst [vmem:[%s1516_s25 + $0xd8] sm:$0xff] %v1656_v52 }
  0xd6   : > { %637 = vst [vmem:[%s1516_s25 + $0xe0] sm:$0xff] %v1659_v55 }
  0xd7   : > { %638 = vst [vmem:[%s1516_s25 + $0xe8] sm:$0xff] %v1662_v56 }
  0xd9   : > { %v537_v59 = vpop.f32.mrf.mxu2 }
  0xda   : > { %v586_v60 = vpop.f32.mrf.mxu3  ;;  %v1673_v1 = vadd.f32 %v537_v59, %v1528_v63  ;;  %v442_v5 = vpop.f32.mrf.mxu0 }
  0xdb   : > { %v1676_v2 = vadd.f32 %v586_v60, %v1530_v0  ;;  %v491_v6 = vpop.f32.mrf.mxu1  ;;  %v1679_v9 = vadd.f32 %v442_v5, %v1509_v57 }
  0xdc   : > { %v1682_v10 = vadd.f32 %v491_v6, %v1511_v58  ;;  %639 = vst [vmem:[%s1516_s25 + $0xf0] sm:$0xff] %v1673_v1 }
  0xdd   : > { %640 = vst [vmem:[%s1516_s25 + $0xf8] sm:$0xff] %v1676_v2 }
  0xde   : > { %2533 = vst [vmem:[#allocation2_spill] sm:$0xff] %v1682_v10 }
  0xdf   : > { %641 = vst [vmem:[%s1516_s25 + $0x100] sm:$0xff] %v1679_v9 }
  0xe0   : > { %642 = vst [vmem:[%s1516_s25 + $0x108] sm:$0xff] %v1682_v10 }
  0xe1   : > { %v540_v13 = vpop.f32.mrf.mxu2 }
  0xe2   : > { %v589_v14 = vpop.f32.mrf.mxu3  ;;  %v1693_v17 = vadd.f32 %v540_v13, %v1528_v63  ;;  %v444_v21 = vpop.f32.mrf.mxu0 }
  0xe3   : > { %v1696_v18 = vadd.f32 %v589_v14, %v1530_v0  ;;  %v493_v22 = vpop.f32.mrf.mxu1  ;;  %v1699_v25 = vadd.f32 %v444_v21, %v1509_v57 }
  0xe4   : > { %2534 = vst [vmem:[#allocation3_spill] sm:$0xff] %v1693_v17  ;;  %v1702_v26 = vadd.f32 %v493_v22, %v1511_v58 }
  0xe5   : > { %2535 = vst [vmem:[#allocation4_spill] sm:$0xff] %v1696_v18 }
  0xe6   : > { %2536 = vst [vmem:[#allocation5_spill] sm:$0xff] %v1699_v25 }
  0xe7   : > { %2537 = vst [vmem:[#allocation6_spill] sm:$0xff] %v1702_v26 }
  0xe8   : > { %643 = vst [vmem:[%s1516_s25 + $0x110] sm:$0xff] %v1693_v17 }
  0xe9   : > { %644 = vst [vmem:[%s1516_s25 + $0x118] sm:$0xff] %v1696_v18  ;;  %v542_v29 = vpop.f32.mrf.mxu2 }
  0xea   : > { %645 = vst [vmem:[%s1516_s25 + $0x120] sm:$0xff] %v1699_v25  ;;  %v591_v30 = vpop.f32.mrf.mxu3  ;;  %v1713_v33 = vadd.f32 %v542_v29, %v1528_v63  ;;  %v447_v37 = vpop.f32.mrf.mxu0 }
  0xeb   : > { %646 = vst [vmem:[%s1516_s25 + $0x128] sm:$0xff] %v1702_v26  ;;  %v1716_v34 = vadd.f32 %v591_v30, %v1530_v0  ;;  %v496_v38 = vpop.f32.mrf.mxu1  ;;  %v1719_v41 = vadd.f32 %v447_v37, %v1509_v57 }
  0xec   : > { %2538 = vst [vmem:[#allocation7_spill] sm:$0xff] %v1713_v33  ;;  %v1722_v42 = vadd.f32 %v496_v38, %v1511_v58 }
  0xed   : > { %2539 = vst [vmem:[#allocation8_spill] sm:$0xff] %v1716_v34 }
  0xee   : > { %2540 = vst [vmem:[#allocation9_spill] sm:$0xff] %v1719_v41 }
  0xef   : > { %2541 = vst [vmem:[#allocation10_spill] sm:$0xff] %v1722_v42 }
  0xf0   : > { %647 = vst [vmem:[%s1516_s25 + $0x130] sm:$0xff] %v1713_v33 }
  0xf1   : > { %648 = vst [vmem:[%s1516_s25 + $0x138] sm:$0xff] %v1716_v34  ;;  %v545_v45 = vpop.f32.mrf.mxu2 }
  0xf2   : > { %649 = vst [vmem:[%s1516_s25 + $0x140] sm:$0xff] %v1719_v41  ;;  %v594_v46 = vpop.f32.mrf.mxu3  ;;  %v1733_v49 = vadd.f32 %v545_v45, %v1528_v63  ;;  %v449_v53 = vpop.f32.mrf.mxu0 }
  0xf3   : > { %650 = vst [vmem:[%s1516_s25 + $0x148] sm:$0xff] %v1722_v42  ;;  %v1736_v50 = vadd.f32 %v594_v46, %v1530_v0  ;;  %v498_v54 = vpop.f32.mrf.mxu1  ;;  %v1739_v59 = vadd.f32 %v449_v53, %v1509_v57 }
  0xf4   : > { %2542 = vst [vmem:[#allocation11_spill] sm:$0xff] %v1733_v49  ;;  %v1742_v60 = vadd.f32 %v498_v54, %v1511_v58 }
  0xf5   : > { %2543 = vst [vmem:[#allocation12_spill] sm:$0xff] %v1736_v50 }
  0xf6   : > { %2544 = vst [vmem:[#allocation13_spill] sm:$0xff] %v1739_v59 }
  0xf7   : > { %2545 = vst [vmem:[#allocation14_spill] sm:$0xff] %v1742_v60 }
  0xf8   : > { %651 = vst [vmem:[%s1516_s25 + $0x150] sm:$0xff] %v1733_v49 }
  0xf9   : > { %652 = vst [vmem:[%s1516_s25 + $0x158] sm:$0xff] %v1736_v50  ;;  %v547_v5 = vpop.f32.mrf.mxu2 }
  0xfa   : > { %653 = vst [vmem:[%s1516_s25 + $0x160] sm:$0xff] %v1739_v59  ;;  %v596_v6 = vpop.f32.mrf.mxu3  ;;  %v1753_v13 = vadd.f32 %v547_v5, %v1528_v63  ;;  %v452_v21 = vpop.f32.mrf.mxu0 }
  0xfb   : > { %654 = vst [vmem:[%s1516_s25 + $0x168] sm:$0xff] %v1742_v60  ;;  %v1756_v14 = vadd.f32 %v596_v6, %v1530_v0  ;;  %v501_v22 = vpop.f32.mrf.mxu1  ;;  %v1759_v29 = vadd.f32 %v452_v21, %v1509_v57 }
  0xfc   : > { %2546 = vst [vmem:[#allocation15_spill] sm:$0xff] %v1753_v13  ;;  %v1762_v30 = vadd.f32 %v501_v22, %v1511_v58 }
  0xfd   : > { %2547 = vst [vmem:[#allocation16_spill] sm:$0xff] %v1756_v14 }
  0xfe   : > { %2548 = vst [vmem:[#allocation17_spill] sm:$0xff] %v1759_v29 }
  0xff   : > { %2549 = vst [vmem:[#allocation18_spill] sm:$0xff] %v1762_v30 }
 0x100   : > { %655 = vst [vmem:[%s1516_s25 + $0x170] sm:$0xff] %v1753_v13 }
 0x101   : > { %656 = vst [vmem:[%s1516_s25 + $0x178] sm:$0xff] %v1756_v14  ;;  %v550_v37 = vpop.f32.mrf.mxu2 }
 0x102   : > { %657 = vst [vmem:[%s1516_s25 + $0x180] sm:$0xff] %v1759_v29  ;;  %v599_v38 = vpop.f32.mrf.mxu3  ;;  %v1773_v45 = vadd.f32 %v550_v37, %v1528_v63  ;;  %v454_v53 = vpop.f32.mrf.mxu0 }
 0x103   : > { %658 = vst [vmem:[%s1516_s25 + $0x188] sm:$0xff] %v1762_v30  ;;  %v1776_v46 = vadd.f32 %v599_v38, %v1530_v0  ;;  %v503_v54 = vpop.f32.mrf.mxu1  ;;  %v1779_v5 = vadd.f32 %v454_v53, %v1509_v57 }
 0x104   : > { %2550 = vst [vmem:[#allocation19_spill] sm:$0xff] %v1773_v45  ;;  %v1782_v6 = vadd.f32 %v503_v54, %v1511_v58 }
 0x105   : > { %2551 = vst [vmem:[#allocation20_spill] sm:$0xff] %v1776_v46 }
 0x106   : > { %2552 = vst [vmem:[#allocation21_spill] sm:$0xff] %v1779_v5 }
 0x107   : > { %2553 = vst [vmem:[#allocation22_spill] sm:$0xff] %v1782_v6 }
 0x108   : > { %659 = vst [vmem:[%s1516_s25 + $0x190] sm:$0xff] %v1773_v45 }
 0x109   : > { %660 = vst [vmem:[%s1516_s25 + $0x198] sm:$0xff] %v1776_v46  ;;  %v552_v21 = vpop.f32.mrf.mxu2 }
 0x10a   : > { %661 = vst [vmem:[%s1516_s25 + $0x1a0] sm:$0xff] %v1779_v5  ;;  %v601_v22 = vpop.f32.mrf.mxu3  ;;  %v1793_v37 = vadd.f32 %v552_v21, %v1528_v63  ;;  %v457_v53 = vpop.f32.mrf.mxu0 }
 0x10b   : > { %662 = vst [vmem:[%s1516_s25 + $0x1a8] sm:$0xff] %v1782_v6  ;;  %v1796_v38 = vadd.f32 %v601_v22, %v1530_v0  ;;  %v506_v54 = vpop.f32.mrf.mxu1  ;;  %v1799_v45 = vadd.f32 %v457_v53, %v1509_v57 }
 0x10c   : > { %2554 = vst [vmem:[#allocation23_spill] sm:$0xff] %v1793_v37  ;;  %v1802_v5 = vadd.f32 %v506_v54, %v1511_v58 }
 0x10d   : > { %2555 = vst [vmem:[#allocation24_spill] sm:$0xff] %v1796_v38 }
 0x10e   : > { %2556 = vst [vmem:[#allocation25_spill] sm:$0xff] %v1799_v45 }
 0x10f   : > { %2557 = vst [vmem:[#allocation26_spill] sm:$0xff] %v1802_v5 }
 0x110   : > { %663 = vst [vmem:[%s1516_s25 + $0x1b0] sm:$0xff] %v1793_v37 }
 0x111   : > { %664 = vst [vmem:[%s1516_s25 + $0x1b8] sm:$0xff] %v1796_v38  ;;  %v555_v21 = vpop.f32.mrf.mxu2 }
 0x112   : > { %665 = vst [vmem:[%s1516_s25 + $0x1c0] sm:$0xff] %v1799_v45  ;;  %v604_v22 = vpop.f32.mrf.mxu3  ;;  %v1813_v53 = vadd.f32 %v555_v21, %v1528_v63  ;;  %v459_v54 = vpop.f32.mrf.mxu0 }
 0x113   : > { %666 = vst [vmem:[%s1516_s25 + $0x1c8] sm:$0xff] %v1802_v5  ;;  %v1816_v6 = vadd.f32 %v604_v22, %v1530_v0  ;;  %v508_v46 = vpop.f32.mrf.mxu1  ;;  %v1819_v37 = vadd.f32 %v459_v54, %v1509_v57 }
 0x114   : > { %2558 = vst [vmem:[#allocation27_spill] sm:$0xff] %v1813_v53  ;;  %v1822_v38 = vadd.f32 %v508_v46, %v1511_v58 }
 0x115   : > { %2559 = vst [vmem:[#allocation28_spill] sm:$0xff] %v1816_v6 }
 0x116   : > { %2560 = vst [vmem:[#allocation29_spill] sm:$0xff] %v1819_v37 }
 0x117   : > { %2561 = vst [vmem:[#allocation30_spill] sm:$0xff] %v1822_v38 }
 0x118   : > { %667 = vst [vmem:[%s1516_s25 + $0x1d0] sm:$0xff] %v1813_v53 }
 0x119   : > { %668 = vst [vmem:[%s1516_s25 + $0x1d8] sm:$0xff] %v1816_v6  ;;  %v557_v21 = vpop.f32.mrf.mxu2 }
 0x11a   : > { %669 = vst [vmem:[%s1516_s25 + $0x1e0] sm:$0xff] %v1819_v37  ;;  %v606_v5 = vpop.f32.mrf.mxu3  ;;  %v1833_v22 = vadd.f32 %v557_v21, %v1528_v63 }
 0x11b   : > { %670 = vst [vmem:[%s1516_s25 + $0x1e8] sm:$0xff] %v1822_v38  ;;  %v1836_v45 = vadd.f32 %v606_v5, %v1530_v0  ;;  %676 = sbr.rel (%p1273_p4) target bundleno = 293 (0x125), region = 36 }
 0x11c   : > { %2562 = vst [vmem:[#allocation31_spill] sm:$0xff] %v1833_v22 }
 0x11d   : > { %2563 = vst [vmem:[#allocation32_spill] sm:$0xff] %v1836_v45 }
 0x11e   : > { %671 = vst [vmem:[%s1516_s25 + $0x1f0] sm:$0xff] %v1833_v22 }
 0x11f   : > { %672 = vst [vmem:[%s1516_s25 + $0x1f8] sm:$0xff] %v1836_v45 }
 0x120   : > { %v677_v57 = vlaneseq  ;;  %v1319_v58 = vmov 0.0  }
 0x122   : > { %vm679_vm1 = vcmp.lt.s32.totalorder %v677_v57, 512 }
 0x123   : > { %681 = vst.msk [vmem:[%s2469_s4] sm:$0xf] %vm679_vm1, %v1319_v58 }
 0x124   : > { %682 = vst.msk [vmem:[%s2470_s5] sm:$0xf] %vm679_vm1, %v1319_v58 }
 0x125 PF: > { %v2491_v63 = vlaneseq  ;;  %s1274_s30 = sshll.u32 %s1356_s19, 7 }
 0x126   : > { %v701_v46 = vstv %s1274_s30 }
 0x127   : > { %v684_v0 = vshrl.u32 %v2491_v63, 7 }
 0x129   : > { %v685_v5 = vadd.s32 8, %v684_v0  ;;  %v686_v54 = vadd.s32 16, %v684_v0  ;;  %v687_v21 = vadd.s32 24, %v684_v0  ;;  %v688_v57 = vadd.s32 32, %v684_v0 }
 0x12a   : > { %v689_v45 = vadd.s32 40, %v684_v0  ;;  %v690_v22 = vadd.s32 48, %v684_v0  ;;  %v691_v38 = vadd.s32 56, %v684_v0  ;;  %v692_v37 = vadd.s32 64, %v684_v0 }
 0x12b   : > { %v693_v6 = vadd.s32 72, %v684_v0  ;;  %v694_v53 = vadd.s32 80, %v684_v0  ;;  %v695_v30 = vadd.s32 88, %v684_v0  ;;  %v696_v29 = vadd.s32 96, %v684_v0 }
 0x12c   : > { %v697_v58 = vadd.s32 104, %v684_v0  ;;  %v698_v14 = vadd.s32 112, %v684_v0  ;;  %v699_v13 = vadd.s32 120, %v684_v0  ;;  %v702_v60 = vadd.s32 %v701_v46, %v684_v0 }
 0x12d   : > { %v703_v59 = vadd.s32 %v701_v46, %v685_v5  ;;  %v704_v63 = vadd.s32 %v701_v46, %v686_v54  ;;  %v705_v50 = vadd.s32 %v701_v46, %v687_v21  ;;  %v706_v49 = vadd.s32 %v701_v46, %v688_v57  ;;  %v2581_v54 = vld [vmem:[#allocation7_spill] sm:$0xff] }
 0x12e   : > { %v707_v42 = vadd.s32 %v701_v46, %v689_v45  ;;  %v708_v41 = vadd.s32 %v701_v46, %v690_v22  ;;  %v709_v34 = vadd.s32 %v701_v46, %v691_v38  ;;  %v1851_v33 = vadd.s32 %v701_v46, %v692_v37  ;;  %v2579_v38 = vld [vmem:[#allocation5_spill] sm:$0xff]  ;;  %v2580_v22 = vld [vmem:[#allocation6_spill] sm:$0xff] }
 0x12f   : > { %v1853_v26 = vadd.s32 %v701_v46, %v693_v6  ;;  %v1855_v25 = vadd.s32 %v701_v46, %v694_v53  ;;  %v1857_v18 = vadd.s32 %v701_v46, %v695_v30  ;;  %v1859_v17 = vadd.s32 %v701_v46, %v696_v29  ;;  %v2577_v6 = vld [vmem:[#allocation4_spill] sm:$0xff] }
 0x130   : > { %v1861_v10 = vadd.s32 %v701_v46, %v697_v58  ;;  %v1863_v0 = vadd.s32 %v701_v46, %v698_v14  ;;  %v1865_v5 = vadd.s32 %v701_v46, %v699_v13  ;;  %vm718_vm2 = vcmp.lt.s32.totalorder %v702_v60, 256 }
 0x131   : > { %vm719_vm3 = vcmp.lt.s32.totalorder %v703_v59, 256  ;;  %vm720_vm4 = vcmp.lt.s32.totalorder %v704_v63, 256  ;;  %vm721_vm5 = vcmp.lt.s32.totalorder %v705_v50, 256  ;;  %vm722_vm6 = vcmp.lt.s32.totalorder %v706_v49, 256  ;;  %v2575_v50 = vld [vmem:[#allocation3_spill] sm:$0xff] }
 0x132   : > { %vm723_vm7 = vcmp.lt.s32.totalorder %v707_v42, 256  ;;  %vm724_vm8 = vcmp.lt.s32.totalorder %v708_v41, 256  ;;  %vm725_vm9 = vcmp.lt.s32.totalorder %v709_v34, 256  ;;  %vm726_vm10 = vcmp.lt.s32.totalorder %v1851_v33, 256 }
 0x133   : > { %vm727_vm11 = vcmp.lt.s32.totalorder %v1853_v26, 256  ;;  %v1870_v29 = vsel %vm718_vm2, %v1519_v61, 0.0  ;;  %v1873_v14 = vsel %vm718_vm2, %v1522_v62, 0.0  ;;  %v1876_v13 = vsel %vm718_vm2, %v1533_v3, 0.0 }
 0x134   : > { %v1879_v60 = vsel %vm718_vm2, %v1536_v4, 0.0  ;;  %v1883_v30 = vsel %vm719_vm3, %v1539_v7, 0.0  ;;  %v1887_v45 = vsel %vm719_vm3, %v1542_v8, 0.0  ;;  %v1891_v61 = vsel %vm719_vm3, %v1553_v11, 0.0 }
 0x135   : > { %vm728_vm12 = vcmp.lt.s32.totalorder %v1855_v25, 256  ;;  %v1896_v62 = vsel %vm719_vm3, %v1556_v12, 0.0  ;;  %v1900_v3 = vsel %vm720_vm4, %v1559_v15, 0.0  ;;  %v1904_v4 = vsel %vm720_vm4, %v1562_v16, 0.0 }
 0x136   : > { %v1908_v7 = vsel %vm720_vm4, %v1573_v19, 0.0  ;;  %v1912_v8 = vsel %vm720_vm4, %v1576_v20, 0.0  ;;  %v1916_v11 = vsel %vm721_vm5, %v1579_v23, 0.0  ;;  %v1920_v12 = vsel %vm721_vm5, %v1582_v24, 0.0 }
 0x137   : > { %v1924_v15 = vsel %vm721_vm5, %v1593_v27, 0.0  ;;  %vm729_vm13 = vcmp.lt.s32.totalorder %v1857_v18, 256  ;;  %v1929_v16 = vsel %vm721_vm5, %v1596_v28, 0.0  ;;  %v1933_v19 = vsel %vm722_vm6, %v1599_v31, 0.0 }
 0x138   : > { %v1937_v20 = vsel %vm722_vm6, %v1602_v32, 0.0  ;;  %v1941_v23 = vsel %vm722_vm6, %v1613_v35, 0.0  ;;  %v1945_v24 = vsel %vm722_vm6, %v1616_v36, 0.0  ;;  %v1949_v27 = vsel %vm723_vm7, %v1619_v39, 0.0 }
 0x139   : > { %2564 = vst [vmem:[#allocation33_spill] sm:$0xff] %v1949_v27  ;;  %v1953_v28 = vsel %vm723_vm7, %v1622_v40, 0.0  ;;  %v1957_v31 = vsel %vm723_vm7, %v1633_v43, 0.0  ;;  %vm730_vm14 = vcmp.lt.s32.totalorder %v1859_v17, 256  ;;  %v1962_v32 = vsel %vm723_vm7, %v1636_v44, 0.0 }
 0x13a   : > { %2565 = vst [vmem:[#allocation34_spill] sm:$0xff] %v1957_v31  ;;  %v1966_v35 = vsel %vm724_vm8, %v1639_v47, 0.0  ;;  %v1970_v36 = vsel %vm724_vm8, %v1642_v48, 0.0  ;;  %v1974_v39 = vsel %vm724_vm8, %v1653_v51, 0.0  ;;  %v1978_v40 = vsel %vm724_vm8, %v1656_v52, 0.0 }
 0x13b   : > { %2566 = vst [vmem:[#allocation35_spill] sm:$0xff] %v1962_v32  ;;  %v1982_v43 = vsel %vm725_vm9, %v1659_v55, 0.0  ;;  %v1986_v44 = vsel %vm725_vm9, %v1662_v56, 0.0  ;;  %v799_v47 = vadd.f32 %v1883_v30, %v1870_v29  ;;  %vm731_vm15 = vcmp.lt.s32.totalorder %v1861_v10, 256 }
 0x13c   : > { %2567 = vst [vmem:[#allocation36_spill] sm:$0xff] %v1966_v35  ;;  %v1993_v48 = vsel %vm725_vm9, %v1673_v1, 0.0  ;;  %v820_v51 = vadd.f32 %v1887_v45, %v1873_v14  ;;  %v841_v52 = vadd.f32 %v1891_v61, %v1876_v13  ;;  %v862_v55 = vadd.f32 %v1896_v62, %v1879_v60  ;;  %v2574_v1 = vld [vmem:[#allocation2_spill] sm:$0xff] }
 0x13d   : > { %2568 = vst [vmem:[#allocation37_spill] sm:$0xff] %v1974_v39  ;;  %v2003_v56 = vsel %vm725_vm9, %v1676_v2, 0.0  ;;  %v2008_v41 = vsel %vm726_vm10, %v1679_v9, 0.0  ;;  %v2013_v42 = vsel %vm726_vm10, %v2574_v1, 0.0  ;;  %v800_v49 = vadd.f32 %v799_v47, %v1900_v3  ;;  %v2582_v47 = vld [vmem:[#allocation8_spill] sm:$0xff]  ;;  %v2584_v1 = vld [vmem:[#allocation10_spill] sm:$0xff] }
 0x13e   : > { %2569 = vst [vmem:[#allocation38_spill] sm:$0xff] %v1978_v40  ;;  %vm732_vm0 = vcmp.lt.s32.totalorder %v1863_v0, 256  ;;  %v2020_v34 = vsel %vm726_vm10, %v2575_v50, 0.0  ;;  %v821_v2 = vadd.f32 %v820_v51, %v1904_v4  ;;  %v842_v59 = vadd.f32 %v841_v52, %v1908_v7  ;;  %v2583_v52 = vld [vmem:[#allocation9_spill] sm:$0xff] }
 0x13f   : > { %2570 = vst [vmem:[#allocation39_spill] sm:$0xff] %v1982_v43  ;;  %v863_v9 = vadd.f32 %v862_v55, %v1912_v8  ;;  %v2028_v37 = vsel %vm726_vm10, %v2577_v6, 0.0  ;;  %v2033_v53 = vsel %vm727_vm11, %v2579_v38, 0.0  ;;  %v2038_v63 = vsel %vm727_vm11, %v2580_v22, 0.0  ;;  %v2586_v38 = vld [vmem:[#allocation12_spill] sm:$0xff] }
 0x140   : > { %2571 = vst [vmem:[#allocation40_spill] sm:$0xff] %v1993_v48  ;;  %v801_v46 = vadd.f32 %v800_v49, %v1916_v11  ;;  %vm733_vm1 = vcmp.lt.s32.totalorder %v1865_v5, 256  ;;  %v2045_v33 = vsel %vm727_vm11, %v2581_v54, 0.0  ;;  %v822_v21 = vadd.f32 %v821_v2, %v1920_v12  ;;  %v2585_v2 = vld [vmem:[#allocation11_spill] sm:$0xff]  ;;  %v2587_v54 = vld [vmem:[#allocation13_spill] sm:$0xff] }
 0x141   : > { %2572 = vst [vmem:[#allocation41_spill] sm:$0xff] %v2003_v56  ;;  %v843_v57 = vadd.f32 %v842_v59, %v1924_v15  ;;  %v864_v58 = vadd.f32 %v863_v9, %v1929_v16  ;;  %v2053_v51 = vsel %vm727_vm11, %v2582_v47, 0.0  ;;  %v2058_v55 = vsel %vm728_vm12, %v2583_v52, 0.0  ;;  %v2588_v47 = vld [vmem:[#allocation14_spill] sm:$0xff] }
 0x142   : > { %2573 = vst [vmem:[#allocation42_spill] sm:$0xff] %v2008_v41  ;;  %v2063_v49 = vsel %vm728_vm12, %v2584_v1, 0.0  ;;  %v802_v50 = vadd.f32 %v801_v46, %v1933_v19  ;;  %v2069_v59 = vsel %vm728_vm12, %v2585_v2, 0.0  ;;  %v823_v26 = vadd.f32 %v822_v21, %v1937_v20 }
 0x143   : > { %2576 = vst [vmem:[#allocation2_spill] sm:$0xff] %v2020_v34  ;;  %v844_v9 = vadd.f32 %v843_v57, %v1941_v23  ;;  %v865_v6 = vadd.f32 %v864_v58, %v1945_v24  ;;  %v2077_v22 = vsel %vm728_vm12, %v2586_v38, 0.0  ;;  %v2082_v46 = vsel %vm729_vm13, %v2587_v54, 0.0  ;;  %v2589_v57 = vld [vmem:[#allocation15_spill] sm:$0xff]  ;;  %v2591_v38 = vld [vmem:[#allocation16_spill] sm:$0xff] }
 0x144   : > { %2578 = vst [vmem:[#allocation3_spill] sm:$0xff] %v2028_v37  ;;  %v2087_v52 = vsel %vm729_vm13, %v2588_v47, 0.0  ;;  %v803_v21 = vadd.f32 %v802_v50, %v1949_v27  ;;  %v2093_v58 = vsel %vm729_vm13, %v2589_v57, 0.0  ;;  %v824_v25 = vadd.f32 %v823_v26, %v1953_v28  ;;  %v2593_v47 = vld [vmem:[#allocation17_spill] sm:$0xff]  ;;  %v2595_v27 = vld [vmem:[#allocation18_spill] sm:$0xff] }
 0x145   : > { %2590 = vst [vmem:[#allocation4_spill] sm:$0xff] %v2093_v58  ;;  %v845_v1 = vadd.f32 %v844_v9, %v1957_v31  ;;  %v866_v2 = vadd.f32 %v865_v6, %v1962_v32  ;;  %v2101_v54 = vsel %vm729_vm13, %v2591_v38, 0.0  ;;  %v2106_v50 = vsel %vm730_vm14, %v2593_v47, 0.0  ;;  %v2597_v9 = vld [vmem:[#allocation19_spill] sm:$0xff]  ;;  %v2599_v47 = vld [vmem:[#allocation20_spill] sm:$0xff] }
 0x146   : > { %2592 = vst [vmem:[#allocation5_spill] sm:$0xff] %v2101_v54  ;;  %v2111_v57 = vsel %vm730_vm14, %v2595_v27, 0.0  ;;  %v804_v26 = vadd.f32 %v803_v21, %v1966_v35  ;;  %v2117_v6 = vsel %vm730_vm14, %v2597_v9, 0.0  ;;  %v825_v18 = vadd.f32 %v824_v25, %v1970_v36  ;;  %v2601_v27 = vld [vmem:[#allocation21_spill] sm:$0xff]  ;;  %v2603_v35 = vld [vmem:[#allocation22_spill] sm:$0xff] }
 0x147   : > { %2594 = vst [vmem:[#allocation6_spill] sm:$0xff] %v2106_v50  ;;  %v846_v38 = vadd.f32 %v845_v1, %v1974_v39  ;;  %v867_v32 = vadd.f32 %v866_v2, %v1978_v40  ;;  %v2125_v31 = vsel %vm730_vm14, %v2599_v47, 0.0  ;;  %v2130_v21 = vsel %vm731_vm15, %v2601_v27, 0.0  ;;  %v2605_v1 = vld [vmem:[#allocation23_spill] sm:$0xff]  ;;  %v2607_v27 = vld [vmem:[#allocation24_spill] sm:$0xff] }
 0x148   : > { %2596 = vst [vmem:[#allocation7_spill] sm:$0xff] %v2111_v57  ;;  %v2135_v9 = vsel %vm731_vm15, %v2603_v35, 0.0  ;;  %v805_v25 = vadd.f32 %v804_v26, %v1982_v43  ;;  %v2141_v2 = vsel %vm731_vm15, %v2605_v1, 0.0  ;;  %v826_v17 = vadd.f32 %v825_v18, %v1986_v44  ;;  %v2609_v35 = vld [vmem:[#allocation25_spill] sm:$0xff]  ;;  %v2611_v43 = vld [vmem:[#allocation26_spill] sm:$0xff] }
 0x149   : > { %2598 = vst [vmem:[#allocation8_spill] sm:$0xff] %v2117_v6  ;;  %v847_v47 = vadd.f32 %v846_v38, %v1993_v48  ;;  %v868_v40 = vadd.f32 %v867_v32, %v2003_v56  ;;  %v2149_v39 = vsel %vm731_vm15, %v2607_v27, 0.0  ;;  %v2154_v26 = vsel %vm732_vm0, %v2609_v35, 0.0  ;;  %v2613_v38 = vld [vmem:[#allocation27_spill] sm:$0xff]  ;;  %v2615_v35 = vld [vmem:[#allocation28_spill] sm:$0xff] }
 0x14a   : > { %2600 = vst [vmem:[#allocation9_spill] sm:$0xff] %v2125_v31  ;;  %v2159_v1 = vsel %vm732_vm0, %v2611_v43, 0.0  ;;  %v806_v18 = vadd.f32 %v805_v25, %v2008_v41  ;;  %v2165_v32 = vsel %vm732_vm0, %v2613_v38, 0.0  ;;  %v827_v10 = vadd.f32 %v826_v17, %v2013_v42  ;;  %v2617_v43 = vld [vmem:[#allocation29_spill] sm:$0xff]  ;;  %v2619_v41 = vld [vmem:[#allocation30_spill] sm:$0xff] }
 0x14b   : > { %2602 = vst [vmem:[#allocation10_spill] sm:$0xff] %v2130_v21  ;;  %v848_v27 = vadd.f32 %v847_v47, %v2020_v34  ;;  %v869_v56 = vadd.f32 %v868_v40, %v2028_v37  ;;  %v2173_v48 = vsel %vm732_vm0, %v2615_v35, 0.0  ;;  %v2178_v25 = vsel %vm733_vm1, %v2617_v43, 0.0  ;;  %v2621_v47 = vld [vmem:[#allocation31_spill] sm:$0xff]  ;;  %v2623_v43 = vld [vmem:[#allocation32_spill] sm:$0xff] }
 0x14c   : > { %2604 = vst [vmem:[#allocation11_spill] sm:$0xff] %v2135_v9  ;;  %v2183_v38 = vsel %vm733_vm1, %v2619_v41, 0.0  ;;  %v807_v17 = vadd.f32 %v806_v18, %v2033_v53  ;;  %v2189_v40 = vsel %vm733_vm1, %v2621_v47, 0.0  ;;  %v828_v0 = vadd.f32 %v827_v10, %v2038_v63 }
 0x14d   : > { %2606 = vst [vmem:[#allocation12_spill] sm:$0xff] %v2141_v2  ;;  %v849_v35 = vadd.f32 %v848_v27, %v2045_v33  ;;  %v870_v37 = vadd.f32 %v869_v56, %v2053_v51  ;;  %v2197_v34 = vsel %vm733_vm1, %v2623_v43, 0.0  ;;  %v2202_v18 = vmul.f32 %v1870_v29, %v1870_v29 }
 0x14e   : > { %2608 = vst [vmem:[#allocation13_spill] sm:$0xff] %v2149_v39  ;;  %v808_v41 = vadd.f32 %v807_v17, %v2058_v55  ;;  %v2206_v47 = vmul.f32 %v1873_v14, %v1873_v14  ;;  %v829_v10 = vadd.f32 %v828_v0, %v2063_v49  ;;  %v2213_v5 = vmul.f32 %v1876_v13, %v1876_v13 }
 0x14f   : > { %2610 = vst [vmem:[#allocation14_spill] sm:$0xff] %v2154_v26  ;;  %v850_v27 = vadd.f32 %v849_v35, %v2069_v59  ;;  %v871_v56 = vadd.f32 %v870_v37, %v2077_v22  ;;  %v2218_v29 = vmul.f32 %v1879_v60, %v1879_v60  ;;  %v2222_v14 = vmul.f32 %v1883_v30, %v1883_v30 }
 0x150   : > { %2612 = vst [vmem:[#allocation15_spill] sm:$0xff] %v2159_v1  ;;  %v809_v17 = vadd.f32 %v808_v41, %v2082_v46  ;;  %v2226_v0 = vmul.f32 %v1887_v45, %v1887_v45  ;;  %v830_v37 = vadd.f32 %v829_v10, %v2087_v52  ;;  %v910_v43 = vmul.f32 %v1891_v61, %v1891_v61 }
 0x151   : > { %2614 = vst [vmem:[#allocation16_spill] sm:$0xff] %v2165_v32  ;;  %v851_v35 = vadd.f32 %v850_v27, %v2093_v58  ;;  %v872_v13 = vadd.f32 %v871_v56, %v2101_v54  ;;  %v911_v41 = vmul.f32 %v1896_v62, %v1896_v62  ;;  %v2238_v30 = vmul.f32 %v1900_v3, %v1900_v3 }
 0x152   : > { %2616 = vst [vmem:[#allocation17_spill] sm:$0xff] %v2173_v48  ;;  %v810_v60 = vadd.f32 %v809_v17, %v2106_v50  ;;  %v2242_v45 = vmul.f32 %v1904_v4, %v1904_v4  ;;  %v831_v10 = vadd.f32 %v830_v37, %v2111_v57  ;;  %v2249_v61 = vmul.f32 %v1908_v7, %v1908_v7 }
 0x153   : > { %2618 = vst [vmem:[#allocation18_spill] sm:$0xff] %v2178_v25  ;;  %v852_v27 = vadd.f32 %v851_v35, %v2117_v6  ;;  %v873_v56 = vadd.f32 %v872_v13, %v2125_v31  ;;  %v915_v3 = vmul.f32 %v1912_v8, %v1912_v8  ;;  %v2256_v17 = vmul.f32 %v1916_v11, %v1916_v11  ;;  %v2634_v31 = vld [vmem:[#allocation42_spill] sm:$0xff] }
 0x154   : > { %2620 = vst [vmem:[#allocation19_spill] sm:$0xff] %v2183_v38  ;;  %v811_v62 = vadd.f32 %v810_v60, %v2130_v21  ;;  %v2260_v4 = vmul.f32 %v1920_v12, %v1920_v12  ;;  %v832_v37 = vadd.f32 %v831_v10, %v2135_v9  ;;  %v2267_v13 = vmul.f32 %v1924_v15, %v1924_v15  ;;  %v2632_v21 = vld [vmem:[#allocation40_spill] sm:$0xff] }
 0x155   : > { %2622 = vst [vmem:[#allocation20_spill] sm:$0xff] %v2189_v40  ;;  %v853_v35 = vadd.f32 %v852_v27, %v2141_v2  ;;  %v874_v7 = vadd.f32 %v873_v56, %v2149_v39  ;;  %v919_v11 = vmul.f32 %v1929_v16, %v1929_v16  ;;  %v2274_v60 = vmul.f32 %v1933_v19, %v1933_v19 }
 0x156   : > { %2624 = vst [vmem:[#allocation21_spill] sm:$0xff] %v2197_v34  ;;  %v812_v8 = vadd.f32 %v811_v62, %v2154_v26  ;;  %v2278_v12 = vmul.f32 %v1937_v20, %v1937_v20  ;;  %v833_v10 = vadd.f32 %v832_v37, %v2159_v1  ;;  %v2285_v56 = vmul.f32 %v1941_v23, %v1941_v23  ;;  %v2625_v62 = vld [vmem:[#allocation33_spill] sm:$0xff]  ;;  %v2631_v1 = vld [vmem:[#allocation39_spill] sm:$0xff] }
 0x157   : > { %v854_v27 = vadd.f32 %v853_v35, %v2165_v32  ;;  %v875_v15 = vadd.f32 %v874_v7, %v2173_v48  ;;  %v923_v19 = vmul.f32 %v1945_v24, %v1945_v24  ;;  %v2292_v26 = vmul.f32 %v2625_v62, %v2625_v62  ;;  %v2626_v7 = vld [vmem:[#allocation34_spill] sm:$0xff]  ;;  %v2627_v24 = vld [vmem:[#allocation35_spill] sm:$0xff]  ;;  %v2628_v62 = vld [vmem:[#allocation36_spill] sm:$0xff] }
 0x158   : > { %v813_v16 = vadd.f32 %v812_v8, %v2178_v25  ;;  %v2296_v20 = vmul.f32 %v1953_v28, %v1953_v28  ;;  %v834_v37 = vadd.f32 %v833_v10, %v2183_v38  ;;  %v2303_v8 = vmul.f32 %v2626_v7, %v2626_v7  ;;  %v2630_v38 = vld [vmem:[#allocation38_spill] sm:$0xff] }
 0x159   : > { %v855_v35 = vadd.f32 %v854_v27, %v2189_v40  ;;  %v876_v23 = vadd.f32 %v875_v15, %v2197_v34  ;;  %v2307_v48 = vmul.f32 %v2627_v24, %v2627_v24  ;;  %v2311_v32 = vmul.f32 %v2628_v62, %v2628_v62  ;;  %v2629_v34 = vld [vmem:[#allocation37_spill] sm:$0xff] }
 0x15a   : > { %v814_v25 = vrot.slane %v813_v16, 4  ;;  %v2315_v28 = vmul.f32 %v1970_v36, %v1970_v36  ;;  %v835_v10 = vrot.slane %v834_v37, 4  ;;  %v2319_v7 = vmul.f32 %v2629_v34, %v2629_v34 }
 0x15b   : > { %v856_v27 = vrot.slane %v855_v35, 4  ;;  %v877_v15 = vrot.slane %v876_v23, 4  ;;  %v2323_v24 = vmul.f32 %v2630_v38, %v2630_v38  ;;  %v2327_v62 = vmul.f32 %v2631_v1, %v2631_v1  ;;  %v2633_v38 = vld [vmem:[#allocation41_spill] sm:$0xff] }
 0x15c   : > { %v815_v40 = vadd.f32 %v814_v25, %v813_v16  ;;  %v2331_v36 = vmul.f32 %v1986_v44, %v1986_v44  ;;  %v836_v39 = vadd.f32 %v835_v10, %v834_v37  ;;  %v2335_v34 = vmul.f32 %v2632_v21, %v2632_v21 }
 0x15d   : > { %v857_v2 = vadd.f32 %v856_v27, %v855_v35  ;;  %v878_v9 = vadd.f32 %v877_v15, %v876_v23  ;;  %vm890_vm2 = vcmask 1040384   ;;  %vm892_vm3 = vcmask 1042434  }
 0x15e   : > { %v816_v25 = vrot.slane %v815_v40, 2  ;;  %v935_v16 = vmul.f32 %v2633_v38, %v2633_v38  ;;  %v2341_v1 = vmul.f32 %v2634_v31, %v2634_v31  ;;  %v2345_v44 = vmul.f32 %v2013_v42, %v2013_v42 }
 0x15f   : > { %v837_v37 = vrot.slane %v836_v39, 2  ;;  %v858_v35 = vrot.slane %v857_v2, 2  ;;  %v879_v23 = vrot.slane %v878_v9, 2  ;;  %vm894_vm4 = vcmask 1041408  }
 0x160   : > { %v968_v21 = vadd.f32 %v2222_v14, %v2202_v18  ;;  %v817_v10 = vadd.f32 %v816_v25, %v815_v40  ;;  %v989_v27 = vadd.f32 %v2226_v0, %v2206_v47  ;;  %v1010_v15 = vadd.f32 %v910_v43, %v2213_v5 }
 0x161   : > { %v1031_v31 = vadd.f32 %v911_v41, %v2218_v29  ;;  %v838_v38 = vadd.f32 %v837_v37, %v836_v39  ;;  %v859_v6 = vadd.f32 %v858_v35, %v857_v2  ;;  %v880_v57 = vadd.f32 %v879_v23, %v878_v9 }
 0x162   : > { %v969_v42 = vadd.f32 %v968_v21, %v2238_v30  ;;  %v818_v50 = vrot.slane %v817_v10, 1  ;;  %v2635_v54 = vlaneseq  ;;  %v990_v40 = vadd.f32 %v989_v27, %v2242_v45  ;;  %v2638_v45 = vld [vmem:[#allocation2_spill] sm:$0xff] }
 0x163   : > { %v1011_v18 = vadd.f32 %v1010_v15, %v2249_v61  ;;  %v1032_v47 = vadd.f32 %v1031_v31, %v915_v3  ;;  %v839_v14 = vrot.slane %v838_v38, 1  ;;  %v860_v5 = vrot.slane %v859_v6, 1 }
 0x164   : > { %vm2355_vm5 = vcmp.lt.s32.totalorder %v2635_v54, 512  ;;  %v881_v0 = vrot.slane %v880_v57, 1  ;;  %v970_v39 = vadd.f32 %v969_v42, %v2256_v17  ;;  %v819_v2 = vadd.f32 %v818_v50, %v817_v10 }
 0x165   : > { %v991_v9 = vadd.f32 %v990_v40, %v2260_v4  ;;  %v1012_v29 = vadd.f32 %v1011_v18, %v2267_v13  ;;  %v1033_v43 = vadd.f32 %v1032_v47, %v919_v11  ;;  %v840_v54 = vadd.f32 %v839_v14, %v838_v38  ;;  %v2640_v40 = vld [vmem:[#allocation4_spill] sm:$0xff] }
 0x166   : > { %v861_v41 = vadd.f32 %v860_v5, %v859_v6  ;;  %v882_v30 = vadd.f32 %v881_v0, %v880_v57  ;;  %v971_v25 = vadd.f32 %v970_v39, %v2274_v60  ;;  %v938_v61 = vmul.f32 %v2638_v45, %v2638_v45  ;;  %v798_v6 = vld [vmem:[%s2469_s4] sm:$0xf]  ;;  %v2639_v57 = vld [vmem:[#allocation3_spill] sm:$0xff] }
 0x167   : > { %v992_v3 = vadd.f32 %v991_v9, %v2278_v12  ;;  %v1013_v37 = vadd.f32 %v1012_v29, %v2285_v56  ;;  %v1034_v35 = vadd.f32 %v1033_v43, %v923_v19  ;;  %v887_v17 = vrot.slane %v840_v54, 7  ;;  %v2642_v5 = vld [vmem:[#allocation6_spill] sm:$0xff]  ;;  %v2643_v0 = vld [vmem:[#allocation7_spill] sm:$0xff]  ;;  %v2645_v9 = vld [vmem:[#allocation9_spill] sm:$0xff] }
 0x168   : > { %v888_v50 = vrot.slane %v861_v41, 6  ;;  %v889_v23 = vrot.slane %v882_v30, 5  ;;  %v972_v4 = vadd.f32 %v971_v25, %v2292_v26  ;;  %v939_v13 = vmul.f32 %v2639_v57, %v2639_v57  ;;  %v2646_v30 = vld [vmem:[#allocation10_spill] sm:$0xff]  ;;  %v2647_v45 = vld [vmem:[#allocation11_spill] sm:$0xff] }
 0x169   : > { %v993_v11 = vadd.f32 %v992_v3, %v2296_v20  ;;  %v1014_v60 = vadd.f32 %v1013_v37, %v2303_v8  ;;  %v1035_v12 = vadd.f32 %v1034_v35, %v2307_v48  ;;  %v891_v56 = vsel %vm890_vm2, %v819_v2, %v887_v17  ;;  %v2648_v3 = vld [vmem:[#allocation12_spill] sm:$0xff]  ;;  %v2649_v17 = vld [vmem:[#allocation13_spill] sm:$0xff]  ;;  %v2650_v57 = vld [vmem:[#allocation14_spill] sm:$0xff] }
 0x16a   : > { %v893_v19 = vsel %vm892_vm3, %v888_v50, %v889_v23  ;;  %v940_v26 = vmul.f32 %v2033_v53, %v2033_v53  ;;  %v973_v21 = vadd.f32 %v972_v4, %v2311_v32  ;;  %v941_v48 = vmul.f32 %v2038_v63, %v2038_v63 }
 0x16b   : > { %v895_v10 = vsel %vm894_vm4, %v891_v56, %v893_v19  ;;  %v994_v27 = vadd.f32 %v993_v11, %v2315_v28  ;;  %v1015_v15 = vadd.f32 %v1014_v60, %v2319_v7  ;;  %v1036_v20 = vadd.f32 %v1035_v12, %v2323_v24  ;;  %v2651_v11 = vld [vmem:[#allocation15_spill] sm:$0xff]  ;;  %v2652_v12 = vld [vmem:[#allocation16_spill] sm:$0xff] }
 0x16c   : > { %v897_v8 = vadd.f32 %v895_v10, %v798_v6  ;;  %v942_v31 = vmul.f32 %v2045_v33, %v2045_v33  ;;  %v974_v38 = vadd.f32 %v973_v21, %v2327_v62  ;;  %v943_v53 = vmul.f32 %v2053_v51, %v2053_v51 }
 0x16d   : > { %v995_v32 = vadd.f32 %v994_v27, %v2331_v36  ;;  %v1016_v28 = vadd.f32 %v1015_v15, %v2335_v34  ;;  %v1037_v42 = vadd.f32 %v1036_v20, %v935_v16  ;;  %v944_v63 = vmul.f32 %v2058_v55, %v2058_v55  ;;  %v2654_v20 = vld [vmem:[#allocation18_spill] sm:$0xff] }
 0x16e   : > { %902 = vst.msk [vmem:[%s2469_s4] sm:$0xf] %vm2355_vm5, %v897_v8  ;;  %v945_v33 = vmul.f32 %v2063_v49, %v2063_v49  ;;  %v946_v51 = vmul.f32 %v2069_v59, %v2069_v59  ;;  %v975_v7 = vadd.f32 %v974_v38, %v2341_v1  ;;  %v947_v24 = vmul.f32 %v2077_v22, %v2077_v22  ;;  %v2641_v59 = vld [vmem:[#allocation5_spill] sm:$0xff]  ;;  %v2656_v38 = vld [vmem:[#allocation20_spill] sm:$0xff] }
 0x16f   : > { %v996_v62 = vadd.f32 %v995_v32, %v2345_v44  ;;  %v1017_v36 = vadd.f32 %v1016_v28, %v938_v61  ;;  %v1038_v34 = vadd.f32 %v1037_v42, %v939_v13  ;;  %v948_v16 = vmul.f32 %v2082_v46, %v2082_v46  ;;  %v2644_v46 = vld [vmem:[#allocation8_spill] sm:$0xff]  ;;  %v2657_v28 = vld [vmem:[#allocation21_spill] sm:$0xff] }
 0x170   : > { %v949_v55 = vmul.f32 %v2087_v52, %v2087_v52  ;;  %v950_v49 = vmul.f32 %v2640_v40, %v2640_v40  ;;  %v976_v18 = vadd.f32 %v975_v7, %v940_v26  ;;  %v951_v1 = vmul.f32 %v2641_v59, %v2641_v59  ;;  %v2653_v26 = vld [vmem:[#allocation17_spill] sm:$0xff] }
 0x171   : > { %v997_v47 = vadd.f32 %v996_v62, %v941_v48  ;;  %v1018_v14 = vadd.f32 %v1017_v36, %v942_v31  ;;  %v1039_v22 = vadd.f32 %v1038_v34, %v943_v53  ;;  %v952_v44 = vmul.f32 %v2642_v5, %v2642_v5  ;;  %v2655_v48 = vld [vmem:[#allocation19_spill] sm:$0xff] }
 0x172   : > { %v953_v39 = vmul.f32 %v2643_v0, %v2643_v0  ;;  %v954_v2 = vmul.f32 %v2644_v46, %v2644_v46  ;;  %v977_v52 = vadd.f32 %v976_v18, %v944_v63  ;;  %v955_v29 = vmul.f32 %v2645_v9, %v2645_v9 }
 0x173   : > { %v998_v43 = vadd.f32 %v997_v47, %v945_v33  ;;  %v1019_v54 = vadd.f32 %v1018_v14, %v946_v51  ;;  %v1040_v41 = vadd.f32 %v1039_v22, %v947_v24  ;;  %v956_v25 = vmul.f32 %v2646_v30, %v2646_v30 }
 0x174   : > { %v957_v61 = vmul.f32 %v2647_v45, %v2647_v45  ;;  %v958_v37 = vmul.f32 %v2648_v3, %v2648_v3  ;;  %v978_v35 = vadd.f32 %v977_v52, %v948_v16  ;;  %v959_v50 = vmul.f32 %v2649_v17, %v2649_v17 }
 0x175   : > { %v999_v23 = vadd.f32 %v998_v43, %v949_v55  ;;  %v1020_v4 = vadd.f32 %v1019_v54, %v950_v49  ;;  %v1041_v6 = vadd.f32 %v1040_v41, %v951_v1  ;;  %v960_v13 = vmul.f32 %v2650_v57, %v2650_v57 }
 0x176   : > { %v961_v60 = vmul.f32 %v2651_v11, %v2651_v11  ;;  %v962_v56 = vmul.f32 %v2652_v12, %v2652_v12  ;;  %v979_v19 = vadd.f32 %v978_v35, %v952_v44  ;;  %v963_v21 = vmul.f32 %v2653_v26, %v2653_v26 }
 0x177   : > { %v1000_v10 = vadd.f32 %v999_v23, %v953_v39  ;;  %v1021_v27 = vadd.f32 %v1020_v4, %v954_v2  ;;  %v1042_v15 = vadd.f32 %v1041_v6, %v955_v29  ;;  %v964_v8 = vmul.f32 %v2654_v20, %v2654_v20 }
 0x178   : > { %v965_v31 = vmul.f32 %v2655_v48, %v2655_v48  ;;  %v966_v53 = vmul.f32 %v2656_v38, %v2656_v38  ;;  %v980_v32 = vadd.f32 %v979_v19, %v956_v25  ;;  %v967_v42 = vmul.f32 %v2657_v28, %v2657_v28 }
 0x179   : > { %v1001_v63 = vadd.f32 %v1000_v10, %v957_v61  ;;  %v1022_v33 = vadd.f32 %v1021_v27, %v958_v37  ;;  %v1043_v51 = vadd.f32 %v1042_v15, %v959_v50  ;;  %v903_v50 = vld [vmem:[%s2470_s5] sm:$0xf] }
 0x17a   : > { %v981_v7 = vadd.f32 %v980_v32, %v960_v13 }
 0x17b   : > { %v1002_v24 = vadd.f32 %v1001_v63, %v961_v60  ;;  %v1023_v62 = vadd.f32 %v1022_v33, %v962_v56  ;;  %v1044_v36 = vadd.f32 %v1043_v51, %v963_v21 }
 0x17c   : > { %v982_v34 = vadd.f32 %v981_v7, %v964_v8 }
 0x17d   : > { %v1003_v16 = vadd.f32 %v1002_v24, %v965_v31  ;;  %v1024_v55 = vadd.f32 %v1023_v62, %v966_v53  ;;  %v1045_v40 = vadd.f32 %v1044_v36, %v967_v42 }
 0x17e   : > { %v983_v49 = vrot.slane %v982_v34, 4 }
 0x17f   : > { %v1004_v18 = vrot.slane %v1003_v16, 4  ;;  %v1025_v59 = vrot.slane %v1024_v55, 4  ;;  %v1046_v1 = vrot.slane %v1045_v40, 4 }
 0x180   : > { %v984_v47 = vadd.f32 %v983_v49, %v982_v34 }
 0x181   : > { %v1005_v14 = vadd.f32 %v1004_v18, %v1003_v16  ;;  %v1026_v22 = vadd.f32 %v1025_v59, %v1024_v55  ;;  %v1047_v5 = vadd.f32 %v1046_v1, %v1045_v40 }
 0x182   : > { %v985_v44 = vrot.slane %v984_v47, 2 }
 0x183   : > { %v1006_v0 = vrot.slane %v1005_v14, 2  ;;  %v1027_v39 = vrot.slane %v1026_v22, 2  ;;  %v1048_v46 = vrot.slane %v1047_v5, 2 }
 0x184   : > { %v986_v2 = vadd.f32 %v985_v44, %v984_v47 }
 0x185   : > { %v1007_v52 = vadd.f32 %v1006_v0, %v1005_v14  ;;  %v1028_v9 = vadd.f32 %v1027_v39, %v1026_v22  ;;  %v1049_v29 = vadd.f32 %v1048_v46, %v1047_v5 }
 0x186   : > { %v987_v43 = vrot.slane %v986_v2, 1 }
 0x187   : > { %v1008_v54 = vrot.slane %v1007_v52, 1  ;;  %v1029_v41 = vrot.slane %v1028_v9, 1  ;;  %v1050_v30 = vrot.slane %v1049_v29, 1 }
 0x188   : > { %v988_v25 = vadd.f32 %v987_v43, %v986_v2 }
 0x189   : > { %v1009_v45 = vadd.f32 %v1008_v54, %v1007_v52  ;;  %v1030_v61 = vadd.f32 %v1029_v41, %v1028_v9  ;;  %v1051_v3 = vadd.f32 %v1050_v30, %v1049_v29 }
 0x18b   : > { %v1056_v37 = vrot.slane %v1009_v45, 7  ;;  %v1057_v35 = vrot.slane %v1030_v61, 6  ;;  %v1058_v17 = vrot.slane %v1051_v3, 5 }
 0x18d   : > { %v1059_v23 = vsel %vm890_vm2, %v988_v25, %v1056_v37  ;;  %v1060_v4 = vsel %vm892_vm3, %v1057_v35, %v1058_v17 }
 0x18e   : > { %v1061_v6 = vsel %vm894_vm4, %v1059_v23, %v1060_v4 }
 0x18f   : > { %v1063_v57 = vadd.f32 %v1061_v6, %v903_v50 }
 0x191   : > { %1064 = vst.msk [vmem:[%s2470_s5] sm:$0xf] %vm2355_vm5, %v1063_v57 }
 0x192 PF: > { %s16_s18 = sadd.s32 1, %s1317_s18  }
 0x193   : > { %p13_p5 = scmp.ge.s32.totalorder %s16_s18, 4  }
 0x195   :  { %15 = sbr.rel (!%p13_p5) target bundleno = 1 (0x1), region = 82 }

// kernel: linear_classifier_forward.6
= control target key start
LH: loop header
LB: loop body
LE: loop exit
PB: predicated region body
PF: predicated region fallthrough
CT: control target
= control target key end

     0   :  { %15 = vsyncpa [#allocation3], 0  ;;  %s2266_s30 = smov 0   ;;  %s2935_s0 = inlined_call_operand.vmem [shape: f32[256,512], index: 0, kind: input, shape index: {}]   ;;  %s2936_s1 = inlined_call_operand.vmem [shape: f32[1,512], index: 1, kind: input, shape index: {}]   ;;  %s2937_s2 = inlined_call_operand.vmem [shape: f32[1,512], index: 2, kind: input, shape index: {}]   ;;  %s2938_s3 = inlined_call_operand.vmem [shape: f32[1,512], index: 3, kind: input, shape index: {}]   ;;  %s2939_s4 = inlined_call_operand.vmem [shape: f32[1,512], index: 4, kind: input, shape index: {}]   ;;  %s2940_s5 = inlined_call_operand.hbm [shape: bf16[512,256], index: 5, kind: input, shape index: {}]   ;;  %s2941_s6 = inlined_call_operand.vmem [shape: f32[1,256], index: 6, kind: input, shape index: {}]   ;;  %s2942_s7 = inlined_call_operand.vmem [shape: f32[256,256], index: 7, kind: output, shape index: {0}]   ;;  %s2943_s8 = inlined_call_operand.vmem [shape: f32[1,256], index: 8, kind: output, shape index: {1}]   ;;  %s2944_s9 = inlined_call_operand.vmem [shape: f32[1,256], index: 9, kind: output, shape index: {2}]  }
   0x1 LB: > { %s269_s12 = sshll.u32 %s2940_s5, 4  ;;  %s2275_s13 = sadd.s32 4294967295, %s2210_s30   ;;  %s2210_s30 = sphi %s2266_s30, %s21_s30   ;;  %s270_s12 = int_to_ptr.hbm [resolvable:$true] %s269_s12 }
   0x2   : > { %p1809_p0 = scmp.ge.s32.totalorder %s2210_s30, 1  ;;  %p246_p1 = scmp.lt.s32.totalorder %s2210_s30, 3 }
   0x3   : > { %p1810_p2 = scmp.ne.s32.totalorder %s2275_s13, 0  ;;  %p2154_p3 = scmp.eq.s32.totalorder %s2275_s13, 0 }
   0x4   : > { %p247_p4 = pnand %p1809_p0, %p246_p1  ;;  %s2212_s14 = smov [#allocation2]  }
   0x5   : > { %s271_s15 = sshll.u32 %s2212_s14, 4  ;;  %s2213_s16 = smov 128   ;;  %s272_s15 = int_to_ptr.vmem [resolvable:$true] %s271_s15 }
   0x6   : > { %p2150_p5 = pneg %p247_p4  ;;  %s2214_s17 = smov 8  }
   0x7   : > { %300 = sbr.rel (%p247_p4) target bundleno = 536 (0x218), region = 48 }
   0x8   : > { %p2151_p6 = pnand %p2154_p3, %p2150_p5 }
   0xa   : > { %2153 = dma.hbm_to_vmem [thread:$0]  (!%p2151_p6), %s270_s12, 8192, %s272_s15, [#allocation3], %s2213_s16, %s2213_s16, %s2214_s17  }
   0xc   : > { %2205 = dma.done.wait (%p2154_p3), [#allocation3], 8192  }
   0xd   : > { %2207 = vsyncadd (%p2154_p3), [#allocation3], 4294959104  ;;  %v1878_v0 = vld [vmem:[#allocation2 + $0x70] sm:$0xf]  ;;  %v2097_v1 = vld [vmem:[#allocation2 + $0x74] sm:$0xf0] }
   0xe   : > { %v1942_v2 = vld [vmem:[#allocation2 + $0xf0] sm:$0xf]  ;;  %v1879_v3 = vor.u32 %v2097_v1, %v1878_v0  ;;  %v2113_v4 = vld [vmem:[#allocation2 + $0xf4] sm:$0xf0]  ;;  %v1870_v11 = vld [vmem:[#allocation2 + $0x60] sm:$0xf] }
   0xf   : > { %v2006_v5 = vld [vmem:[#allocation2 + $0x170] sm:$0xf]  ;;  %v2129_v6 = vld [vmem:[#allocation2 + $0x174] sm:$0xf0]  ;;  %v1943_v7 = vor.u32 %v2113_v4, %v1942_v2  ;;  %v2095_v13 = vld [vmem:[#allocation2 + $0x64] sm:$0xf0] }
  0x10   : > { %v2007_v8 = vor.u32 %v2129_v6, %v2006_v5  ;;  %v2070_v9 = vld [vmem:[#allocation2 + $0x1f0] sm:$0xf]  ;;  %v2145_v10 = vld [vmem:[#allocation2 + $0x1f4] sm:$0xf0]  ;;  %1071 = vmatpush.bf16.msra.mxu0 %v1879_v3  ;;  %v1934_v14 = vld [vmem:[#allocation2 + $0xe0] sm:$0xf]  ;;  %v1871_v16 = vor.u32 %v2095_v13, %v1870_v11 }
  0x11   : > { %v2071_v12 = vor.u32 %v2145_v10, %v2070_v9  ;;  %v2111_v15 = vld [vmem:[#allocation2 + $0xe4] sm:$0xf0]  ;;  %1120 = vmatpush.bf16.msra.mxu1 %v1943_v7  ;;  %v1998_v18 = vld [vmem:[#allocation2 + $0x160] sm:$0xf]  ;;  %v1862_v23 = vld [vmem:[#allocation2 + $0x50] sm:$0xf] }
  0x12   : > { %1169 = vmatpush.bf16.msra.mxu2 %v2007_v8  ;;  %v1935_v17 = vor.u32 %v2111_v15, %v1934_v14  ;;  %v2127_v19 = vld [vmem:[#allocation2 + $0x164] sm:$0xf0]  ;;  %v2062_v20 = vld [vmem:[#allocation2 + $0x1e0] sm:$0xf]  ;;  %v2093_v24 = vld [vmem:[#allocation2 + $0x54] sm:$0xf0] }
  0x13   : > { %1218 = vmatpush.bf16.msra.mxu3 %v2071_v12  ;;  %v1999_v21 = vor.u32 %v2127_v19, %v1998_v18  ;;  %v2143_v22 = vld [vmem:[#allocation2 + $0x1e4] sm:$0xf0]  ;;  %v1926_v26 = vld [vmem:[#allocation2 + $0xd0] sm:$0xf]  ;;  %v2109_v27 = vld [vmem:[#allocation2 + $0xd4] sm:$0xf0]  ;;  %v1863_v29 = vor.u32 %v2093_v24, %v1862_v23 }
  0x14   : > { %v2063_v25 = vor.u32 %v2143_v22, %v2062_v20  ;;  %v1990_v28 = vld [vmem:[#allocation2 + $0x150] sm:$0xf]  ;;  %1072 = vmatpush.bf16.msra.mxu0 %v1871_v16  ;;  %v2125_v30 = vld [vmem:[#allocation2 + $0x154] sm:$0xf0]  ;;  %v1927_v33 = vor.u32 %v2109_v27, %v1926_v26  ;;  %v1854_v35 = vld [vmem:[#allocation2 + $0x40] sm:$0xf] }
  0x15   : > { %v2054_v31 = vld [vmem:[#allocation2 + $0x1d0] sm:$0xf]  ;;  %v2141_v32 = vld [vmem:[#allocation2 + $0x1d4] sm:$0xf0]  ;;  %1121 = vmatpush.bf16.msra.mxu1 %v1935_v17  ;;  %v1991_v34 = vor.u32 %v2125_v30, %v1990_v28  ;;  %v2091_v36 = vld [vmem:[#allocation2 + $0x44] sm:$0xf0] }
  0x16   : > { %1170 = vmatpush.bf16.msra.mxu2 %v1999_v21  ;;  %v1918_v37 = vld [vmem:[#allocation2 + $0xc0] sm:$0xf]  ;;  %v2055_v38 = vor.u32 %v2141_v32, %v2054_v31  ;;  %v2107_v39 = vld [vmem:[#allocation2 + $0xc4] sm:$0xf0]  ;;  %v1855_v44 = vor.u32 %v2091_v36, %v1854_v35  ;;  %v1846_v47 = vld [vmem:[#allocation2 + $0x30] sm:$0xf] }
  0x17   : > { %1219 = vmatpush.bf16.msra.mxu3 %v2063_v25  ;;  %v1982_v40 = vld [vmem:[#allocation2 + $0x140] sm:$0xf]  ;;  %v2123_v41 = vld [vmem:[#allocation2 + $0x144] sm:$0xf0]  ;;  %v1919_v45 = vor.u32 %v2107_v39, %v1918_v37  ;;  %v2089_v48 = vld [vmem:[#allocation2 + $0x34] sm:$0xf0] }
  0x18   : > { %v2046_v42 = vld [vmem:[#allocation2 + $0x1c0] sm:$0xf]  ;;  %v2139_v43 = vld [vmem:[#allocation2 + $0x1c4] sm:$0xf0]  ;;  %1073 = vmatpush.bf16.msra.mxu0 %v1863_v29  ;;  %v1983_v46 = vor.u32 %v2123_v41, %v1982_v40  ;;  %v1910_v49 = vld [vmem:[#allocation2 + $0xb0] sm:$0xf]  ;;  %v1847_v56 = vor.u32 %v2089_v48, %v1846_v47 }
  0x19   : > { %1122 = vmatpush.bf16.msra.mxu1 %v1927_v33  ;;  %v2047_v50 = vor.u32 %v2139_v43, %v2046_v42  ;;  %v2105_v51 = vld [vmem:[#allocation2 + $0xb4] sm:$0xf0]  ;;  %v1974_v52 = vld [vmem:[#allocation2 + $0x130] sm:$0xf]  ;;  %v1838_v59 = vld [vmem:[#allocation2 + $0x20] sm:$0xf] }
  0x1a   : > { %1171 = vmatpush.bf16.msra.mxu2 %v1991_v34  ;;  %v2121_v53 = vld [vmem:[#allocation2 + $0x134] sm:$0xf0]  ;;  %v2038_v54 = vld [vmem:[#allocation2 + $0x1b0] sm:$0xf]  ;;  %v1911_v57 = vor.u32 %v2105_v51, %v1910_v49  ;;  %v2087_v60 = vld [vmem:[#allocation2 + $0x24] sm:$0xf0] }
  0x1b   : > { %1220 = vmatpush.bf16.msra.mxu3 %v2055_v38  ;;  %v2137_v55 = vld [vmem:[#allocation2 + $0x1b4] sm:$0xf0]  ;;  %v1975_v58 = vor.u32 %v2121_v53, %v1974_v52  ;;  %v1902_v61 = vld [vmem:[#allocation2 + $0xa0] sm:$0xf]  ;;  %v2103_v63 = vld [vmem:[#allocation2 + $0xa4] sm:$0xf0]  ;;  %v1839_v4 = vor.u32 %v2087_v60, %v1838_v59 }
  0x1c   : > { %1074 = vmatpush.bf16.msra.mxu0 %v1855_v44  ;;  %v2039_v62 = vor.u32 %v2137_v55, %v2038_v54  ;;  %v1966_v0 = vld [vmem:[#allocation2 + $0x120] sm:$0xf]  ;;  %v2119_v1 = vld [vmem:[#allocation2 + $0x124] sm:$0xf0]  ;;  %v1830_v5 = vld [vmem:[#allocation2 + $0x10] sm:$0xf]  ;;  %v1903_v7 = vor.u32 %v2103_v63, %v1902_v61 }
  0x1d   : > { %1123 = vmatpush.bf16.msra.mxu1 %v1919_v45  ;;  %v2030_v2 = vld [vmem:[#allocation2 + $0x1a0] sm:$0xf]  ;;  %v2135_v3 = vld [vmem:[#allocation2 + $0x1a4] sm:$0xf0]  ;;  %v2085_v6 = vld [vmem:[#allocation2 + $0x14] sm:$0xf0]  ;;  %v1967_v8 = vor.u32 %v2119_v1, %v1966_v0 }
  0x1e   : > { %1172 = vmatpush.bf16.msra.mxu2 %v1983_v46  ;;  %v1894_v9 = vld [vmem:[#allocation2 + $0x90] sm:$0xf]  ;;  %v2101_v10 = vld [vmem:[#allocation2 + $0x94] sm:$0xf0]  ;;  %v2031_v12 = vor.u32 %v2135_v3, %v2030_v2  ;;  %v353_v14 = vld [vmem:[%s2936_s1] sm:$0xf]  ;;  %v1831_v20 = vor.u32 %v2085_v6, %v1830_v5 }
  0x1f   : > { %1221 = vmatpush.bf16.msra.mxu3 %v2047_v50  ;;  %v1958_v11 = vld [vmem:[#allocation2 + $0x110] sm:$0xf]  ;;  %v2117_v13 = vld [vmem:[#allocation2 + $0x114] sm:$0xf0]  ;;  %v354_v15 = vld [vmem:[%s2937_s2] sm:$0xf]  ;;  %v1895_v21 = vor.u32 %v2101_v10, %v1894_v9 }
  0x20   : > { %1075 = vmatpush.bf16.msra.mxu0 %v1847_v56  ;;  %v2022_v16 = vld [vmem:[#allocation2 + $0x190] sm:$0xf]  ;;  %v2133_v17 = vld [vmem:[#allocation2 + $0x194] sm:$0xf0]  ;;  %v2287_v18 = vmul.f32 0.00390625, %v353_v14  ;;  %v358_v19 = vmul.f32 0.00390625, %v354_v15  ;;  %v1959_v22 = vor.u32 %v2117_v13, %v1958_v11 }
  0x21   : > { %1124 = vmatpush.bf16.msra.mxu1 %v1911_v57  ;;  %v1822_v23 = vld [vmem:[#allocation2] sm:$0xf]  ;;  %v2083_v24 = vld [vmem:[#allocation2 + $0x4] sm:$0xf0]  ;;  %v2023_v27 = vor.u32 %v2133_v17, %v2022_v16  ;;  %s1814_s22 = sshll.u32 %s2275_s13, 4 }
  0x22   : > { %1173 = vmatpush.bf16.msra.mxu2 %v1975_v58  ;;  %v1886_v25 = vld [vmem:[#allocation2 + $0x80] sm:$0xf]  ;;  %v359_v26 = vmul.f32 %v2287_v18, %v2287_v18  ;;  %v2099_v28 = vld [vmem:[#allocation2 + $0x84] sm:$0xf0]  ;;  %v1823_v34 = vor.u32 %v2083_v24, %v1822_v23  ;;  %v2128_v39 = vld [vmem:[#allocation2 + $0x174] sm:$0xf] }
  0x23   : > { %1222 = vmatpush.bf16.msra.mxu3 %v2039_v62  ;;  %v1950_v29 = vld [vmem:[#allocation2 + $0x100] sm:$0xf]  ;;  %v2115_v30 = vld [vmem:[#allocation2 + $0x104] sm:$0xf0]  ;;  %v1887_v35 = vor.u32 %v2099_v28, %v1886_v25  ;;  %v2008_v40 = vld [vmem:[#allocation2 + $0x178] sm:$0xf0] }
  0x24   : > { %1076 = vmatpush.bf16.msra.mxu0 %v1839_v4  ;;  %v2014_v31 = vld [vmem:[#allocation2 + $0x180] sm:$0xf]  ;;  %v2131_v32 = vld [vmem:[#allocation2 + $0x184] sm:$0xf0]  ;;  %v360_v33 = vsub.f32 %v358_v19, %v359_v26  ;;  %v1951_v36 = vor.u32 %v2115_v30, %v1950_v29  ;;  %v2096_v41 = vld [vmem:[#allocation2 + $0x74] sm:$0xf]  ;;  %v2011_v42 = vor.u32 %v2128_v39, %v2008_v40 }
  0x25   : > { %1125 = vmatpush.bf16.msra.mxu1 %v1903_v7  ;;  %v2015_v38 = vor.u32 %v2131_v32, %v2014_v31  ;;  %v1880_v43 = vld [vmem:[#allocation2 + $0x78] sm:$0xf0]  ;;  %v2144_v44 = vld [vmem:[#allocation2 + $0x1f4] sm:$0xf]  ;;  %p340_p7 = scmp.lt.s32.totalorder %s1814_s22, 31 }
  0x26   : > { %1174 = vmatpush.bf16.msra.mxu2 %v1967_v8  ;;  %v361_v37 = vadd.f32 1e-05, %v360_v33  ;;  %v2072_v45 = vld [vmem:[#allocation2 + $0x1f8] sm:$0xf0]  ;;  %v1883_v46 = vor.u32 %v2096_v41, %v1880_v43  ;;  %v2112_v48 = vld [vmem:[#allocation2 + $0xf4] sm:$0xf] }
  0x27   : > { %1223 = vmatpush.bf16.msra.mxu3 %v2031_v12  ;;  %v2075_v47 = vor.u32 %v2144_v44, %v2072_v45  ;;  %v1944_v49 = vld [vmem:[#allocation2 + $0xf8] sm:$0xf0]  ;;  %s2946_s22 = smov (!%p340_p7, %s1814_s22), 31  ;;  %v355_v56 = vld [vmem:[%s2938_s3] sm:$0xf] }
  0x28   : > { %1077 = vmatpush.bf16.msra.mxu0 %v1831_v20  ;;  %2168 = vrsqrt.f32 %v361_v37  ;;  %v1947_v50 = vor.u32 %v2112_v48, %v1944_v49  ;;  %s2080_s23 = sshll.u32 %s2946_s22, 5  ;;  %vm368_vm0 = vweird.f32 %v361_v37  ;;  %v356_v58 = vld [vmem:[%s2939_s4] sm:$0xf]  ;;  %v2126_v63 = vld [vmem:[#allocation2 + $0x164] sm:$0xf]  ;;  %s2081_s14 = sshll.u32 %s2946_s22, 4 }
  0x29   : > { %1126 = vmatpush.bf16.msra.mxu1 %v1895_v21  ;;  %s2298_s26 = scalar_lea.vmem %s2935_s0, %s2080_s23  ;;  %v2000_v0 = vld [vmem:[#allocation2 + $0x168] sm:$0xf0]  ;;  %v2094_v1 = vld [vmem:[#allocation2 + $0x64] sm:$0xf]  ;;  %s2628_s17 = scalar_lea.vmem %s2942_s7, %s2081_s14 }
  0x2a   : > { %1175 = vmatpush.bf16.msra.mxu2 %v1959_v22  ;;  %v375_v60 = vld [vmem:[%s2298_s26] sm:$0xff]  ;;  %v376_v62 = vld [vmem:[%s2298_s26 + $0x8] sm:$0xff]  ;;  %v2003_v3 = vor.u32 %v2126_v63, %v2000_v0  ;;  %v377_v15 = vld [vmem:[%s2298_s26 + $0x10] sm:$0xff] }
  0x2b   : > { %1224 = vmatpush.bf16.msra.mxu3 %v2023_v27  ;;  %v379_v61 = vld [vmem:[%s2298_s26 + $0x20] sm:$0xff]  ;;  %v1872_v4 = vld [vmem:[#allocation2 + $0x68] sm:$0xf0]  ;;  %v381_v16 = vld [vmem:[%s2298_s26 + $0x30] sm:$0xff] }
  0x2c   : > { %1078 = vmatpush.bf16.msra.mxu0 %v1823_v34  ;;  %v2142_v5 = vld [vmem:[#allocation2 + $0x1e4] sm:$0xf]  ;;  %v2064_v6 = vld [vmem:[#allocation2 + $0x1e8] sm:$0xf0]  ;;  %v1875_v8 = vor.u32 %v2094_v1, %v1872_v4  ;;  %v378_v19 = vld [vmem:[%s2298_s26 + $0x18] sm:$0xff] }
  0x2d   : > { %1127 = vmatpush.bf16.msra.mxu1 %v1887_v35  ;;  %v380_v7 = vld [vmem:[%s2298_s26 + $0x28] sm:$0xff]  ;;  %v2067_v9 = vor.u32 %v2142_v5, %v2064_v6  ;;  %v2110_v10 = vld [vmem:[#allocation2 + $0xe4] sm:$0xf]  ;;  %v382_v20 = vld [vmem:[%s2298_s26 + $0x38] sm:$0xff] }
  0x2e   : > { %1176 = vmatpush.bf16.msra.mxu2 %v1951_v36  ;;  %v2169_v51 = vpop.eup %2168  ;;  %v1936_v11 = vld [vmem:[#allocation2 + $0xe8] sm:$0xf0]  ;;  %v383_v26 = vld [vmem:[%s2298_s26 + $0x40] sm:$0xff]  ;;  %v390_v63 = vld [vmem:[%s2298_s26 + $0x78] sm:$0xff] }
  0x2f   : > { %1225 = vmatpush.bf16.msra.mxu3 %v2015_v38  ;;  %v363_v52 = vmul.f32 %v2169_v51, %v361_v37  ;;  %vm369_vm1 = vweird.f32 %v2169_v51  ;;  %v1939_v22 = vor.u32 %v2110_v10, %v1936_v11  ;;  %v387_v27 = vld [vmem:[%s2298_s26 + $0x60] sm:$0xff]  ;;  %v384_v28 = vld [vmem:[%s2298_s26 + $0x48] sm:$0xff] }
  0x30   : > { %1267 = vmatpush.bf16.msrb.mxu0 %v1883_v46  ;;  %vm370_vm2 = vmor %vm368_vm0, %vm369_vm1 }
  0x31   : > { %1316 = vmatpush.bf16.msrb.mxu1 %v1947_v50  ;;  %v364_v53 = vmul.f32 %v2169_v51, %v363_v52 }
  0x32   : > { %1365 = vmatpush.bf16.msrb.mxu2 %v2011_v42 }
  0x33   : > { %1414 = vmatpush.bf16.msrb.mxu3 %v2075_v47  ;;  %v365_v54 = vmul.f32 0.5, %v364_v53 }
  0x34   : > { %1268 = vmatpush.bf16.msrb.mxu0 %v1875_v8 }
  0x35   : > { %v366_v55 = vsub.f32 1.5, %v365_v54  ;;  %1317 = vmatpush.bf16.msrb.mxu1 %v1939_v22 }
  0x36   : > { %1366 = vmatpush.bf16.msrb.mxu2 %v2003_v3 }
  0x37   : > { %v367_v57 = vmul.f32 %v2169_v51, %v366_v55  ;;  %1415 = vmatpush.bf16.msrb.mxu3 %v2067_v9 }
  0x39   : > { %v371_v59 = vsel %vm370_vm2, %v2169_v51, %v367_v57  ;;  %v388_v57 = vld [vmem:[%s2298_s26 + $0x68] sm:$0xff] }
  0x3a   : > { %v372_v2 = vmul.f32 %v371_v59, %v355_v56 }
  0x3c   : > { %v373_v12 = vmul.f32 %v372_v2, %v2287_v18  ;;  %v2311_v13 = vperm.slane %v372_v2, 0  ;;  %v2313_v14 = vperm.slane %v372_v2, 1  ;;  %v2317_v17 = vperm.slane %v372_v2, 2 }
  0x3d   : > { %v2321_v21 = vperm.slane %v372_v2, 3 }
  0x3e   : > { %v374_v18 = vsub.f32 %v356_v58, %v373_v12  ;;  %v448_v23 = vmul.f32 %v2311_v13, %v375_v60  ;;  %v452_v24 = vmul.f32 %v2311_v13, %v379_v61  ;;  %v449_v25 = vmul.f32 %v2313_v14, %v376_v62  ;;  %v385_v58 = vld [vmem:[%s2298_s26 + $0x50] sm:$0xff]  ;;  %v386_v62 = vld [vmem:[%s2298_s26 + $0x58] sm:$0xff] }
  0x3f   : > { %v453_v29 = vmul.f32 %v2313_v14, %v380_v7  ;;  %v450_v30 = vmul.f32 %v2317_v17, %v377_v15  ;;  %v454_v31 = vmul.f32 %v2317_v17, %v381_v16  ;;  %v451_v32 = vmul.f32 %v2321_v21, %v378_v19  ;;  %v389_v61 = vld [vmem:[%s2298_s26 + $0x70] sm:$0xff] }
  0x40   : > { %v2333_v33 = vperm.slane %v374_v18, 0  ;;  %v2335_v34 = vperm.slane %v374_v18, 1  ;;  %v2337_v35 = vperm.slane %v374_v18, 2  ;;  %v455_v36 = vmul.f32 %v2321_v21, %v382_v20 }
  0x41   : > { %v2340_v37 = vperm.slane %v374_v18, 3  ;;  %v456_v38 = vmul.f32 %v2311_v13, %v383_v26  ;;  %v460_v39 = vmul.f32 %v2311_v13, %v387_v27  ;;  %v457_v40 = vmul.f32 %v2313_v14, %v384_v28  ;;  %v2124_v18 = vld [vmem:[#allocation2 + $0x154] sm:$0xf]  ;;  %v2056_v27 = vld [vmem:[#allocation2 + $0x1d8] sm:$0xf0] }
  0x42   : > { %v521_v41 = vadd.f32 %v2333_v33, %v448_v23  ;;  %v525_v42 = vadd.f32 %v2333_v33, %v452_v24  ;;  %v522_v43 = vadd.f32 %v2335_v34, %v449_v25  ;;  %v526_v44 = vadd.f32 %v2335_v34, %v453_v29  ;;  %v1992_v23 = vld [vmem:[#allocation2 + $0x158] sm:$0xf0]  ;;  %v2092_v24 = vld [vmem:[#allocation2 + $0x54] sm:$0xf] }
  0x43   : > { %v523_v45 = vadd.f32 %v2337_v35, %v450_v30  ;;  %v527_v46 = vadd.f32 %v2337_v35, %v454_v31  ;;  %v524_v47 = vadd.f32 %v2340_v37, %v451_v32  ;;  %v528_v48 = vadd.f32 %v2340_v37, %v455_v36  ;;  %v1864_v25 = vld [vmem:[#allocation2 + $0x58] sm:$0xf0]  ;;  %v2140_v26 = vld [vmem:[#allocation2 + $0x1d4] sm:$0xf] }
  0x44   : > { %v585_v49 = vmax.f32 %v521_v41, 0.0  ;;  %v589_v50 = vmax.f32 %v525_v42, 0.0  ;;  %v586_v51 = vmax.f32 %v522_v43, 0.0  ;;  %v590_v52 = vmax.f32 %v526_v44, 0.0  ;;  %v2108_v30 = vld [vmem:[#allocation2 + $0xd4] sm:$0xf] }
  0x45   : > { %v587_v53 = vmax.f32 %v523_v45, 0.0  ;;  %v591_v54 = vmax.f32 %v527_v46, 0.0  ;;  %v588_v55 = vmax.f32 %v524_v47, 0.0  ;;  %v592_v56 = vmax.f32 %v528_v48, 0.0  ;;  %v1928_v31 = vld [vmem:[#allocation2 + $0xd8] sm:$0xf0] }
  0x46   : > { %v2355_v59 = vpack.c.bf16 %v589_v50, %v585_v49  ;;  %v2357_v60 = vpack.c.bf16 %v590_v52, %v586_v51  ;;  %v529_v2 = vadd.f32 %v2333_v33, %v456_v38  ;;  %v533_v3 = vadd.f32 %v2333_v33, %v460_v39  ;;  %v391_v45 = vld [vmem:[%s2298_s26 + $0x80] sm:$0xff]  ;;  %v392_v49 = vld [vmem:[%s2298_s26 + $0x88] sm:$0xff]  ;;  %v393_v51 = vld [vmem:[%s2298_s26 + $0x90] sm:$0xff] }
  0x47   : > { %v2362_v0 = vpack.c.bf16 %v591_v54, %v587_v53  ;;  %v2364_v1 = vpack.c.bf16 %v592_v56, %v588_v55  ;;  %v461_v4 = vmul.f32 %v2313_v14, %v388_v57  ;;  %v530_v5 = vadd.f32 %v2335_v34, %v457_v40  ;;  %v395_v46 = vld [vmem:[%s2298_s26 + $0xa0] sm:$0xff]  ;;  %v396_v50 = vld [vmem:[%s2298_s26 + $0xa8] sm:$0xff]  ;;  %v397_v52 = vld [vmem:[%s2298_s26 + $0xb0] sm:$0xff] }
  0x48   : > { %1079 = vmatmul.bf16.vlgmr.msra.gmra.mxu0 %v2355_v59  ;;  %1128 = vmatmul.bf16.vlgmr.msra.gmra.mxu1 %v2357_v60  ;;  %v458_v6 = vmul.f32 %v2317_v17, %v385_v58  ;;  %v462_v7 = vmul.f32 %v2317_v17, %v389_v61  ;;  %v459_v8 = vmul.f32 %v2321_v21, %v386_v62  ;;  %v593_v10 = vmax.f32 %v529_v2, 0.0  ;;  %v394_v53 = vld [vmem:[%s2298_s26 + $0x98] sm:$0xff] }
  0x49   : > { %1177 = vmatmul.bf16.vlgmr.msra.gmra.mxu2 %v2362_v0  ;;  %1226 = vmatmul.bf16.vlgmr.msra.gmra.mxu3 %v2364_v1  ;;  %v463_v9 = vmul.f32 %v2321_v21, %v390_v63  ;;  %v597_v11 = vmax.f32 %v533_v3, 0.0  ;;  %v534_v12 = vadd.f32 %v2335_v34, %v461_v4  ;;  %v594_v16 = vmax.f32 %v530_v5, 0.0  ;;  %v398_v54 = vld [vmem:[%s2298_s26 + $0xb8] sm:$0xff]  ;;  %v2122_v3 = vld [vmem:[#allocation2 + $0x144] sm:$0xf] }
  0x4a   : > { %v531_v15 = vadd.f32 %v2337_v35, %v458_v6  ;;  %v535_v19 = vadd.f32 %v2337_v35, %v462_v7  ;;  %v532_v20 = vadd.f32 %v2340_v37, %v459_v8  ;;  %v1995_v39 = vor.u32 %v2124_v18, %v1992_v23  ;;  %v1984_v4 = vld [vmem:[#allocation2 + $0x148] sm:$0xf0]  ;;  %v2090_v6 = vld [vmem:[#allocation2 + $0x44] sm:$0xf] }
  0x4b   : > { %v536_v22 = vadd.f32 %v2340_v37, %v463_v9  ;;  %v598_v28 = vmax.f32 %v534_v12, 0.0  ;;  %v1867_v40 = vor.u32 %v2092_v24, %v1864_v25  ;;  %v2059_v41 = vor.u32 %v2140_v26, %v2056_v27  ;;  %v1856_v7 = vld [vmem:[#allocation2 + $0x48] sm:$0xf0] }
  0x4c   : > { %v595_v29 = vmax.f32 %v531_v15, 0.0  ;;  %v599_v32 = vmax.f32 %v535_v19, 0.0  ;;  %v596_v36 = vmax.f32 %v532_v20, 0.0  ;;  %1367 = vmatpush.bf16.msrb.mxu2 %v1995_v39  ;;  %v1931_v42 = vor.u32 %v2108_v30, %v1928_v31  ;;  %v2048_v12 = vld [vmem:[#allocation2 + $0x1c8] sm:$0xf0] }
  0x4d   : > { %v600_v38 = vmax.f32 %v536_v22, 0.0  ;;  %v2383_v43 = vpack.c.bf16 %v597_v11, %v593_v10  ;;  %v2385_v44 = vpack.c.bf16 %v598_v28, %v594_v16  ;;  %1269 = vmatpush.bf16.msrb.mxu0 %v1867_v40  ;;  %1416 = vmatpush.bf16.msrb.mxu3 %v2059_v41  ;;  %v464_v55 = vmul.f32 %v2311_v13, %v391_v45  ;;  %v2138_v11 = vld [vmem:[#allocation2 + $0x1c4] sm:$0xf]  ;;  %v1920_v18 = vld [vmem:[#allocation2 + $0xc8] sm:$0xf0] }
  0x4e   : > { %v2389_v47 = vpack.c.bf16 %v599_v32, %v595_v29  ;;  %1318 = vmatpush.bf16.msrb.mxu1 %v1931_v42  ;;  %v468_v56 = vmul.f32 %v2311_v13, %v395_v46  ;;  %v465_v57 = vmul.f32 %v2313_v14, %v392_v49  ;;  %v469_v58 = vmul.f32 %v2313_v14, %v396_v50  ;;  %v2106_v22 = vld [vmem:[#allocation2 + $0xc4] sm:$0xf]  ;;  %v400_v49 = vld [vmem:[%s2298_s26 + $0xc8] sm:$0xff] }
  0x4f   : > { %v2391_v48 = vpack.c.bf16 %v600_v38, %v596_v36  ;;  %v466_v61 = vmul.f32 %v2317_v17, %v393_v51  ;;  %v470_v62 = vmul.f32 %v2317_v17, %v397_v52  ;;  %v467_v63 = vmul.f32 %v2321_v21, %v394_v53  ;;  %v399_v41 = vld [vmem:[%s2298_s26 + $0xc0] sm:$0xff]  ;;  %v404_v50 = vld [vmem:[%s2298_s26 + $0xe8] sm:$0xff]  ;;  %v401_v51 = vld [vmem:[%s2298_s26 + $0xd0] sm:$0xff] }
  0x50   : > { %v471_v2 = vmul.f32 %v2321_v21, %v398_v54  ;;  %v1987_v5 = vor.u32 %v2122_v3, %v1984_v4  ;;  %v537_v8 = vadd.f32 %v2333_v33, %v464_v55  ;;  %v541_v9 = vadd.f32 %v2333_v33, %v468_v56  ;;  %v403_v42 = vld [vmem:[%s2298_s26 + $0xe0] sm:$0xff]  ;;  %v405_v52 = vld [vmem:[%s2298_s26 + $0xf0] sm:$0xff]  ;;  %v402_v53 = vld [vmem:[%s2298_s26 + $0xd8] sm:$0xff] }
  0x51   : > { %v1859_v10 = vor.u32 %v2090_v6, %v1856_v7  ;;  %v538_v15 = vadd.f32 %v2335_v34, %v465_v57  ;;  %v542_v16 = vadd.f32 %v2335_v34, %v469_v58  ;;  %v539_v19 = vadd.f32 %v2337_v35, %v466_v61  ;;  %v406_v54 = vld [vmem:[%s2298_s26 + $0xf8] sm:$0xff]  ;;  %v2120_v3 = vld [vmem:[#allocation2 + $0x134] sm:$0xf] }
  0x52   : > { %1368 = vmatpush.bf16.msrb.mxu2 %v1987_v5  ;;  %v2051_v20 = vor.u32 %v2138_v11, %v2048_v12  ;;  %v543_v23 = vadd.f32 %v2337_v35, %v470_v62  ;;  %v540_v24 = vadd.f32 %v2340_v37, %v467_v63  ;;  %v544_v25 = vadd.f32 %v2340_v37, %v471_v2  ;;  %v1976_v4 = vld [vmem:[#allocation2 + $0x138] sm:$0xf0]  ;;  %v2088_v5 = vld [vmem:[#allocation2 + $0x34] sm:$0xf] }
  0x53   : > { %1270 = vmatpush.bf16.msrb.mxu0 %v1859_v10  ;;  %v1923_v26 = vor.u32 %v2106_v22, %v1920_v18  ;;  %v601_v27 = vmax.f32 %v537_v8, 0.0  ;;  %v605_v28 = vmax.f32 %v541_v9, 0.0  ;;  %v602_v29 = vmax.f32 %v538_v15, 0.0  ;;  %v1848_v7 = vld [vmem:[#allocation2 + $0x38] sm:$0xf0] }
  0x54   : > { %1417 = vmatpush.bf16.msrb.mxu3 %v2051_v20  ;;  %v606_v30 = vmax.f32 %v542_v16, 0.0  ;;  %v603_v31 = vmax.f32 %v539_v19, 0.0  ;;  %v607_v32 = vmax.f32 %v543_v23, 0.0  ;;  %v604_v36 = vmax.f32 %v540_v24, 0.0  ;;  %v2136_v8 = vld [vmem:[#allocation2 + $0x1b4] sm:$0xf] }
  0x55   : > { %1319 = vmatpush.bf16.msrb.mxu1 %v1923_v26  ;;  %v608_v38 = vmax.f32 %v544_v25, 0.0  ;;  %v2419_v39 = vpack.c.bf16 %v605_v28, %v601_v27  ;;  %v472_v55 = vmul.f32 %v2311_v13, %v399_v41  ;;  %v476_v56 = vmul.f32 %v2311_v13, %v403_v42  ;;  %v2040_v9 = vld [vmem:[#allocation2 + $0x1b8] sm:$0xf0]  ;;  %v2104_v16 = vld [vmem:[#allocation2 + $0xb4] sm:$0xf] }
  0x56   : > { %v2421_v40 = vpack.c.bf16 %v606_v30, %v602_v29  ;;  %v2425_v45 = vpack.c.bf16 %v607_v32, %v603_v31  ;;  %v473_v57 = vmul.f32 %v2313_v14, %v400_v49  ;;  %v477_v58 = vmul.f32 %v2313_v14, %v404_v50  ;;  %v1912_v19 = vld [vmem:[#allocation2 + $0xb8] sm:$0xf0]  ;;  %v407_v49 = vld [vmem:[%s2298_s26 + $0x100] sm:$0xff] }
  0x57   : > { %v2427_v46 = vpack.c.bf16 %v608_v38, %v604_v36  ;;  %v474_v61 = vmul.f32 %v2317_v17, %v401_v51  ;;  %v478_v62 = vmul.f32 %v2317_v17, %v405_v52  ;;  %v475_v63 = vmul.f32 %v2321_v21, %v402_v53  ;;  %v411_v50 = vld [vmem:[%s2298_s26 + $0x120] sm:$0xff]  ;;  %v408_v53 = vld [vmem:[%s2298_s26 + $0x108] sm:$0xff] }
  0x58   : > { %1084 = vmatmul.bf16.gmra.mxu0 %v2383_v43  ;;  %1133 = vmatmul.bf16.gmra.mxu1 %v2385_v44  ;;  %v479_v2 = vmul.f32 %v2321_v21, %v406_v54  ;;  %v1979_v6 = vor.u32 %v2120_v3, %v1976_v4  ;;  %v545_v10 = vadd.f32 %v2333_v33, %v472_v55  ;;  %v412_v54 = vld [vmem:[%s2298_s26 + $0x128] sm:$0xff]  ;;  %v409_v55 = vld [vmem:[%s2298_s26 + $0x110] sm:$0xff] }
  0x59   : > { %1182 = vmatmul.bf16.gmra.mxu2 %v2389_v47  ;;  %1231 = vmatmul.bf16.gmra.mxu3 %v2391_v48  ;;  %v549_v11 = vadd.f32 %v2333_v33, %v476_v56  ;;  %v1851_v12 = vor.u32 %v2088_v5, %v1848_v7  ;;  %v2043_v15 = vor.u32 %v2136_v8, %v2040_v9  ;;  %v413_v56 = vld [vmem:[%s2298_s26 + $0x130] sm:$0xff]  ;;  %v2118_v7 = vld [vmem:[#allocation2 + $0x124] sm:$0xf]  ;;  %v1968_v8 = vld [vmem:[#allocation2 + $0x128] sm:$0xf0] }
  0x5a   : > { %v546_v20 = vadd.f32 %v2335_v34, %v473_v57  ;;  %v550_v22 = vadd.f32 %v2335_v34, %v477_v58  ;;  %v547_v18 = vadd.f32 %v2337_v35, %v474_v61  ;;  %1369 = vmatpush.bf16.msrb.mxu2 %v1979_v6  ;;  %v1915_v23 = vor.u32 %v2104_v16, %v1912_v19  ;;  %v410_v57 = vld [vmem:[%s2298_s26 + $0x118] sm:$0xff]  ;;  %v2086_v9 = vld [vmem:[#allocation2 + $0x24] sm:$0xf] }
  0x5b   : > { %v551_v24 = vadd.f32 %v2337_v35, %v478_v62  ;;  %v548_v25 = vadd.f32 %v2340_v37, %v475_v63  ;;  %v552_v26 = vadd.f32 %v2340_v37, %v479_v2  ;;  %1271 = vmatpush.bf16.msrb.mxu0 %v1851_v12  ;;  %1418 = vmatpush.bf16.msrb.mxu3 %v2043_v15  ;;  %v609_v27 = vmax.f32 %v545_v10, 0.0  ;;  %v414_v58 = vld [vmem:[%s2298_s26 + $0x138] sm:$0xff]  ;;  %v2134_v12 = vld [vmem:[#allocation2 + $0x1a4] sm:$0xf]  ;;  %v2032_v15 = vld [vmem:[#allocation2 + $0x1a8] sm:$0xf0] }
  0x5c   : > { %1320 = vmatpush.bf16.msrb.mxu1 %v1915_v23  ;;  %v613_v28 = vmax.f32 %v549_v11, 0.0  ;;  %v610_v29 = vmax.f32 %v546_v20, 0.0  ;;  %v614_v30 = vmax.f32 %v550_v22, 0.0  ;;  %v611_v31 = vmax.f32 %v547_v18, 0.0  ;;  %v1840_v11 = vld [vmem:[#allocation2 + $0x28] sm:$0xf0] }
  0x5d   : > { %v615_v32 = vmax.f32 %v551_v24, 0.0  ;;  %v612_v36 = vmax.f32 %v548_v25, 0.0  ;;  %v616_v38 = vmax.f32 %v552_v26, 0.0  ;;  %v480_v61 = vmul.f32 %v2311_v13, %v407_v49  ;;  %v2102_v18 = vld [vmem:[#allocation2 + $0xa4] sm:$0xf] }
  0x5e   : > { %v2455_v41 = vpack.c.bf16 %v613_v28, %v609_v27  ;;  %v2457_v42 = vpack.c.bf16 %v614_v30, %v610_v29  ;;  %v484_v62 = vmul.f32 %v2311_v13, %v411_v50  ;;  %v481_v63 = vmul.f32 %v2313_v14, %v408_v53  ;;  %v1904_v23 = vld [vmem:[#allocation2 + $0xa8] sm:$0xf0] }
  0x5f   : > { %v2461_v51 = vpack.c.bf16 %v615_v32, %v611_v31  ;;  %v2463_v52 = vpack.c.bf16 %v616_v38, %v612_v36  ;;  %v485_v2 = vmul.f32 %v2313_v14, %v412_v54  ;;  %v482_v3 = vmul.f32 %v2317_v17, %v409_v55 }
  0x60   : > { %v486_v4 = vmul.f32 %v2317_v17, %v413_v56  ;;  %v483_v5 = vmul.f32 %v2321_v21, %v410_v57  ;;  %v487_v6 = vmul.f32 %v2321_v21, %v414_v58  ;;  %v1971_v10 = vor.u32 %v2118_v7, %v1968_v8  ;;  %v415_v57 = vld [vmem:[%s2298_s26 + $0x140] sm:$0xff] }
  0x61   : > { %v553_v16 = vadd.f32 %v2333_v33, %v480_v61  ;;  %v557_v19 = vadd.f32 %v2333_v33, %v484_v62  ;;  %v1843_v20 = vor.u32 %v2086_v9, %v1840_v11  ;;  %v2035_v22 = vor.u32 %v2134_v12, %v2032_v15  ;;  %v419_v58 = vld [vmem:[%s2298_s26 + $0x160] sm:$0xff] }
  0x62   : > { %v554_v24 = vadd.f32 %v2335_v34, %v481_v63  ;;  %v558_v25 = vadd.f32 %v2335_v34, %v485_v2  ;;  %v555_v26 = vadd.f32 %v2337_v35, %v482_v3  ;;  %1370 = vmatpush.bf16.msrb.mxu2 %v1971_v10  ;;  %v1907_v27 = vor.u32 %v2102_v18, %v1904_v23  ;;  %v416_v63 = vld [vmem:[%s2298_s26 + $0x148] sm:$0xff]  ;;  %v417_v3 = vld [vmem:[%s2298_s26 + $0x150] sm:$0xff]  ;;  %v1832_v23 = vld [vmem:[#allocation2 + $0x18] sm:$0xf0] }
  0x63   : > { %v559_v28 = vadd.f32 %v2337_v35, %v486_v4  ;;  %v556_v29 = vadd.f32 %v2340_v37, %v483_v5  ;;  %v560_v30 = vadd.f32 %v2340_v37, %v487_v6  ;;  %1272 = vmatpush.bf16.msrb.mxu0 %v1843_v20  ;;  %1419 = vmatpush.bf16.msrb.mxu3 %v2035_v22  ;;  %v617_v31 = vmax.f32 %v553_v16, 0.0  ;;  %v420_v2 = vld [vmem:[%s2298_s26 + $0x168] sm:$0xff]  ;;  %v421_v4 = vld [vmem:[%s2298_s26 + $0x170] sm:$0xff]  ;;  %v418_v5 = vld [vmem:[%s2298_s26 + $0x158] sm:$0xff] }
  0x64   : > { %1321 = vmatpush.bf16.msrb.mxu1 %v1907_v27  ;;  %v621_v32 = vmax.f32 %v557_v19, 0.0  ;;  %v618_v36 = vmax.f32 %v554_v24, 0.0  ;;  %v622_v38 = vmax.f32 %v558_v25, 0.0  ;;  %v619_v49 = vmax.f32 %v555_v26, 0.0  ;;  %v422_v6 = vld [vmem:[%s2298_s26 + $0x178] sm:$0xff] }
  0x65   : > { %v623_v50 = vmax.f32 %v559_v28, 0.0  ;;  %v620_v53 = vmax.f32 %v556_v29, 0.0  ;;  %v624_v54 = vmax.f32 %v560_v30, 0.0  ;;  %v488_v7 = vmul.f32 %v2311_v13, %v415_v57  ;;  %v2116_v19 = vld [vmem:[#allocation2 + $0x114] sm:$0xf] }
  0x66   : > { %v2491_v55 = vpack.c.bf16 %v621_v32, %v617_v31  ;;  %v2493_v56 = vpack.c.bf16 %v622_v38, %v618_v36  ;;  %v492_v8 = vmul.f32 %v2311_v13, %v419_v58  ;;  %v489_v9 = vmul.f32 %v2313_v14, %v416_v63  ;;  %v1960_v20 = vld [vmem:[#allocation2 + $0x118] sm:$0xf0]  ;;  %v2084_v22 = vld [vmem:[#allocation2 + $0x14] sm:$0xf] }
  0x67   : > { %v2497_v61 = vpack.c.bf16 %v623_v50, %v619_v49  ;;  %v2499_v62 = vpack.c.bf16 %v624_v54, %v620_v53  ;;  %v493_v10 = vmul.f32 %v2313_v14, %v420_v2  ;;  %v490_v11 = vmul.f32 %v2317_v17, %v417_v3  ;;  %v2132_v24 = vld [vmem:[#allocation2 + $0x194] sm:$0xf]  ;;  %v2024_v25 = vld [vmem:[#allocation2 + $0x198] sm:$0xf0] }
  0x68   : > { %1089 = vmatmul.bf16.gmra.mxu0 %v2419_v39  ;;  %1138 = vmatmul.bf16.gmra.mxu1 %v2421_v40  ;;  %v494_v12 = vmul.f32 %v2317_v17, %v421_v4  ;;  %v491_v15 = vmul.f32 %v2321_v21, %v418_v5  ;;  %v495_v16 = vmul.f32 %v2321_v21, %v422_v6  ;;  %v2100_v30 = vld [vmem:[#allocation2 + $0x94] sm:$0xf]  ;;  %v1896_v31 = vld [vmem:[#allocation2 + $0x98] sm:$0xf0] }
  0x69   : > { %1187 = vmatmul.bf16.gmra.mxu2 %v2425_v45  ;;  %1236 = vmatmul.bf16.gmra.mxu3 %v2427_v46  ;;  %v1963_v18 = vor.u32 %v2116_v19, %v1960_v20  ;;  %v561_v26 = vadd.f32 %v2333_v33, %v488_v7  ;;  %v565_v27 = vadd.f32 %v2333_v33, %v492_v8  ;;  %v425_v19 = vld [vmem:[%s2298_s26 + $0x190] sm:$0xff] }
  0x6a   : > { %v1835_v28 = vor.u32 %v2084_v22, %v1832_v23  ;;  %v2027_v29 = vor.u32 %v2132_v24, %v2024_v25  ;;  %v562_v32 = vadd.f32 %v2335_v34, %v489_v9  ;;  %v566_v36 = vadd.f32 %v2335_v34, %v493_v10  ;;  %v423_v9 = vld [vmem:[%s2298_s26 + $0x180] sm:$0xff]  ;;  %v429_v20 = vld [vmem:[%s2298_s26 + $0x1b0] sm:$0xff]  ;;  %v426_v22 = vld [vmem:[%s2298_s26 + $0x198] sm:$0xff] }
  0x6b   : > { %v563_v38 = vadd.f32 %v2337_v35, %v490_v11  ;;  %1371 = vmatpush.bf16.msrb.mxu2 %v1963_v18  ;;  %v1899_v49 = vor.u32 %v2100_v30, %v1896_v31  ;;  %v567_v50 = vadd.f32 %v2337_v35, %v494_v12  ;;  %v564_v53 = vadd.f32 %v2340_v37, %v491_v15  ;;  %v427_v10 = vld [vmem:[%s2298_s26 + $0x1a0] sm:$0xff]  ;;  %v424_v15 = vld [vmem:[%s2298_s26 + $0x188] sm:$0xff]  ;;  %v430_v18 = vld [vmem:[%s2298_s26 + $0x1b8] sm:$0xff] }
  0x6c   : > { %v568_v54 = vadd.f32 %v2340_v37, %v495_v16  ;;  %1273 = vmatpush.bf16.msrb.mxu0 %v1835_v28  ;;  %1420 = vmatpush.bf16.msrb.mxu3 %v2027_v29  ;;  %v625_v57 = vmax.f32 %v561_v26, 0.0  ;;  %v629_v58 = vmax.f32 %v565_v27, 0.0  ;;  %v626_v63 = vmax.f32 %v562_v32, 0.0  ;;  %v428_v16 = vld [vmem:[%s2298_s26 + $0x1a8] sm:$0xff]  ;;  %v2114_v31 = vld [vmem:[#allocation2 + $0x104] sm:$0xf] }
  0x6d   : > { %1322 = vmatpush.bf16.msrb.mxu1 %v1899_v49  ;;  %v630_v2 = vmax.f32 %v566_v36, 0.0  ;;  %v627_v3 = vmax.f32 %v563_v38, 0.0  ;;  %v631_v4 = vmax.f32 %v567_v50, 0.0  ;;  %v628_v5 = vmax.f32 %v564_v53, 0.0  ;;  %v1952_v32 = vld [vmem:[#allocation2 + $0x108] sm:$0xf0] }
  0x6e   : > { %v632_v6 = vmax.f32 %v568_v54, 0.0  ;;  %v2527_v7 = vpack.c.bf16 %v629_v58, %v625_v57  ;;  %v496_v23 = vmul.f32 %v2311_v13, %v423_v9  ;;  %v500_v24 = vmul.f32 %v2311_v13, %v427_v10  ;;  %v2082_v36 = vld [vmem:[#allocation2 + $0x4] sm:$0xf]  ;;  %v1824_v49 = vld [vmem:[#allocation2 + $0x8] sm:$0xf0] }
  0x6f   : > { %v2529_v8 = vpack.c.bf16 %v630_v2, %v626_v63  ;;  %v2533_v11 = vpack.c.bf16 %v631_v4, %v627_v3  ;;  %v497_v25 = vmul.f32 %v2313_v14, %v424_v15  ;;  %v501_v26 = vmul.f32 %v2313_v14, %v428_v16  ;;  %v2130_v50 = vld [vmem:[#allocation2 + $0x184] sm:$0xf]  ;;  %v2016_v53 = vld [vmem:[#allocation2 + $0x188] sm:$0xf0] }
  0x70   : > { %v2535_v12 = vpack.c.bf16 %v632_v6, %v628_v5  ;;  %v498_v27 = vmul.f32 %v2317_v17, %v425_v19  ;;  %v502_v28 = vmul.f32 %v2317_v17, %v429_v20  ;;  %v499_v29 = vmul.f32 %v2321_v21, %v426_v22  ;;  %v2098_v2 = vld [vmem:[#allocation2 + $0x84] sm:$0xf]  ;;  %v1888_v3 = vld [vmem:[#allocation2 + $0x88] sm:$0xf0] }
  0x71   : > { %v503_v30 = vmul.f32 %v2321_v21, %v430_v18  ;;  %v1955_v38 = vor.u32 %v2114_v31, %v1952_v32  ;;  %v569_v54 = vadd.f32 %v2333_v33, %v496_v23  ;;  %v573_v57 = vadd.f32 %v2333_v33, %v500_v24 }
  0x72   : > { %v1827_v58 = vor.u32 %v2082_v36, %v1824_v49  ;;  %v2019_v63 = vor.u32 %v2130_v50, %v2016_v53  ;;  %v570_v4 = vadd.f32 %v2335_v34, %v497_v25  ;;  %v574_v5 = vadd.f32 %v2335_v34, %v501_v26  ;;  %v432_v36 = vld [vmem:[%s2298_s26 + $0x1c8] sm:$0xff]  ;;  %v433_v49 = vld [vmem:[%s2298_s26 + $0x1d0] sm:$0xff]  ;;  %v434_v53 = vld [vmem:[%s2298_s26 + $0x1d8] sm:$0xff] }
  0x73   : > { %v571_v6 = vadd.f32 %v2337_v35, %v498_v27  ;;  %1372 = vmatpush.bf16.msrb.mxu2 %v1955_v38  ;;  %v1891_v9 = vor.u32 %v2098_v2, %v1888_v3  ;;  %v575_v10 = vadd.f32 %v2337_v35, %v502_v28  ;;  %v572_v15 = vadd.f32 %v2340_v37, %v499_v29  ;;  %v431_v29 = vld [vmem:[%s2298_s26 + $0x1c0] sm:$0xff]  ;;  %v436_v38 = vld [vmem:[%s2298_s26 + $0x1e8] sm:$0xff]  ;;  %v437_v50 = vld [vmem:[%s2298_s26 + $0x1f0] sm:$0xff] }
  0x74   : > { %v576_v16 = vadd.f32 %v2340_v37, %v503_v30  ;;  %1274 = vmatpush.bf16.msrb.mxu0 %v1827_v58  ;;  %1421 = vmatpush.bf16.msrb.mxu3 %v2019_v63  ;;  %v633_v19 = vmax.f32 %v569_v54, 0.0  ;;  %v637_v20 = vmax.f32 %v573_v57, 0.0  ;;  %v634_v22 = vmax.f32 %v570_v4, 0.0  ;;  %v435_v30 = vld [vmem:[%s2298_s26 + $0x1e0] sm:$0xff]  ;;  %v438_v54 = vld [vmem:[%s2298_s26 + $0x1f8] sm:$0xff] }
  0x75   : > { %1323 = vmatpush.bf16.msrb.mxu1 %v1891_v9  ;;  %v638_v18 = vmax.f32 %v574_v5, 0.0  ;;  %v635_v23 = vmax.f32 %v571_v6, 0.0  ;;  %v639_v24 = vmax.f32 %v575_v10, 0.0  ;;  %v636_v25 = vmax.f32 %v572_v15, 0.0 }
  0x76   : > { %v640_v26 = vmax.f32 %v576_v16, 0.0  ;;  %v2563_v27 = vpack.c.bf16 %v637_v20, %v633_v19  ;;  %v504_v57 = vmul.f32 %v2311_v13, %v431_v29  ;;  %v508_v58 = vmul.f32 %v2311_v13, %v435_v30 }
  0x77   : > { %v2565_v28 = vpack.c.bf16 %v638_v18, %v634_v22  ;;  %v2569_v31 = vpack.c.bf16 %v639_v24, %v635_v23  ;;  %v505_v63 = vmul.f32 %v2313_v14, %v432_v36  ;;  %v509_v2 = vmul.f32 %v2313_v14, %v436_v38 }
  0x78   : > { %1094 = vmatmul.bf16.gmra.mxu0 %v2455_v41  ;;  %1143 = vmatmul.bf16.gmra.mxu1 %v2457_v42  ;;  %v2571_v32 = vpack.c.bf16 %v640_v26, %v636_v25  ;;  %v506_v3 = vmul.f32 %v2317_v17, %v433_v49  ;;  %v510_v4 = vmul.f32 %v2317_v17, %v437_v50 }
  0x79   : > { %1192 = vmatmul.bf16.gmra.mxu2 %v2461_v51  ;;  %1241 = vmatmul.bf16.gmra.mxu3 %v2463_v52  ;;  %v507_v5 = vmul.f32 %v2321_v21, %v434_v53  ;;  %v511_v13 = vmul.f32 %v2321_v21, %v438_v54  ;;  %v577_v6 = vadd.f32 %v2333_v33, %v504_v57 }
  0x7a   : > { %v581_v9 = vadd.f32 %v2333_v33, %v508_v58  ;;  %v578_v10 = vadd.f32 %v2335_v34, %v505_v63  ;;  %v582_v14 = vadd.f32 %v2335_v34, %v509_v2  ;;  %v579_v15 = vadd.f32 %v2337_v35, %v506_v3 }
  0x7b   : > { %v583_v16 = vadd.f32 %v2337_v35, %v510_v4  ;;  %v580_v19 = vadd.f32 %v2340_v37, %v507_v5  ;;  %v584_v17 = vadd.f32 %v2340_v37, %v511_v13  ;;  %v641_v20 = vmax.f32 %v577_v6, 0.0  ;;  %v2614_v37 = vld [vmem:[%s2941_s6] sm:$0x3] }
  0x7c   : > { %v645_v22 = vmax.f32 %v581_v9, 0.0  ;;  %v642_v18 = vmax.f32 %v578_v10, 0.0  ;;  %v646_v21 = vmax.f32 %v582_v14, 0.0  ;;  %v643_v23 = vmax.f32 %v579_v15, 0.0 }
  0x7d   : > { %v647_v24 = vmax.f32 %v583_v16, 0.0  ;;  %v644_v25 = vmax.f32 %v580_v19, 0.0  ;;  %v648_v33 = vmax.f32 %v584_v17, 0.0  ;;  %v2617_v30 = vperm.slane %v2614_v37, 0 }
  0x7e   : > { %v2599_v26 = vpack.c.bf16 %v645_v22, %v641_v20  ;;  %v2601_v29 = vpack.c.bf16 %v646_v21, %v642_v18 }
  0x7f   : > { %v2603_v34 = vpack.c.bf16 %v647_v24, %v643_v23  ;;  %v2605_v35 = vpack.c.bf16 %v648_v33, %v644_v25 }
  0x88   : > { %1099 = vmatmul.bf16.gmra.mxu0 %v2491_v55  ;;  %1148 = vmatmul.bf16.gmra.mxu1 %v2493_v56 }
  0x89   : > { %1197 = vmatmul.bf16.gmra.mxu2 %v2497_v61  ;;  %1246 = vmatmul.bf16.gmra.mxu3 %v2499_v62 }
  0x98   : > { %1104 = vmatmul.bf16.gmra.mxu0 %v2527_v7  ;;  %1153 = vmatmul.bf16.gmra.mxu1 %v2529_v8 }
  0x99   : > { %1202 = vmatmul.bf16.gmra.mxu2 %v2533_v11  ;;  %1251 = vmatmul.bf16.gmra.mxu3 %v2535_v12 }
  0xa8   : > { %1109 = vmatmul.bf16.gmra.mxu0 %v2563_v27  ;;  %1158 = vmatmul.bf16.gmra.mxu1 %v2565_v28 }
  0xa9   : > { %1207 = vmatmul.bf16.gmra.mxu2 %v2569_v31  ;;  %1256 = vmatmul.bf16.gmra.mxu3 %v2571_v32 }
  0xb8   : > { %1114 = vmatmul.bf16.gmra.mxu0 %v2599_v26  ;;  %1163 = vmatmul.bf16.gmra.mxu1 %v2601_v29 }
  0xb9   : > { %1212 = vmatmul.bf16.gmra.mxu2 %v2603_v34  ;;  %1261 = vmatmul.bf16.gmra.mxu3 %v2605_v35 }
  0xc5   : > { %v1080_v36 = vpop.f32.mrf.mxu0  ;;  %v1129_v38 = vpop.f32.mrf.mxu1 }
  0xc6   : > { %v1081_v49 = vadd.f32 %v1080_v36, %v2617_v30 }
  0xc8   : > { %1275 = vmatmul.bf16.vlgmr.msrb.gmra.mxu0 %v2355_v59  ;;  %1324 = vmatmul.bf16.vlgmr.msrb.gmra.mxu1 %v2357_v60  ;;  %v1130_v50 = vadd.f32 %v1129_v38, %v1081_v49 }
  0xc9   : > { %1373 = vmatmul.bf16.vlgmr.msrb.gmra.mxu2 %v2362_v0  ;;  %1422 = vmatmul.bf16.vlgmr.msrb.gmra.mxu3 %v2364_v1 }
  0xcc   : > { %v1178_v53 = vpop.f32.mrf.mxu2  ;;  %v1227_v54 = vpop.f32.mrf.mxu3 }
  0xcd   : > { %v1179_v57 = vadd.f32 %v1178_v53, %v1130_v50  ;;  %v1082_v58 = vpop.f32.mrf.mxu0  ;;  %v1131_v63 = vpop.f32.mrf.mxu1 }
  0xce   : > { %v1083_v60 = vadd.f32 %v1082_v58, %v2617_v30 }
  0xcf   : > { %v2630_v59 = vadd.f32 %v1227_v54, %v1179_v57 }
  0xd0   : > { %v1132_v0 = vadd.f32 %v1131_v63, %v1083_v60 }
  0xd1   : > { %1463 = vst [vmem:[%s2628_s17] sm:$0xff] %v2630_v59 }
  0xd4   : > { %v1180_v1 = vpop.f32.mrf.mxu2  ;;  %v1229_v2 = vpop.f32.mrf.mxu3 }
  0xd5   : > { %v1181_v3 = vadd.f32 %v1180_v1, %v1132_v0  ;;  %v1085_v4 = vpop.f32.mrf.mxu0  ;;  %v1134_v5 = vpop.f32.mrf.mxu1 }
  0xd6   : > { %v1086_v13 = vadd.f32 %v1085_v4, %v2617_v30 }
  0xd7   : > { %v2636_v6 = vadd.f32 %v1229_v2, %v1181_v3 }
  0xd8   : > { %1280 = vmatmul.bf16.gmra.mxu0 %v2383_v43  ;;  %1329 = vmatmul.bf16.gmra.mxu1 %v2385_v44  ;;  %v1135_v9 = vadd.f32 %v1134_v5, %v1086_v13 }
  0xd9   : > { %1465 = vst [vmem:[%s2628_s17 + $0x10] sm:$0xff] %v2636_v6  ;;  %1378 = vmatmul.bf16.gmra.mxu2 %v2389_v47  ;;  %1427 = vmatmul.bf16.gmra.mxu3 %v2391_v48 }
  0xdc   : > { %v1183_v10 = vpop.f32.mrf.mxu2  ;;  %v1232_v14 = vpop.f32.mrf.mxu3 }
  0xdd   : > { %v1184_v15 = vadd.f32 %v1183_v10, %v1135_v9  ;;  %v1087_v16 = vpop.f32.mrf.mxu0  ;;  %v1136_v19 = vpop.f32.mrf.mxu1 }
  0xde   : > { %v1088_v20 = vadd.f32 %v1087_v16, %v2617_v30 }
  0xdf   : > { %v2644_v17 = vadd.f32 %v1232_v14, %v1184_v15 }
  0xe0   : > { %v1137_v43 = vadd.f32 %v1136_v19, %v1088_v20 }
  0xe1   : > { %1467 = vst [vmem:[%s2628_s17 + $0x20] sm:$0xff] %v2644_v17 }
  0xe4   : > { %v1185_v44 = vpop.f32.mrf.mxu2  ;;  %v1234_v22 = vpop.f32.mrf.mxu3 }
  0xe5   : > { %v1186_v18 = vadd.f32 %v1185_v44, %v1137_v43  ;;  %v1090_v21 = vpop.f32.mrf.mxu0  ;;  %v1139_v47 = vpop.f32.mrf.mxu1 }
  0xe6   : > { %v1091_v48 = vadd.f32 %v1090_v21, %v2617_v30 }
  0xe7   : > { %v2650_v23 = vadd.f32 %v1234_v22, %v1186_v18 }
  0xe8   : > { %1285 = vmatmul.bf16.gmra.mxu0 %v2419_v39  ;;  %1334 = vmatmul.bf16.gmra.mxu1 %v2421_v40  ;;  %v1140_v24 = vadd.f32 %v1139_v47, %v1091_v48 }
  0xe9   : > { %1469 = vst [vmem:[%s2628_s17 + $0x30] sm:$0xff] %v2650_v23  ;;  %1383 = vmatmul.bf16.gmra.mxu2 %v2425_v45  ;;  %1432 = vmatmul.bf16.gmra.mxu3 %v2427_v46 }
  0xec   : > { %v1188_v25 = vpop.f32.mrf.mxu2  ;;  %v1237_v33 = vpop.f32.mrf.mxu3 }
  0xed   : > { %v1189_v36 = vadd.f32 %v1188_v25, %v1140_v24  ;;  %v1092_v38 = vpop.f32.mrf.mxu0  ;;  %v1141_v49 = vpop.f32.mrf.mxu1 }
  0xee   : > { %v1093_v53 = vadd.f32 %v1092_v38, %v2617_v30 }
  0xef   : > { %v2658_v50 = vadd.f32 %v1237_v33, %v1189_v36 }
  0xf0   : > { %v1142_v39 = vadd.f32 %v1141_v49, %v1093_v53 }
  0xf1   : > { %1471 = vst [vmem:[%s2628_s17 + $0x40] sm:$0xff] %v2658_v50 }
  0xf4   : > { %v1190_v40 = vpop.f32.mrf.mxu2  ;;  %v1239_v54 = vpop.f32.mrf.mxu3 }
  0xf5   : > { %v1191_v57 = vadd.f32 %v1190_v40, %v1142_v39  ;;  %v1095_v58 = vpop.f32.mrf.mxu0  ;;  %v1144_v45 = vpop.f32.mrf.mxu1 }
  0xf6   : > { %v1096_v46 = vadd.f32 %v1095_v58, %v2617_v30 }
  0xf7   : > { %v2664_v63 = vadd.f32 %v1239_v54, %v1191_v57 }
  0xf8   : > { %1290 = vmatmul.bf16.gmra.mxu0 %v2455_v41  ;;  %1339 = vmatmul.bf16.gmra.mxu1 %v2457_v42  ;;  %v1145_v60 = vadd.f32 %v1144_v45, %v1096_v46 }
  0xf9   : > { %1473 = vst [vmem:[%s2628_s17 + $0x50] sm:$0xff] %v2664_v63  ;;  %1388 = vmatmul.bf16.gmra.mxu2 %v2461_v51  ;;  %1437 = vmatmul.bf16.gmra.mxu3 %v2463_v52 }
  0xfc   : > { %v1193_v0 = vpop.f32.mrf.mxu2  ;;  %v1242_v1 = vpop.f32.mrf.mxu3 }
  0xfd   : > { %v1194_v2 = vadd.f32 %v1193_v0, %v1145_v60  ;;  %v1097_v3 = vpop.f32.mrf.mxu0  ;;  %v1146_v4 = vpop.f32.mrf.mxu1 }
  0xfe   : > { %v1098_v13 = vadd.f32 %v1097_v3, %v2617_v30 }
  0xff   : > { %v2672_v5 = vadd.f32 %v1242_v1, %v1194_v2 }
 0x100   : > { %v1147_v41 = vadd.f32 %v1146_v4, %v1098_v13 }
 0x101   : > { %1475 = vst [vmem:[%s2628_s17 + $0x60] sm:$0xff] %v2672_v5 }
 0x104   : > { %v1195_v42 = vpop.f32.mrf.mxu2  ;;  %v1244_v9 = vpop.f32.mrf.mxu3 }
 0x105   : > { %v1196_v10 = vadd.f32 %v1195_v42, %v1147_v41  ;;  %v1100_v14 = vpop.f32.mrf.mxu0  ;;  %v1149_v51 = vpop.f32.mrf.mxu1 }
 0x106   : > { %v1101_v52 = vadd.f32 %v1100_v14, %v2617_v30 }
 0x107   : > { %v2678_v15 = vadd.f32 %v1244_v9, %v1196_v10 }
 0x108   : > { %1295 = vmatmul.bf16.gmra.mxu0 %v2491_v55  ;;  %1344 = vmatmul.bf16.gmra.mxu1 %v2493_v56  ;;  %v1150_v16 = vadd.f32 %v1149_v51, %v1101_v52 }
 0x109   : > { %1477 = vst [vmem:[%s2628_s17 + $0x70] sm:$0xff] %v2678_v15  ;;  %1393 = vmatmul.bf16.gmra.mxu2 %v2497_v61  ;;  %1442 = vmatmul.bf16.gmra.mxu3 %v2499_v62 }
 0x10c   : > { %v1198_v19 = vpop.f32.mrf.mxu2  ;;  %v1247_v20 = vpop.f32.mrf.mxu3 }
 0x10d   : > { %v1199_v43 = vadd.f32 %v1198_v19, %v1150_v16  ;;  %v1102_v44 = vpop.f32.mrf.mxu0  ;;  %v1151_v22 = vpop.f32.mrf.mxu1 }
 0x10e   : > { %v1103_v21 = vadd.f32 %v1102_v44, %v2617_v30 }
 0x10f   : > { %v2686_v18 = vadd.f32 %v1247_v20, %v1199_v43 }
 0x110   : > { %v1152_v55 = vadd.f32 %v1151_v22, %v1103_v21 }
 0x111   : > { %1479 = vst [vmem:[%s2628_s17 + $0x80] sm:$0xff] %v2686_v18 }
 0x114   : > { %v1200_v56 = vpop.f32.mrf.mxu2  ;;  %v1249_v47 = vpop.f32.mrf.mxu3 }
 0x115   : > { %v1201_v48 = vadd.f32 %v1200_v56, %v1152_v55  ;;  %v1105_v24 = vpop.f32.mrf.mxu0  ;;  %v1154_v61 = vpop.f32.mrf.mxu1 }
 0x116   : > { %v1106_v62 = vadd.f32 %v1105_v24, %v2617_v30 }
 0x117   : > { %v2692_v25 = vadd.f32 %v1249_v47, %v1201_v48 }
 0x118   : > { %1300 = vmatmul.bf16.gmra.mxu0 %v2527_v7  ;;  %1349 = vmatmul.bf16.gmra.mxu1 %v2529_v8  ;;  %v1155_v33 = vadd.f32 %v1154_v61, %v1106_v62 }
 0x119   : > { %1481 = vst [vmem:[%s2628_s17 + $0x90] sm:$0xff] %v2692_v25  ;;  %1398 = vmatmul.bf16.gmra.mxu2 %v2533_v11  ;;  %1447 = vmatmul.bf16.gmra.mxu3 %v2535_v12 }
 0x11c   : > { %v1203_v36 = vpop.f32.mrf.mxu2  ;;  %v1252_v38 = vpop.f32.mrf.mxu3 }
 0x11d   : > { %v1204_v49 = vadd.f32 %v1203_v36, %v1155_v33  ;;  %v1107_v53 = vpop.f32.mrf.mxu0  ;;  %v1156_v39 = vpop.f32.mrf.mxu1 }
 0x11e   : > { %v1108_v54 = vadd.f32 %v1107_v53, %v2617_v30 }
 0x11f   : > { %v2700_v40 = vadd.f32 %v1252_v38, %v1204_v49 }
 0x120   : > { %v1157_v7 = vadd.f32 %v1156_v39, %v1108_v54 }
 0x121   : > { %1483 = vst [vmem:[%s2628_s17 + $0xa0] sm:$0xff] %v2700_v40 }
 0x124   : > { %v1205_v8 = vpop.f32.mrf.mxu2  ;;  %v1254_v57 = vpop.f32.mrf.mxu3 }
 0x125   : > { %v1206_v58 = vadd.f32 %v1205_v8, %v1157_v7  ;;  %v1110_v45 = vpop.f32.mrf.mxu0  ;;  %v1159_v11 = vpop.f32.mrf.mxu1 }
 0x126   : > { %v1111_v12 = vadd.f32 %v1110_v45, %v2617_v30 }
 0x127   : > { %v2706_v46 = vadd.f32 %v1254_v57, %v1206_v58 }
 0x128   : > { %1305 = vmatmul.bf16.gmra.mxu0 %v2563_v27  ;;  %1354 = vmatmul.bf16.gmra.mxu1 %v2565_v28  ;;  %v1160_v60 = vadd.f32 %v1159_v11, %v1111_v12 }
 0x129   : > { %1485 = vst [vmem:[%s2628_s17 + $0xb0] sm:$0xff] %v2706_v46  ;;  %1403 = vmatmul.bf16.gmra.mxu2 %v2569_v31  ;;  %1452 = vmatmul.bf16.gmra.mxu3 %v2571_v32 }
 0x12c   : > { %v1208_v0 = vpop.f32.mrf.mxu2  ;;  %v1257_v1 = vpop.f32.mrf.mxu3 }
 0x12d   : > { %v1209_v2 = vadd.f32 %v1208_v0, %v1160_v60  ;;  %v1112_v3 = vpop.f32.mrf.mxu0  ;;  %v1161_v4 = vpop.f32.mrf.mxu1 }
 0x12e   : > { %v1113_v41 = vadd.f32 %v1112_v3, %v2617_v30 }
 0x12f   : > { %v2714_v13 = vadd.f32 %v1257_v1, %v1209_v2 }
 0x130   : > { %v1162_v27 = vadd.f32 %v1161_v4, %v1113_v41 }
 0x131   : > { %1487 = vst [vmem:[%s2628_s17 + $0xc0] sm:$0xff] %v2714_v13 }
 0x134   : > { %v1210_v28 = vpop.f32.mrf.mxu2  ;;  %v1259_v42 = vpop.f32.mrf.mxu3 }
 0x135   : > { %v1211_v9 = vadd.f32 %v1210_v28, %v1162_v27  ;;  %v1115_v10 = vpop.f32.mrf.mxu0  ;;  %v1164_v31 = vpop.f32.mrf.mxu1 }
 0x136   : > { %v1116_v32 = vadd.f32 %v1115_v10, %v2617_v30 }
 0x137   : > { %v2720_v14 = vadd.f32 %v1259_v42, %v1211_v9 }
 0x138   : > { %1310 = vmatmul.bf16.gmra.mxu0 %v2599_v26  ;;  %1359 = vmatmul.bf16.gmra.mxu1 %v2601_v29  ;;  %v1165_v51 = vadd.f32 %v1164_v31, %v1116_v32  ;;  %v2734_v26 = vperm.slane %v2614_v37, 1 }
 0x139   : > { %1489 = vst [vmem:[%s2628_s17 + $0xd0] sm:$0xff] %v2720_v14  ;;  %1408 = vmatmul.bf16.gmra.mxu2 %v2603_v34  ;;  %1457 = vmatmul.bf16.gmra.mxu3 %v2605_v35 }
 0x13c   : > { %v1213_v52 = vpop.f32.mrf.mxu2  ;;  %v1262_v16 = vpop.f32.mrf.mxu3 }
 0x13d   : > { %v1214_v19 = vadd.f32 %v1213_v52, %v1165_v51  ;;  %v1117_v20 = vpop.f32.mrf.mxu0  ;;  %v1166_v43 = vpop.f32.mrf.mxu1 }
 0x13e   : > { %v1118_v22 = vadd.f32 %v1117_v20, %v2617_v30 }
 0x13f   : > { %v2728_v44 = vadd.f32 %v1262_v16, %v1214_v19 }
 0x140   : > { %v1167_v29 = vadd.f32 %v1166_v43, %v1118_v22 }
 0x141   : > { %1491 = vst [vmem:[%s2628_s17 + $0xe0] sm:$0xff] %v2728_v44 }
 0x144   : > { %v1215_v21 = vpop.f32.mrf.mxu2  ;;  %v1264_v34 = vpop.f32.mrf.mxu3 }
 0x145   : > { %v1216_v35 = vadd.f32 %v1215_v21, %v1167_v29  ;;  %v1276_v55 = vpop.f32.mrf.mxu0  ;;  %v1325_v56 = vpop.f32.mrf.mxu1 }
 0x146   : > { %v1277_v47 = vadd.f32 %v1276_v55, %v2734_v26 }
 0x147   : > { %v2737_v48 = vadd.f32 %v1264_v34, %v1216_v35 }
 0x148   : > { %v1326_v24 = vadd.f32 %v1325_v56, %v1277_v47 }
 0x149   : > { %1493 = vst [vmem:[%s2628_s17 + $0xf0] sm:$0xff] %v2737_v48 }
 0x14c   : > { %v1374_v30 = vpop.f32.mrf.mxu2  ;;  %v1423_v61 = vpop.f32.mrf.mxu3 }
 0x14d   : > { %v1375_v62 = vadd.f32 %v1374_v30, %v1326_v24  ;;  %v1278_v37 = vpop.f32.mrf.mxu0  ;;  %v1327_v33 = vpop.f32.mrf.mxu1 }
 0x14e   : > { %v1279_v38 = vadd.f32 %v1278_v37, %v2734_v26 }
 0x14f   : > { %v2741_v36 = vadd.f32 %v1423_v61, %v1375_v62 }
 0x150   : > { %v1328_v49 = vadd.f32 %v1327_v33, %v1279_v38 }
 0x151   : > { %1464 = vst [vmem:[%s2628_s17 + $0x8] sm:$0xff] %v2741_v36 }
 0x154   : > { %v1376_v53 = vpop.f32.mrf.mxu2  ;;  %v1425_v39 = vpop.f32.mrf.mxu3 }
 0x155   : > { %v1377_v54 = vadd.f32 %v1376_v53, %v1328_v49  ;;  %v1281_v7 = vpop.f32.mrf.mxu0  ;;  %v1330_v8 = vpop.f32.mrf.mxu1 }
 0x156   : > { %v1282_v57 = vadd.f32 %v1281_v7, %v2734_v26 }
 0x157   : > { %v2747_v58 = vadd.f32 %v1425_v39, %v1377_v54 }
 0x158   : > { %v1331_v45 = vadd.f32 %v1330_v8, %v1282_v57 }
 0x159   : > { %1466 = vst [vmem:[%s2628_s17 + $0x18] sm:$0xff] %v2747_v58 }
 0x15c   : > { %v1379_v11 = vpop.f32.mrf.mxu2  ;;  %v1428_v12 = vpop.f32.mrf.mxu3 }
 0x15d   : > { %v1380_v60 = vadd.f32 %v1379_v11, %v1331_v45  ;;  %v1283_v0 = vpop.f32.mrf.mxu0  ;;  %v1332_v1 = vpop.f32.mrf.mxu1 }
 0x15e   : > { %v1284_v3 = vadd.f32 %v1283_v0, %v2734_v26 }
 0x15f   : > { %v2751_v2 = vadd.f32 %v1428_v12, %v1380_v60 }
 0x160   : > { %v1333_v4 = vadd.f32 %v1332_v1, %v1284_v3 }
 0x161   : > { %1468 = vst [vmem:[%s2628_s17 + $0x28] sm:$0xff] %v2751_v2 }
 0x164   : > { %v1381_v41 = vpop.f32.mrf.mxu2  ;;  %v1430_v27 = vpop.f32.mrf.mxu3 }
 0x165   : > { %v1382_v28 = vadd.f32 %v1381_v41, %v1333_v4  ;;  %v1286_v42 = vpop.f32.mrf.mxu0  ;;  %v1335_v9 = vpop.f32.mrf.mxu1 }
 0x166   : > { %v1287_v10 = vadd.f32 %v1286_v42, %v2734_v26 }
 0x167   : > { %v2757_v31 = vadd.f32 %v1430_v27, %v1382_v28 }
 0x168   : > { %v1336_v32 = vadd.f32 %v1335_v9, %v1287_v10 }
 0x169   : > { %1470 = vst [vmem:[%s2628_s17 + $0x38] sm:$0xff] %v2757_v31 }
 0x16c   : > { %v1384_v51 = vpop.f32.mrf.mxu2  ;;  %v1433_v52 = vpop.f32.mrf.mxu3 }
 0x16d   : > { %v1385_v16 = vadd.f32 %v1384_v51, %v1336_v32  ;;  %v1288_v19 = vpop.f32.mrf.mxu0  ;;  %v1337_v20 = vpop.f32.mrf.mxu1 }
 0x16e   : > { %v1289_v22 = vadd.f32 %v1288_v19, %v2734_v26 }
 0x16f   : > { %v2761_v43 = vadd.f32 %v1433_v52, %v1385_v16 }
 0x170   : > { %v1338_v29 = vadd.f32 %v1337_v20, %v1289_v22 }
 0x171   : > { %1472 = vst [vmem:[%s2628_s17 + $0x48] sm:$0xff] %v2761_v43 }
 0x174   : > { %v1386_v21 = vpop.f32.mrf.mxu2  ;;  %v1435_v34 = vpop.f32.mrf.mxu3 }
 0x175   : > { %v1387_v35 = vadd.f32 %v1386_v21, %v1338_v29  ;;  %v1291_v55 = vpop.f32.mrf.mxu0  ;;  %v1340_v56 = vpop.f32.mrf.mxu1 }
 0x176   : > { %v1292_v47 = vadd.f32 %v1291_v55, %v2734_v26 }
 0x177   : > { %v2767_v24 = vadd.f32 %v1435_v34, %v1387_v35 }
 0x178   : > { %v1341_v30 = vadd.f32 %v1340_v56, %v1292_v47 }
 0x179   : > { %1474 = vst [vmem:[%s2628_s17 + $0x58] sm:$0xff] %v2767_v24 }
 0x17c   : > { %v1389_v61 = vpop.f32.mrf.mxu2  ;;  %v1438_v62 = vpop.f32.mrf.mxu3 }
 0x17d   : > { %v1390_v37 = vadd.f32 %v1389_v61, %v1341_v30  ;;  %v1293_v33 = vpop.f32.mrf.mxu0  ;;  %v1342_v38 = vpop.f32.mrf.mxu1 }
 0x17e   : > { %v1294_v53 = vadd.f32 %v1293_v33, %v2734_v26 }
 0x17f   : > { %v2771_v49 = vadd.f32 %v1438_v62, %v1390_v37 }
 0x180   : > { %v1343_v39 = vadd.f32 %v1342_v38, %v1294_v53 }
 0x181   : > { %1476 = vst [vmem:[%s2628_s17 + $0x68] sm:$0xff] %v2771_v49 }
 0x184   : > { %v1391_v54 = vpop.f32.mrf.mxu2  ;;  %v1440_v7 = vpop.f32.mrf.mxu3 }
 0x185   : > { %v1392_v8 = vadd.f32 %v1391_v54, %v1343_v39  ;;  %v1296_v57 = vpop.f32.mrf.mxu0  ;;  %v1345_v45 = vpop.f32.mrf.mxu1 }
 0x186   : > { %v1297_v11 = vadd.f32 %v1296_v57, %v2734_v26 }
 0x187   : > { %v2777_v12 = vadd.f32 %v1440_v7, %v1392_v8 }
 0x188   : > { %v1346_v60 = vadd.f32 %v1345_v45, %v1297_v11 }
 0x189   : > { %1478 = vst [vmem:[%s2628_s17 + $0x78] sm:$0xff] %v2777_v12 }
 0x18c   : > { %v1394_v0 = vpop.f32.mrf.mxu2  ;;  %v1443_v1 = vpop.f32.mrf.mxu3 }
 0x18d   : > { %v1395_v3 = vadd.f32 %v1394_v0, %v1346_v60  ;;  %v1298_v4 = vpop.f32.mrf.mxu0  ;;  %v1347_v41 = vpop.f32.mrf.mxu1 }
 0x18e   : > { %v1299_v28 = vadd.f32 %v1298_v4, %v2734_v26 }
 0x18f   : > { %v2781_v27 = vadd.f32 %v1443_v1, %v1395_v3 }
 0x190   : > { %v1348_v42 = vadd.f32 %v1347_v41, %v1299_v28 }
 0x191   : > { %1480 = vst [vmem:[%s2628_s17 + $0x88] sm:$0xff] %v2781_v27 }
 0x194   : > { %v1396_v9 = vpop.f32.mrf.mxu2  ;;  %v1445_v10 = vpop.f32.mrf.mxu3 }
 0x195   : > { %v1397_v32 = vadd.f32 %v1396_v9, %v1348_v42  ;;  %v1301_v51 = vpop.f32.mrf.mxu0  ;;  %v1350_v52 = vpop.f32.mrf.mxu1 }
 0x196   : > { %v1302_v16 = vadd.f32 %v1301_v51, %v2734_v26 }
 0x197   : > { %v2787_v19 = vadd.f32 %v1445_v10, %v1397_v32 }
 0x198   : > { %v1351_v20 = vadd.f32 %v1350_v52, %v1302_v16 }
 0x199   : > { %1482 = vst [vmem:[%s2628_s17 + $0x98] sm:$0xff] %v2787_v19 }
 0x19c   : > { %v1399_v22 = vpop.f32.mrf.mxu2  ;;  %v1448_v29 = vpop.f32.mrf.mxu3 }
 0x19d   : > { %v1400_v21 = vadd.f32 %v1399_v22, %v1351_v20  ;;  %v1303_v34 = vpop.f32.mrf.mxu0  ;;  %v1352_v35 = vpop.f32.mrf.mxu1 }
 0x19e   : > { %v1304_v56 = vadd.f32 %v1303_v34, %v2734_v26 }
 0x19f   : > { %v2791_v55 = vadd.f32 %v1448_v29, %v1400_v21 }
 0x1a0   : > { %v1353_v47 = vadd.f32 %v1352_v35, %v1304_v56 }
 0x1a1   : > { %1484 = vst [vmem:[%s2628_s17 + $0xa8] sm:$0xff] %v2791_v55 }
 0x1a4   : > { %v1401_v30 = vpop.f32.mrf.mxu2  ;;  %v1450_v61 = vpop.f32.mrf.mxu3 }
 0x1a5   : > { %v1402_v62 = vadd.f32 %v1401_v30, %v1353_v47  ;;  %v1306_v37 = vpop.f32.mrf.mxu0  ;;  %v1355_v33 = vpop.f32.mrf.mxu1 }
 0x1a6   : > { %v1307_v38 = vadd.f32 %v1306_v37, %v2734_v26 }
 0x1a7   : > { %v2797_v53 = vadd.f32 %v1450_v61, %v1402_v62 }
 0x1a8   : > { %v1356_v39 = vadd.f32 %v1355_v33, %v1307_v38 }
 0x1a9   : > { %1486 = vst [vmem:[%s2628_s17 + $0xb8] sm:$0xff] %v2797_v53 }
 0x1ac   : > { %v1404_v54 = vpop.f32.mrf.mxu2  ;;  %v1453_v7 = vpop.f32.mrf.mxu3 }
 0x1ad   : > { %v1405_v8 = vadd.f32 %v1404_v54, %v1356_v39  ;;  %v1308_v57 = vpop.f32.mrf.mxu0  ;;  %v1357_v45 = vpop.f32.mrf.mxu1 }
 0x1ae   : > { %v1309_v60 = vadd.f32 %v1308_v57, %v2734_v26 }
 0x1af   : > { %v2801_v11 = vadd.f32 %v1453_v7, %v1405_v8 }
 0x1b0   : > { %v1358_v0 = vadd.f32 %v1357_v45, %v1309_v60 }
 0x1b1   : > { %1488 = vst [vmem:[%s2628_s17 + $0xc8] sm:$0xff] %v2801_v11 }
 0x1b4   : > { %v1406_v1 = vpop.f32.mrf.mxu2  ;;  %v1455_v3 = vpop.f32.mrf.mxu3 }
 0x1b5   : > { %v1407_v4 = vadd.f32 %v1406_v1, %v1358_v0  ;;  %v1311_v41 = vpop.f32.mrf.mxu0  ;;  %v1360_v9 = vpop.f32.mrf.mxu1 }
 0x1b6   : > { %v1312_v28 = vadd.f32 %v1311_v41, %v2734_v26 }
 0x1b7   : > { %v2807_v42 = vadd.f32 %v1455_v3, %v1407_v4 }
 0x1b8   : > { %v1361_v10 = vadd.f32 %v1360_v9, %v1312_v28 }
 0x1b9   : > { %1490 = vst [vmem:[%s2628_s17 + $0xd8] sm:$0xff] %v2807_v42 }
 0x1bc   : > { %v1409_v32 = vpop.f32.mrf.mxu2  ;;  %v1458_v51 = vpop.f32.mrf.mxu3 }
 0x1bd   : > { %v1410_v52 = vadd.f32 %v1409_v32, %v1361_v10  ;;  %v1313_v16 = vpop.f32.mrf.mxu0  ;;  %v1362_v29 = vpop.f32.mrf.mxu1 }
 0x1be   : > { %v1314_v22 = vadd.f32 %v1313_v16, %v2734_v26 }
 0x1bf   : > { %v2811_v20 = vadd.f32 %v1458_v51, %v1410_v52 }
 0x1c0   : > { %v1363_v21 = vadd.f32 %v1362_v29, %v1314_v22 }
 0x1c1   : > { %1492 = vst [vmem:[%s2628_s17 + $0xe8] sm:$0xff] %v2811_v20 }
 0x1c4   : > { %v1411_v34 = vpop.f32.mrf.mxu2  ;;  %v1460_v56 = vpop.f32.mrf.mxu3 }
 0x1c5   : > { %v1412_v35 = vadd.f32 %v1411_v34, %v1363_v21  ;;  %1498 = sbr.rel (%p1810_p2) target bundleno = 463 (0x1cf), region = 56 }
 0x1c7   : > { %v2816_v47 = vadd.f32 %v1460_v56, %v1412_v35 }
 0x1c9   : > { %1494 = vst [vmem:[%s2628_s17 + $0xf8] sm:$0xff] %v2816_v47 }
 0x1ca   : > { %v1499_v30 = vlaneseq  ;;  %v2215_v61 = vmov 0.0  }
 0x1cc   : > { %vm1501_vm3 = vcmp.lt.s32.totalorder %v1499_v30, 256 }
 0x1cd   : > { %1503 = vst.msk [vmem:[%s2943_s8] sm:$0x3] %vm1501_vm3, %v2215_v61 }
 0x1ce   : > { %1504 = vst.msk [vmem:[%s2944_s9] sm:$0x3] %vm1501_vm3, %v2215_v61 }
 0x1cf PF: > { %v1505_v26 = vlaneseq  ;;  %s2077_s22 = sshll.u32 %s2275_s13, 7 }
 0x1d0   : > { %v1523_v33 = vstv %s2077_s22 }
 0x1d1   : > { %v1506_v62 = vshrl.u32 %v1505_v26, 7 }
 0x1d3   : > { %v1507_v37 = vadd.s32 8, %v1506_v62  ;;  %v1508_v38 = vadd.s32 16, %v1506_v62  ;;  %v1509_v39 = vadd.s32 24, %v1506_v62  ;;  %v1510_v54 = vadd.s32 32, %v1506_v62 }
 0x1d4   : > { %v1524_v7 = vadd.s32 %v1523_v33, %v1506_v62  ;;  %v1511_v57 = vadd.s32 40, %v1506_v62  ;;  %v1512_v45 = vadd.s32 48, %v1506_v62  ;;  %v1513_v60 = vadd.s32 56, %v1506_v62 }
 0x1d5   : > { %v1525_v8 = vadd.s32 %v1523_v33, %v1507_v37  ;;  %v1514_v0 = vadd.s32 64, %v1506_v62  ;;  %v1515_v1 = vadd.s32 72, %v1506_v62  ;;  %v1516_v3 = vadd.s32 80, %v1506_v62 }
 0x1d6   : > { %v1517_v4 = vadd.s32 88, %v1506_v62  ;;  %v1526_v41 = vadd.s32 %v1523_v33, %v1508_v38  ;;  %v1518_v28 = vadd.s32 96, %v1506_v62  ;;  %v1519_v9 = vadd.s32 104, %v1506_v62 }
 0x1d7   : > { %v1520_v10 = vadd.s32 112, %v1506_v62  ;;  %v1521_v32 = vadd.s32 120, %v1506_v62  ;;  %v1527_v51 = vadd.s32 %v1523_v33, %v1509_v39  ;;  %v1528_v52 = vadd.s32 %v1523_v33, %v1510_v54 }
 0x1d8   : > { %vm1540_vm4 = vcmp.lt.s32.totalorder %v1524_v7, 256  ;;  %vm1541_vm5 = vcmp.lt.s32.totalorder %v1525_v8, 256  ;;  %v1529_v16 = vadd.s32 %v1523_v33, %v1511_v57  ;;  %v1530_v22 = vadd.s32 %v1523_v33, %v1512_v45 }
 0x1d9   : > { %v1531_v29 = vadd.s32 %v1523_v33, %v1513_v60  ;;  %v1532_v21 = vadd.s32 %v1523_v33, %v1514_v0  ;;  %v2830_v34 = vadd.s32 %v1523_v33, %v1515_v1  ;;  %vm1542_vm6 = vcmp.lt.s32.totalorder %v1526_v41, 256 }
 0x1da   : > { %v1556_v35 = vsel %vm1540_vm4, %v2630_v59, 0.0  ;;  %v1558_v56 = vsel %vm1541_vm5, %v2636_v6, 0.0  ;;  %v2834_v30 = vadd.s32 %v1523_v33, %v1516_v3  ;;  %v1557_v61 = vsel %vm1540_vm4, %v2741_v36, 0.0 }
 0x1db   : > { %v1559_v62 = vsel %vm1541_vm5, %v2747_v58, 0.0  ;;  %v1589_v37 = vadd.f32 %v1558_v56, %v1556_v35  ;;  %v2838_v38 = vadd.s32 %v1523_v33, %v1517_v4  ;;  %vm1543_vm7 = vcmp.lt.s32.totalorder %v1527_v51, 256 }
 0x1dc   : > { %v1560_v39 = vsel %vm1542_vm6, %v2644_v17, 0.0  ;;  %v1610_v54 = vadd.f32 %v1559_v62, %v1557_v61  ;;  %v2841_v7 = vadd.s32 %v1523_v33, %v1518_v28  ;;  %v2843_v8 = vadd.s32 %v1523_v33, %v1519_v9 }
 0x1dd   : > { %v1561_v59 = vsel %vm1542_vm6, %v2751_v2, 0.0  ;;  %v1590_v6 = vadd.f32 %v1589_v37, %v1560_v39  ;;  %v2846_v57 = vadd.s32 %v1523_v33, %v1520_v10  ;;  %vm1544_vm8 = vcmp.lt.s32.totalorder %v1528_v52, 256 }
 0x1de   : > { %v1562_v36 = vsel %vm1543_vm7, %v2650_v23, 0.0  ;;  %v1611_v58 = vadd.f32 %v1610_v54, %v1561_v59  ;;  %v2849_v45 = vadd.s32 %v1523_v33, %v1521_v32  ;;  %vm1545_vm9 = vcmp.lt.s32.totalorder %v1529_v16, 256 }
 0x1df   : > { %v1563_v60 = vsel %vm1543_vm7, %v2757_v31, 0.0  ;;  %v1591_v17 = vadd.f32 %v1590_v6, %v1562_v36  ;;  %vm1546_vm10 = vcmp.lt.s32.totalorder %v1530_v22, 256  ;;  %vm1547_vm11 = vcmp.lt.s32.totalorder %v1531_v29, 256 }
 0x1e0   : > { %v1564_v0 = vsel %vm1544_vm8, %v2658_v50, 0.0  ;;  %v1612_v1 = vadd.f32 %v1611_v58, %v1563_v60  ;;  %vm1548_vm12 = vcmp.lt.s32.totalorder %v1532_v21, 256  ;;  %vm1549_vm13 = vcmp.lt.s32.totalorder %v2830_v34, 256 }
 0x1e1   : > { %v1565_v2 = vsel %vm1544_vm8, %v2761_v43, 0.0  ;;  %v1592_v3 = vadd.f32 %v1591_v17, %v1564_v0  ;;  %v1566_v23 = vsel %vm1545_vm9, %v2664_v63, 0.0  ;;  %v1567_v33 = vsel %vm1545_vm9, %v2767_v24, 0.0 }
 0x1e2   : > { %v1613_v4 = vadd.f32 %v1612_v1, %v1565_v2  ;;  %v1644_v41 = vmul.f32 %v1556_v35, %v1556_v35  ;;  %v1645_v31 = vmul.f32 %v1557_v61, %v1557_v61  ;;  %v1646_v9 = vmul.f32 %v1558_v56, %v1558_v56 }
 0x1e3   : > { %v1593_v28 = vadd.f32 %v1592_v3, %v1566_v23  ;;  %v1647_v10 = vmul.f32 %v1559_v62, %v1559_v62  ;;  %vm1550_vm14 = vcmp.lt.s32.totalorder %v2834_v30, 256  ;;  %vm1551_vm15 = vcmp.lt.s32.totalorder %v2838_v38, 256 }
 0x1e4   : > { %v1568_v50 = vsel %vm1546_vm10, %v2672_v5, 0.0  ;;  %v1614_v32 = vadd.f32 %v1613_v4, %v1567_v33  ;;  %vm1552_vm0 = vcmp.lt.s32.totalorder %v2841_v7, 256  ;;  %v1569_v63 = vsel %vm1546_vm10, %v2771_v49, 0.0 }
 0x1e5   : > { %v1594_v43 = vadd.f32 %v1593_v28, %v1568_v50  ;;  %v1648_v24 = vmul.f32 %v1560_v39, %v1560_v39  ;;  %v1649_v51 = vmul.f32 %v1561_v59, %v1561_v59  ;;  %v1570_v52 = vsel %vm1547_vm11, %v2678_v15, 0.0 }
 0x1e6   : > { %v1571_v16 = vsel %vm1547_vm11, %v2777_v12, 0.0  ;;  %v1615_v35 = vadd.f32 %v1614_v32, %v1569_v63  ;;  %v1650_v56 = vmul.f32 %v1562_v36, %v1562_v36  ;;  %vm1553_vm1 = vcmp.lt.s32.totalorder %v2843_v8, 256 }
 0x1e7   : > { %v1595_v5 = vadd.f32 %v1594_v43, %v1570_v52  ;;  %v1651_v61 = vmul.f32 %v1563_v60, %v1563_v60  ;;  %v1676_v62 = vadd.f32 %v1646_v9, %v1644_v41  ;;  %v1697_v37 = vadd.f32 %v1647_v10, %v1645_v31 }
 0x1e8   : > { %v1572_v49 = vsel %vm1548_vm12, %v2686_v18, 0.0  ;;  %v1573_v22 = vsel %vm1548_vm12, %v2781_v27, 0.0  ;;  %v1616_v39 = vadd.f32 %v1615_v35, %v1571_v16  ;;  %v1652_v54 = vmul.f32 %v1564_v0, %v1564_v0 }
 0x1e9   : > { %vm1554_vm2 = vcmp.lt.s32.totalorder %v2846_v57, 256  ;;  %v1596_v15 = vadd.f32 %v1595_v5, %v1572_v49  ;;  %v1653_v12 = vmul.f32 %v1565_v2, %v1565_v2  ;;  %v1677_v29 = vadd.f32 %v1676_v62, %v1648_v24 }
 0x1ea   : > { %v1698_v59 = vadd.f32 %v1697_v37, %v1649_v51  ;;  %v1574_v6 = vsel %vm1549_vm13, %v2692_v25, 0.0  ;;  %v1575_v36 = vsel %vm1549_vm13, %v2787_v19, 0.0  ;;  %v1617_v18 = vadd.f32 %v1616_v39, %v1573_v22 }
 0x1eb   : > { %v1654_v58 = vmul.f32 %v1566_v23, %v1566_v23  ;;  %vm1555_vm3 = vcmp.lt.s32.totalorder %v2849_v45, 256  ;;  %v1597_v27 = vadd.f32 %v1596_v15, %v1574_v6  ;;  %v1655_v21 = vmul.f32 %v1567_v33, %v1567_v33 }
 0x1ec   : > { %v1678_v60 = vadd.f32 %v1677_v29, %v1650_v56  ;;  %v1699_v17 = vadd.f32 %v1698_v59, %v1651_v61  ;;  %v1576_v0 = vsel %vm1550_vm14, %v2700_v40, 0.0  ;;  %v1577_v25 = vsel %vm1550_vm14, %v2791_v55, 0.0 }
 0x1ed   : > { %v1618_v1 = vadd.f32 %v1617_v18, %v1575_v36  ;;  %v1656_v2 = vmul.f32 %v1568_v50, %v1568_v50  ;;  %v1598_v34 = vadd.f32 %v1597_v27, %v1576_v0  ;;  %v1657_v19 = vmul.f32 %v1569_v63, %v1569_v63 }
 0x1ee   : > { %v1679_v3 = vadd.f32 %v1678_v60, %v1652_v54  ;;  %v1700_v23 = vadd.f32 %v1699_v17, %v1653_v12  ;;  %v1578_v33 = vsel %vm1551_vm15, %v2706_v46, 0.0  ;;  %v1579_v4 = vsel %vm1551_vm15, %v2797_v53, 0.0 }
 0x1ef   : > { %v1619_v41 = vadd.f32 %v1618_v1, %v1577_v25  ;;  %v1658_v40 = vmul.f32 %v1570_v52, %v1570_v52  ;;  %v1599_v28 = vadd.f32 %v1598_v34, %v1578_v33  ;;  %v1659_v31 = vmul.f32 %v1571_v16, %v1571_v16 }
 0x1f0   : > { %v1680_v30 = vadd.f32 %v1679_v3, %v1654_v58  ;;  %v1701_v55 = vadd.f32 %v1700_v23, %v1655_v21  ;;  %v1580_v9 = vsel %vm1552_vm0, %v2714_v13, 0.0  ;;  %v1581_v10 = vsel %vm1552_vm0, %v2801_v11, 0.0 }
 0x1f1   : > { %v1620_v50 = vadd.f32 %v1619_v41, %v1579_v4  ;;  %v1660_v46 = vmul.f32 %v1572_v49, %v1572_v49  ;;  %v1600_v32 = vadd.f32 %v1599_v28, %v1580_v9  ;;  %v1661_v63 = vmul.f32 %v1573_v22, %v1573_v22 }
 0x1f2   : > { %v1681_v38 = vadd.f32 %v1680_v30, %v1656_v2  ;;  %v1702_v53 = vadd.f32 %v1701_v55, %v1657_v19  ;;  %v1582_v43 = vsel %vm1553_vm1, %v2720_v14, 0.0  ;;  %v1583_v24 = vsel %vm1553_vm1, %v2807_v42, 0.0 }
 0x1f3   : > { %v1621_v51 = vadd.f32 %v1620_v50, %v1581_v10  ;;  %v1662_v13 = vmul.f32 %v1574_v6, %v1574_v6  ;;  %v1601_v52 = vadd.f32 %v1600_v32, %v1582_v43  ;;  %v1663_v16 = vmul.f32 %v1575_v36, %v1575_v36  ;;  %v1588_v32 = vld [vmem:[%s2943_s8] sm:$0x3] }
 0x1f4   : > { %v1682_v7 = vadd.f32 %v1681_v38, %v1658_v40  ;;  %v1703_v11 = vadd.f32 %v1702_v53, %v1659_v31  ;;  %v1584_v35 = vsel %vm1554_vm2, %v2728_v44, 0.0  ;;  %v1585_v56 = vsel %vm1554_vm2, %v2811_v20, 0.0 }
 0x1f5   : > { %v1622_v5 = vadd.f32 %v1621_v51, %v1583_v24  ;;  %v1664_v14 = vmul.f32 %v1576_v0, %v1576_v0  ;;  %v1602_v61 = vadd.f32 %v1601_v52, %v1584_v35  ;;  %v1665_v62 = vmul.f32 %v1577_v25, %v1577_v25 }
 0x1f6   : > { %v1683_v8 = vadd.f32 %v1682_v7, %v1660_v46  ;;  %v1704_v42 = vadd.f32 %v1703_v11, %v1661_v63  ;;  %v1586_v37 = vsel %vm1555_vm3, %v2737_v48, 0.0  ;;  %v1587_v49 = vsel %vm1555_vm3, %v2816_v47, 0.0 }
 0x1f7   : > { %v1623_v22 = vadd.f32 %v1622_v5, %v1585_v56  ;;  %v1666_v44 = vmul.f32 %v1578_v33, %v1578_v33  ;;  %v1603_v39 = vadd.f32 %v1602_v61, %v1586_v37  ;;  %v1667_v54 = vmul.f32 %v1579_v4, %v1579_v4  ;;  %v1643_v5 = vld [vmem:[%s2944_s9] sm:$0x3] }
 0x1f8   : > { %v1684_v57 = vadd.f32 %v1683_v8, %v1662_v13  ;;  %v1705_v20 = vadd.f32 %v1704_v42, %v1663_v16  ;;  %v1668_v12 = vmul.f32 %v1580_v9, %v1580_v9  ;;  %v1669_v59 = vmul.f32 %v1581_v10, %v1581_v10 }
 0x1f9   : > { %v1624_v15 = vadd.f32 %v1623_v22, %v1587_v49  ;;  %v1604_v29 = vrot.slane %v1603_v39, 4  ;;  %v1670_v58 = vmul.f32 %v1582_v43, %v1582_v43  ;;  %v1671_v48 = vmul.f32 %v1583_v24, %v1583_v24 }
 0x1fa   : > { %v1685_v6 = vadd.f32 %v1684_v57, %v1664_v14  ;;  %v1706_v36 = vadd.f32 %v1705_v20, %v1665_v62  ;;  %v1672_v47 = vmul.f32 %v1584_v35, %v1584_v35  ;;  %v1673_v0 = vmul.f32 %v1585_v56, %v1585_v56 }
 0x1fb   : > { %v1625_v18 = vrot.slane %v1624_v15, 4  ;;  %v1605_v27 = vadd.f32 %v1604_v29, %v1603_v39  ;;  %v1674_v34 = vmul.f32 %v1586_v37, %v1586_v37  ;;  %v1675_v3 = vmul.f32 %v1587_v49, %v1587_v49 }
 0x1fc   : > { %v1686_v21 = vadd.f32 %v1685_v6, %v1666_v44  ;;  %v1707_v60 = vadd.f32 %v1706_v36, %v1667_v54  ;;  %vm1634_vm4 = vcmask 1040384   ;;  %vm1640_vm5 = vcmp.lt.s32.totalorder %v1505_v26, 256 }
 0x1fd   : > { %v1626_v45 = vadd.f32 %v1625_v18, %v1624_v15  ;;  %v1606_v17 = vrot.slane %v1605_v27, 2 }
 0x1fe   : > { %v1687_v25 = vadd.f32 %v1686_v21, %v1668_v12  ;;  %v1708_v1 = vadd.f32 %v1707_v60, %v1669_v59 }
 0x1ff   : > { %v1627_v2 = vrot.slane %v1626_v45, 2  ;;  %v1607_v19 = vadd.f32 %v1606_v17, %v1605_v27 }
 0x200   : > { %v1688_v23 = vadd.f32 %v1687_v25, %v1670_v58  ;;  %v1709_v33 = vadd.f32 %v1708_v1, %v1671_v48 }
 0x201   : > { %v1628_v4 = vadd.f32 %v1627_v2, %v1626_v45  ;;  %v1608_v41 = vrot.slane %v1607_v19, 1 }
 0x202   : > { %v1689_v40 = vadd.f32 %v1688_v23, %v1672_v47  ;;  %v1710_v28 = vadd.f32 %v1709_v33, %v1673_v0 }
 0x203   : > { %v1629_v31 = vrot.slane %v1628_v4, 1  ;;  %v1609_v9 = vadd.f32 %v1608_v41, %v1607_v19 }
 0x204   : > { %v1690_v30 = vadd.f32 %v1689_v40, %v1674_v34  ;;  %v1711_v55 = vadd.f32 %v1710_v28, %v1675_v3 }
 0x205   : > { %v1630_v10 = vadd.f32 %v1629_v31, %v1628_v4 }
 0x206   : > { %v1691_v50 = vrot.slane %v1690_v30, 4  ;;  %v1712_v46 = vrot.slane %v1711_v55, 4 }
 0x207   : > { %v1633_v63 = vrot.slane %v1630_v10, 7 }
 0x208   : > { %v1692_v38 = vadd.f32 %v1691_v50, %v1690_v30  ;;  %v1713_v53 = vadd.f32 %v1712_v46, %v1711_v55 }
 0x209   : > { %v1635_v43 = vsel %vm1634_vm4, %v1609_v9, %v1633_v63 }
 0x20a   : > { %v1637_v24 = vadd.f32 %v1635_v43, %v1588_v32  ;;  %v1693_v51 = vrot.slane %v1692_v38, 2  ;;  %v1714_v13 = vrot.slane %v1713_v53, 2 }
 0x20c   : > { %1642 = vst.msk [vmem:[%s2943_s8] sm:$0x3] %vm1640_vm5, %v1637_v24  ;;  %v1694_v52 = vadd.f32 %v1693_v51, %v1692_v38  ;;  %v1715_v16 = vadd.f32 %v1714_v13, %v1713_v53 }
 0x20e   : > { %v1695_v7 = vrot.slane %v1694_v52, 1  ;;  %v1716_v11 = vrot.slane %v1715_v16, 1 }
 0x210   : > { %v1696_v35 = vadd.f32 %v1695_v7, %v1694_v52  ;;  %v1717_v56 = vadd.f32 %v1716_v11, %v1715_v16 }
 0x212   : > { %v1720_v14 = vrot.slane %v1717_v56, 7 }
 0x214   : > { %v1721_v26 = vsel %vm1634_vm4, %v1696_v35, %v1720_v14 }
 0x215   : > { %v1723_v61 = vadd.f32 %v1721_v26, %v1643_v5 }
 0x217   : > { %1724 = vst.msk [vmem:[%s2944_s9] sm:$0x3] %vm1640_vm5, %v1723_v61 }
 0x218 PF: > { %s21_s30 = sadd.s32 1, %s2210_s30  }
 0x219   : > { %p18_p8 = scmp.ge.s32.totalorder %s21_s30, 4  }
 0x21b   :  { %20 = sbr.rel (!%p18_p8) target bundleno = 1 (0x1), region = 103 }
 0x220   :  { %1761 = vsyncpa [#allocation3], 1 }
 0x221   :  { %1763 = vsyncpa [#allocation3 + $0x1], 1 }

// kernel: linear_classifier_forward.9
= control target key start
LH: loop header
LB: loop body
LE: loop exit
PB: predicated region body
PF: predicated region fallthrough
CT: control target
= control target key end

     0   :  { %s932_s24 = smov 0   ;;  %s1221_s0 = inlined_call_operand.vmem [shape: f32[256,64], index: 0, kind: input, shape index: {}]   ;;  %s1222_s1 = inlined_call_operand.vmem [shape: f32[1,64], index: 1, kind: input, shape index: {}]   ;;  %s1223_s2 = inlined_call_operand.vmem [shape: f32[1,64], index: 2, kind: input, shape index: {}]   ;;  %s1224_s3 = inlined_call_operand.vmem [shape: f32[1,64], index: 3, kind: input, shape index: {}]   ;;  %s1225_s4 = inlined_call_operand.vmem [shape: f32[1,64], index: 4, kind: input, shape index: {}]   ;;  %s1226_s5 = inlined_call_operand.vmem [shape: bf16[64,10], index: 5, kind: input, shape index: {}]   ;;  %s1227_s6 = inlined_call_operand.vmem [shape: f32[1,10], index: 6, kind: input, shape index: {}]   ;;  %s1228_s7 = inlined_call_operand.vmem [shape: f32[256,10], index: 7, kind: output, shape index: {}]  }
   0x1 LB: > { %s758_s25 = sadd.s32 4294967295, %s890_s24   ;;  %p762_p0 = scmp.ge.s32.totalorder %s890_s24, 1  ;;  %s890_s24 = sphi %s932_s24, %s17_s24  }
   0x2   : > { %p238_p1 = scmp.lt.s32.totalorder %s890_s24, 3 }
   0x4   : > { %p239_p2 = pnand %p762_p0, %p238_p1 }
   0x5   : > { %s763_s15 = sshll.u32 (!%p239_p2), %s758_s25, 4 }
   0x6   : > { %242 = sbr.rel (%p239_p2) target bundleno = 486 (0x1e6), region = 48  ;;  %p271_p3 = scmp.lt.s32.totalorder (!%p239_p2), %s763_s15, 31 }
   0xb   : > { %v796_v0 = vld [vmem:[%s1226_s5 + $0x18] sm:$0xff]  ;;  %v283_v1 = vld [vmem:[%s1222_s1] sm:$0x1]  ;;  %v795_v3 = vld [vmem:[%s1226_s5 + $0x10] sm:$0xff]  ;;  %s1230_s15 = smov (!%p271_p3, %s763_s15), 31  ;;  %vm419_vm3 = vcmask 523264  }
   0xc   : > { %v284_v2 = vld [vmem:[%s1223_s2] sm:$0x1]  ;;  %448 = vmatpush.bf16.msra.mxu0 %v796_v0  ;;  %797 = vmatpush.bf16.msra.mxu1 %v796_v0  ;;  %v287_v4 = vmul.f32 0.00390625, %v283_v1  ;;  %v794_v7 = vld [vmem:[%s1226_s5 + $0x8] sm:$0xff]  ;;  %s764_s16 = sshll.u32 %s1230_s15, 3  ;;  %vm493_vm4 = vcmask 80896  }
   0xd   : > { %v288_v5 = vmul.f32 0.00390625, %v284_v2  ;;  %798 = vmatpush.bf16.msra.mxu2 %v796_v0  ;;  %799 = vmatpush.bf16.msra.mxu3 %v796_v0  ;;  %v793_v10 = vld [vmem:[%s1226_s5] sm:$0xff]  ;;  %s966_s19 = scalar_lea.vmem %s1221_s0, %s764_s16  ;;  %s1168_s29 = scalar_lea.vmem %s1228_s7, %s764_s16 }
   0xe   : > { %v289_v6 = vmul.f32 %v287_v4, %v287_v4  ;;  %v285_v16 = vld [vmem:[%s1224_s3] sm:$0x1]  ;;  %v306_v22 = vld [vmem:[%s966_s19 + $0x8] sm:$0xff]  ;;  %v307_v49 = vld [vmem:[%s966_s19 + $0x10] sm:$0xff] }
   0xf   : > { %v286_v19 = vld [vmem:[%s1225_s4] sm:$0x1]  ;;  %v310_v24 = vld [vmem:[%s966_s19 + $0x28] sm:$0xff]  ;;  %v308_v54 = vld [vmem:[%s966_s19 + $0x18] sm:$0xff] }
  0x10   : > { %449 = vmatpush.bf16.msra.mxu0 %v795_v3  ;;  %800 = vmatpush.bf16.msra.mxu1 %v795_v3  ;;  %v290_v8 = vsub.f32 %v288_v5, %v289_v6  ;;  %v305_v21 = vld [vmem:[%s966_s19] sm:$0xff]  ;;  %v314_v28 = vld [vmem:[%s966_s19 + $0x48] sm:$0xff]  ;;  %v315_v55 = vld [vmem:[%s966_s19 + $0x50] sm:$0xff] }
  0x11   : > { %801 = vmatpush.bf16.msra.mxu2 %v795_v3  ;;  %802 = vmatpush.bf16.msra.mxu3 %v795_v3  ;;  %v309_v23 = vld [vmem:[%s966_s19 + $0x20] sm:$0xff]  ;;  %v318_v30 = vld [vmem:[%s966_s19 + $0x68] sm:$0xff]  ;;  %v311_v60 = vld [vmem:[%s966_s19 + $0x30] sm:$0xff] }
  0x12   : > { %v291_v9 = vadd.f32 1e-05, %v290_v8  ;;  %v313_v27 = vld [vmem:[%s966_s19 + $0x40] sm:$0xff]  ;;  %v312_v61 = vld [vmem:[%s966_s19 + $0x38] sm:$0xff]  ;;  %v319_v1 = vld [vmem:[%s966_s19 + $0x70] sm:$0xff] }
  0x13   : > { %v317_v29 = vld [vmem:[%s966_s19 + $0x60] sm:$0xff]  ;;  %v316_v0 = vld [vmem:[%s966_s19 + $0x58] sm:$0xff] }
  0x14   : > { %450 = vmatpush.bf16.msra.mxu0 %v794_v7  ;;  %803 = vmatpush.bf16.msra.mxu1 %v794_v7  ;;  %818 = vrsqrt.f32 %v291_v9  ;;  %vm298_vm0 = vweird.f32 %v291_v9  ;;  %v320_v2 = vld [vmem:[%s966_s19 + $0x78] sm:$0xff] }
  0x15   : > { %804 = vmatpush.bf16.msra.mxu2 %v794_v7  ;;  %805 = vmatpush.bf16.msra.mxu3 %v794_v7 }
  0x18   : > { %451 = vmatpush.bf16.msra.mxu0 %v793_v10  ;;  %806 = vmatpush.bf16.msra.mxu1 %v793_v10 }
  0x19   : > { %807 = vmatpush.bf16.msra.mxu2 %v793_v10  ;;  %808 = vmatpush.bf16.msra.mxu3 %v793_v10 }
  0x1a   : > { %v819_v11 = vpop.eup %818 }
  0x1b   : > { %v293_v12 = vmul.f32 %v819_v11, %v291_v9  ;;  %vm299_vm1 = vweird.f32 %v819_v11 }
  0x1c   : > { %vm300_vm2 = vmor %vm298_vm0, %vm299_vm1 }
  0x1d   : > { %v294_v13 = vmul.f32 %v819_v11, %v293_v12 }
  0x1f   : > { %v295_v14 = vmul.f32 0.5, %v294_v13 }
  0x21   : > { %v296_v15 = vsub.f32 1.5, %v295_v14 }
  0x23   : > { %v297_v17 = vmul.f32 %v819_v11, %v296_v15 }
  0x25   : > { %v301_v18 = vsel %vm300_vm2, %v819_v11, %v297_v17 }
  0x26   : > { %v302_v20 = vmul.f32 %v301_v18, %v285_v16 }
  0x28   : > { %v303_v25 = vmul.f32 %v302_v20, %v287_v4  ;;  %v322_v26 = vperm.slane %v302_v20, 0 }
  0x2a   : > { %v304_v31 = vsub.f32 %v286_v19, %v303_v25  ;;  %v324_v32 = vmul.f32 %v322_v26, %v305_v21  ;;  %v325_v33 = vmul.f32 %v322_v26, %v306_v22  ;;  %v328_v34 = vmul.f32 %v322_v26, %v309_v23 }
  0x2b   : > { %v329_v35 = vmul.f32 %v322_v26, %v310_v24  ;;  %v332_v36 = vmul.f32 %v322_v26, %v313_v27  ;;  %v333_v37 = vmul.f32 %v322_v26, %v314_v28  ;;  %v336_v38 = vmul.f32 %v322_v26, %v317_v29 }
  0x2c   : > { %v341_v39 = vperm.slane %v304_v31, 0  ;;  %v337_v40 = vmul.f32 %v322_v26, %v318_v30  ;;  %v326_v5 = vmul.f32 %v322_v26, %v307_v49  ;;  %v327_v6 = vmul.f32 %v322_v26, %v308_v54 }
  0x2d   : > { %v334_v7 = vmul.f32 %v322_v26, %v315_v55  ;;  %v330_v8 = vmul.f32 %v322_v26, %v311_v60  ;;  %v331_v9 = vmul.f32 %v322_v26, %v312_v61  ;;  %v335_v10 = vmul.f32 %v322_v26, %v316_v0 }
  0x2e   : > { %v343_v41 = vadd.f32 %v341_v39, %v324_v32  ;;  %v344_v42 = vadd.f32 %v341_v39, %v325_v33  ;;  %v347_v43 = vadd.f32 %v341_v39, %v328_v34  ;;  %v348_v44 = vadd.f32 %v341_v39, %v329_v35  ;;  %v1001_v33 = vld [vmem:[%s1227_s6] ss:$0 sm:$0xff] }
  0x2f   : > { %v351_v45 = vadd.f32 %v341_v39, %v332_v36  ;;  %v352_v46 = vadd.f32 %v341_v39, %v333_v37  ;;  %v355_v47 = vadd.f32 %v341_v39, %v336_v38  ;;  %v356_v48 = vadd.f32 %v341_v39, %v337_v40 }
  0x30   : > { %v359_v50 = vmax.f32 %v343_v41, 0.0  ;;  %v360_v51 = vmax.f32 %v344_v42, 0.0  ;;  %v363_v52 = vmax.f32 %v347_v43, 0.0  ;;  %v364_v53 = vmax.f32 %v348_v44, 0.0 }
  0x31   : > { %v367_v56 = vmax.f32 %v351_v45, 0.0  ;;  %v368_v57 = vmax.f32 %v352_v46, 0.0  ;;  %v371_v58 = vmax.f32 %v355_v47, 0.0  ;;  %v372_v59 = vmax.f32 %v356_v48, 0.0 }
  0x32   : > { %v375_v62 = vpack.c.bf16 %v360_v51, %v359_v50  ;;  %v377_v63 = vpack.c.bf16 %v364_v53, %v363_v52  ;;  %v338_v11 = vmul.f32 %v322_v26, %v319_v1  ;;  %v339_v12 = vmul.f32 %v322_v26, %v320_v2 }
  0x33   : > { %v379_v3 = vpack.c.bf16 %v368_v57, %v367_v56  ;;  %v381_v4 = vpack.c.bf16 %v372_v59, %v371_v58  ;;  %v345_v13 = vadd.f32 %v341_v39, %v326_v5  ;;  %v346_v14 = vadd.f32 %v341_v39, %v327_v6 }
  0x34   : > { %783 = vmatmul.msk.bf16.vlgmr.msra.gmra.mxu0 %vm419_vm3, %v375_v62  ;;  %785 = vmatmul.msk.bf16.vlgmr.msra.gmra.mxu1 %vm419_vm3, %v377_v63  ;;  %v349_v15 = vadd.f32 %v341_v39, %v330_v8  ;;  %v350_v16 = vadd.f32 %v341_v39, %v331_v9  ;;  %v353_v17 = vadd.f32 %v341_v39, %v334_v7 }
  0x35   : > { %787 = vmatmul.msk.bf16.vlgmr.msra.gmra.mxu2 %vm419_vm3, %v379_v3  ;;  %789 = vmatmul.msk.bf16.vlgmr.msra.gmra.mxu3 %vm419_vm3, %v381_v4  ;;  %v354_v18 = vadd.f32 %v341_v39, %v335_v10  ;;  %v357_v19 = vadd.f32 %v341_v39, %v338_v11  ;;  %v358_v20 = vadd.f32 %v341_v39, %v339_v12  ;;  %v361_v21 = vmax.f32 %v345_v13, 0.0 }
  0x36   : > { %v362_v22 = vmax.f32 %v346_v14, 0.0  ;;  %v365_v23 = vmax.f32 %v349_v15, 0.0  ;;  %v366_v24 = vmax.f32 %v350_v16, 0.0  ;;  %v369_v25 = vmax.f32 %v353_v17, 0.0 }
  0x37   : > { %v370_v27 = vmax.f32 %v354_v18, 0.0  ;;  %v373_v28 = vmax.f32 %v357_v19, 0.0  ;;  %v374_v29 = vmax.f32 %v358_v20, 0.0 }
  0x38   : > { %v376_v30 = vpack.c.bf16 %v362_v22, %v361_v21  ;;  %v378_v31 = vpack.c.bf16 %v366_v24, %v365_v23 }
  0x39   : > { %v380_v32 = vpack.c.bf16 %v370_v27, %v369_v25  ;;  %v382_v26 = vpack.c.bf16 %v374_v29, %v373_v28 }
  0x44   : > { %784 = vmatmul.msk.bf16.gmra.mxu0 %vm419_vm3, %v376_v30  ;;  %786 = vmatmul.msk.bf16.gmra.mxu1 %vm419_vm3, %v378_v31 }
  0x45   : > { %788 = vmatmul.msk.bf16.gmra.mxu2 %vm419_vm3, %v380_v32  ;;  %790 = vmatmul.msk.bf16.gmra.mxu3 %vm419_vm3, %v382_v26 }
  0xb1   : > { %v453_v34 = vpop.f32.mrf.mxu0  ;;  %v463_v35 = vpop.f32.mrf.mxu1 }
  0xb2   : > { %v1004_v36 = vadd.f32 %v1001_v33, %v453_v34  ;;  %v1007_v37 = vadd.f32 %v1001_v33, %v463_v35 }
  0xb4   : > { %v506_v38 = vsel %vm493_vm4, %v1007_v37, -inf  ;;  %v494_v39 = vsel %vm493_vm4, %v1004_v36, -inf }
  0xb5   : > { %507 = vmax.xlane.f32.xlu2 %v506_v38  ;;  %495 = vmax.xlane.f32.xlu0 %v494_v39 }
  0xb8   : > { %v473_v40 = vpop.f32.mrf.mxu2  ;;  %v483_v41 = vpop.f32.mrf.mxu3 }
  0xb9   : > { %v1014_v42 = vadd.f32 %v1001_v33, %v473_v40  ;;  %v1017_v43 = vadd.f32 %v1001_v33, %v483_v41  ;;  %v455_v44 = vpop.f32.mrf.mxu0  ;;  %v465_v47 = vpop.f32.mrf.mxu1 }
  0xba   : > { %v1024_v48 = vadd.f32 %v1001_v33, %v465_v47  ;;  %v1027_v50 = vadd.f32 %v1001_v33, %v455_v44 }
  0xbb   : > { %v518_v45 = vsel %vm493_vm4, %v1014_v42, -inf  ;;  %v530_v46 = vsel %vm493_vm4, %v1017_v43, -inf }
  0xbc   : > { %v509_v54 = vsel %vm493_vm4, %v1024_v48, -inf  ;;  %v497_v56 = vsel %vm493_vm4, %v1027_v50, -inf }
  0xbd   : > { %519 = vmax.xlane.f32.xlu2 %v518_v45  ;;  %531 = vmax.xlane.f32.xlu0 %v530_v46 }
  0xc0   : > { %v475_v49 = vpop.f32.mrf.mxu2  ;;  %v485_v52 = vpop.f32.mrf.mxu3 }
  0xc1   : > { %v458_v51 = vpop.f32.mrf.mxu0  ;;  %v1039_v58 = vadd.f32 %v1001_v33, %v475_v49  ;;  %v468_v61 = vpop.f32.mrf.mxu1  ;;  %v1079_v16 = vadd.f32 %v1001_v33, %v485_v52 }
  0xc2   : > { %v1030_v53 = vadd.f32 %v1001_v33, %v458_v51  ;;  %v1049_v1 = vadd.f32 %v1001_v33, %v468_v61 }
  0xc3   : > { %v521_v0 = vsel %vm493_vm4, %v1039_v58, -inf  ;;  %v533_v17 = vsel %vm493_vm4, %v1079_v16, -inf }
  0xc4   : > { %v500_v55 = vsel %vm493_vm4, %v1030_v53, -inf  ;;  %v512_v6 = vsel %vm493_vm4, %v1049_v1, -inf }
  0xc5   : > { %510 = vmax.xlane.f32.xlu2 %v509_v54  ;;  %501 = vmax.xlane.f32.xlu1 %v500_v55 }
  0xc6   : > { %498 = vmax.xlane.f32.xlu0 %v497_v56 }
  0xc8   : > { %v478_v57 = vpop.f32.mrf.mxu2  ;;  %v488_v60 = vpop.f32.mrf.mxu3 }
  0xc9   : > { %v1042_v59 = vadd.f32 %v1001_v33, %v478_v57  ;;  %v460_v63 = vpop.f32.mrf.mxu0  ;;  %v470_v9 = vpop.f32.mrf.mxu1  ;;  %v1064_v10 = vadd.f32 %v1001_v33, %v488_v60 }
  0xca   : > { %v1052_v2 = vadd.f32 %v1001_v33, %v460_v63  ;;  %v1070_v12 = vadd.f32 %v1001_v33, %v470_v9 }
  0xcb   : > { %v524_v62 = vsel %vm493_vm4, %v1042_v59, -inf  ;;  %v536_v13 = vsel %vm493_vm4, %v1064_v10, -inf }
  0xcc   : > { %v503_v7 = vsel %vm493_vm4, %v1052_v2, -inf  ;;  %v515_v15 = vsel %vm493_vm4, %v1070_v12, -inf }
  0xcd   : > { %525 = vmax.xlane.f32.xlu1 %v524_v62 }
  0xce   : > { %522 = vmax.xlane.f32.xlu0 %v521_v0 }
  0xd0   : > { %v480_v3 = vpop.f32.mrf.mxu2  ;;  %v490_v8 = vpop.f32.mrf.mxu3 }
  0xd1   : > { %v1055_v4 = vadd.f32 %v1001_v33, %v480_v3  ;;  %v1067_v11 = vadd.f32 %v1001_v33, %v490_v8 }
  0xd3   : > { %v527_v5 = vsel %vm493_vm4, %v1055_v4, -inf  ;;  %v539_v14 = vsel %vm493_vm4, %v1067_v11, -inf }
  0xd4   : > { %528 = vmax.xlane.f32.xlu2 %v527_v5 }
  0xd5   : > { %504 = vmax.xlane.f32.xlu1 %v503_v7 }
  0xd6   : > { %513 = vmax.xlane.f32.xlu0 %v512_v6 }
  0xdc   : > { %537 = vmax.xlane.f32.xlu2 %v536_v13 }
  0xdd   : > { %516 = vmax.xlane.f32.xlu1 %v515_v15 }
  0xde   : > { %540 = vmax.xlane.f32.xlu0 %v539_v14 }
  0xe5   : > { %534 = vmax.xlane.f32.xlu1 %v533_v17 }
 0x128   : > { %v508_v18 = vpop.xlane.xlu2 %507  ;;  %v496_v19 = vpop.xlane.xlu0 %495 }
 0x129   : > { %v1084_v20 = vsub.f32 %v1007_v37, %v508_v18  ;;  %v1087_v21 = vsub.f32 %v1004_v36, %v496_v19 }
 0x12b   : > { %v566_v22 = vmul.f32 1.442695, %v1084_v20  ;;  %v558_v23 = vmul.f32 1.442695, %v1087_v21 }
 0x12d   : > { %820 = vpow2.f32 %v566_v22 }
 0x12e   : > { %822 = vpow2.f32 %v558_v23 }
 0x130   : > { %v520_v24 = vpop.xlane.xlu2 %519  ;;  %v532_v25 = vpop.xlane.xlu0 %531 }
 0x131   : > { %v1092_v27 = vsub.f32 %v1014_v42, %v520_v24  ;;  %v1095_v28 = vsub.f32 %v1017_v43, %v532_v25 }
 0x133   : > { %v821_v29 = vpop.eup %820  ;;  %v574_v30 = vmul.f32 1.442695, %v1092_v27  ;;  %v582_v31 = vmul.f32 1.442695, %v1095_v28 }
 0x134   : > { %v823_v32 = vpop.eup %822  ;;  %v602_v26 = vsel %vm493_vm4, %v821_v29, 0.0 }
 0x135   : > { %824 = vpow2.f32 %v574_v30  ;;  %603 = vadd.xlane.f32.xlu2 %v602_v26  ;;  %v590_v33 = vsel %vm493_vm4, %v823_v32, 0.0 }
 0x136   : > { %826 = vpow2.f32 %v582_v31  ;;  %591 = vadd.xlane.f32.xlu1 %v590_v33 }
 0x138   : > { %v511_v34 = vpop.xlane.xlu2 %510  ;;  %v502_v35 = vpop.xlane.xlu1 %501 }
 0x139   : > { %v1102_v36 = vsub.f32 %v1024_v48, %v511_v34  ;;  %v499_v37 = vpop.xlane.xlu0 %498  ;;  %v1109_v41 = vsub.f32 %v1030_v53, %v502_v35 }
 0x13a   : > { %v1105_v38 = vsub.f32 %v1027_v50, %v499_v37 }
 0x13b   : > { %v825_v39 = vpop.eup %824  ;;  %v568_v40 = vmul.f32 1.442695, %v1102_v36  ;;  %v562_v46 = vmul.f32 1.442695, %v1109_v41 }
 0x13c   : > { %v827_v42 = vpop.eup %826  ;;  %v560_v43 = vmul.f32 1.442695, %v1105_v38  ;;  %v614_v44 = vsel %vm493_vm4, %v825_v39, 0.0 }
 0x13d   : > { %828 = vpow2.f32 %v568_v40  ;;  %615 = vadd.xlane.f32.xlu0 %v614_v44  ;;  %v626_v45 = vsel %vm493_vm4, %v827_v42, 0.0 }
 0x13e   : > { %627 = vadd.xlane.f32.xlu1 %v626_v45  ;;  %830 = vpow2.f32 %v560_v43 }
 0x13f   : > { %832 = vpow2.f32 %v562_v46 }
 0x140   : > { %v526_v47 = vpop.xlane.xlu1 %525 }
 0x141   : > { %v1116_v48 = vsub.f32 %v1042_v59, %v526_v47  ;;  %v523_v49 = vpop.xlane.xlu0 %522 }
 0x142   : > { %v1119_v50 = vsub.f32 %v1039_v58, %v523_v49 }
 0x143   : > { %v829_v51 = vpop.eup %828  ;;  %v578_v52 = vmul.f32 1.442695, %v1116_v48 }
 0x144   : > { %v576_v53 = vmul.f32 1.442695, %v1119_v50  ;;  %v605_v54 = vsel %vm493_vm4, %v829_v51, 0.0  ;;  %v831_v55 = vpop.eup %830 }
 0x145   : > { %834 = vpow2.f32 %v578_v52  ;;  %606 = vadd.xlane.f32.xlu0 %v605_v54  ;;  %v593_v56 = vsel %vm493_vm4, %v831_v55, 0.0  ;;  %v833_v60 = vpop.eup %832 }
 0x146   : > { %836 = vpow2.f32 %v576_v53  ;;  %594 = vadd.xlane.f32.xlu2 %v593_v56  ;;  %v596_v7 = vsel %vm493_vm4, %v833_v60, 0.0 }
 0x147   : > { %v529_v57 = vpop.xlane.xlu2 %528 }
 0x148   : > { %v1126_v59 = vsub.f32 %v1055_v4, %v529_v57  ;;  %v505_v58 = vpop.xlane.xlu1 %504 }
 0x149   : > { %v514_v61 = vpop.xlane.xlu0 %513  ;;  %v1133_v3 = vsub.f32 %v1052_v2, %v505_v58 }
 0x14a   : > { %v580_v62 = vmul.f32 1.442695, %v1126_v59  ;;  %v1130_v63 = vsub.f32 %v1049_v1, %v514_v61 }
 0x14b   : > { %v835_v0 = vpop.eup %834  ;;  %v564_v1 = vmul.f32 1.442695, %v1133_v3 }
 0x14c   : > { %v837_v5 = vpop.eup %836  ;;  %838 = vpow2.f32 %v580_v62  ;;  %v570_v6 = vmul.f32 1.442695, %v1130_v63  ;;  %v620_v4 = vsel %vm493_vm4, %v835_v0, 0.0 }
 0x14d   : > { %597 = vadd.xlane.f32.xlu0 %v596_v7  ;;  %v617_v8 = vsel %vm493_vm4, %v837_v5, 0.0 }
 0x14e   : > { %840 = vpow2.f32 %v570_v6  ;;  %618 = vadd.xlane.f32.xlu1 %v617_v8  ;;  %621 = vadd.xlane.f32.xlu2 %v620_v4 }
 0x14f   : > { %v538_v9 = vpop.xlane.xlu2 %537  ;;  %842 = vpow2.f32 %v564_v1 }
 0x150   : > { %v1141_v2 = vsub.f32 %v1064_v10, %v538_v9  ;;  %v517_v13 = vpop.xlane.xlu1 %516 }
 0x151   : > { %v1144_v14 = vsub.f32 %v1070_v12, %v517_v13  ;;  %v541_v15 = vpop.xlane.xlu0 %540 }
 0x152   : > { %v839_v17 = vpop.eup %838  ;;  %v586_v18 = vmul.f32 1.442695, %v1141_v2  ;;  %v1149_v23 = vsub.f32 %v1067_v11, %v541_v15 }
 0x153   : > { %v572_v19 = vmul.f32 1.442695, %v1144_v14  ;;  %v623_v24 = vsel %vm493_vm4, %v839_v17, 0.0 }
 0x154   : > { %v841_v22 = vpop.eup %840  ;;  %844 = vpow2.f32 %v586_v18  ;;  %v588_v12 = vmul.f32 1.442695, %v1149_v23 }
 0x155   : > { %846 = vpow2.f32 %v572_v19  ;;  %624 = vadd.xlane.f32.xlu0 %v623_v24  ;;  %v608_v10 = vsel %vm493_vm4, %v841_v22, 0.0  ;;  %v843_v29 = vpop.eup %842 }
 0x156   : > { %609 = vadd.xlane.f32.xlu1 %v608_v10  ;;  %848 = vpow2.f32 %v588_v12  ;;  %v599_v34 = vsel %vm493_vm4, %v843_v29, 0.0 }
 0x158   : > { %v535_v25 = vpop.xlane.xlu1 %534 }
 0x159   : > { %v1155_v30 = vsub.f32 %v1079_v16, %v535_v25 }
 0x15a   : > { %v845_v31 = vpop.eup %844 }
 0x15b   : > { %v847_v32 = vpop.eup %846  ;;  %v584_v26 = vmul.f32 1.442695, %v1155_v30  ;;  %v632_v11 = vsel %vm493_vm4, %v845_v31, 0.0 }
 0x15c   : > { %v611_v33 = vsel %vm493_vm4, %v847_v32, 0.0  ;;  %v849_v35 = vpop.eup %848 }
 0x15d   : > { %850 = vpow2.f32 %v584_v26  ;;  %633 = vadd.xlane.f32.xlu0 %v632_v11  ;;  %612 = vadd.xlane.f32.xlu2 %v611_v33  ;;  %v635_v39 = vsel %vm493_vm4, %v849_v35, 0.0 }
 0x15e   : > { %600 = vadd.xlane.f32.xlu1 %v599_v34 }
 0x163   : > { %v851_v37 = vpop.eup %850 }
 0x164   : > { %v629_v16 = vsel %vm493_vm4, %v851_v37, 0.0 }
 0x165   : > { %630 = vadd.xlane.f32.xlu2 %v629_v16 }
 0x166   : > { %636 = vadd.xlane.f32.xlu1 %v635_v39 }
 0x1a8   : > { %v604_v40 = vpop.xlane.xlu2 %603 }
 0x1a9   : > { %852 = vlog2.f32 %v604_v40  ;;  %v592_v42 = vpop.xlane.xlu1 %591 }
 0x1aa   : > { %854 = vlog2.f32 %v592_v42 }
 0x1af   : > { %v853_v43 = vpop.eup %852 }
 0x1b0   : > { %v855_v44 = vpop.eup %854  ;;  %v647_v45 = vmul.f32 0.6931472, %v853_v43  ;;  %v616_v46 = vpop.xlane.xlu0 %615 }
 0x1b1   : > { %v639_v47 = vmul.f32 0.6931472, %v855_v44  ;;  %v628_v49 = vpop.xlane.xlu1 %627  ;;  %856 = vlog2.f32 %v616_v46 }
 0x1b2   : > { %v674_v51 = vsub.f32 %v1084_v20, %v647_v45  ;;  %858 = vlog2.f32 %v628_v49 }
 0x1b3   : > { %v670_v52 = vsub.f32 %v1087_v21, %v639_v47 }
 0x1b4   : > { %690 = vst.msk [vmem:[%s1168_s29 + $0x20] sm:$0xff] %vm493_vm4, %v674_v51 }
 0x1b5   : > { %686 = vst.msk [vmem:[%s1168_s29] sm:$0xff] %vm493_vm4, %v670_v52 }
 0x1b7   : > { %v857_v53 = vpop.eup %856 }
 0x1b8   : > { %v859_v54 = vpop.eup %858  ;;  %v655_v55 = vmul.f32 0.6931472, %v857_v53  ;;  %v607_v56 = vpop.xlane.xlu0 %606 }
 0x1b9   : > { %v663_v57 = vmul.f32 0.6931472, %v859_v54  ;;  %860 = vlog2.f32 %v607_v56  ;;  %v595_v60 = vpop.xlane.xlu2 %594 }
 0x1ba   : > { %v678_v58 = vsub.f32 %v1092_v27, %v655_v55  ;;  %862 = vlog2.f32 %v595_v60 }
 0x1bb   : > { %v682_v61 = vsub.f32 %v1095_v28, %v663_v57 }
 0x1bc   : > { %694 = vst.msk [vmem:[%s1168_s29 + $0x40] sm:$0xff] %vm493_vm4, %v678_v58 }
 0x1bd   : > { %698 = vst.msk [vmem:[%s1168_s29 + $0x60] sm:$0xff] %vm493_vm4, %v682_v61 }
 0x1bf   : > { %v861_v20 = vpop.eup %860 }
 0x1c0   : > { %v649_v21 = vmul.f32 0.6931472, %v861_v20  ;;  %v598_v62 = vpop.xlane.xlu0 %597  ;;  %v863_v0 = vpop.eup %862 }
 0x1c1   : > { %v619_v5 = vpop.xlane.xlu1 %618  ;;  %864 = vlog2.f32 %v598_v62  ;;  %v641_v6 = vmul.f32 0.6931472, %v863_v0  ;;  %v622_v27 = vpop.xlane.xlu2 %621 }
 0x1c2   : > { %v675_v7 = vsub.f32 %v1102_v36, %v649_v21  ;;  %866 = vlog2.f32 %v619_v5 }
 0x1c3   : > { %868 = vlog2.f32 %v622_v27  ;;  %v671_v28 = vsub.f32 %v1105_v38, %v641_v6 }
 0x1c4   : > { %691 = vst.msk [vmem:[%s1168_s29 + $0x28] sm:$0xff] %vm493_vm4, %v675_v7 }
 0x1c5   : > { %687 = vst.msk [vmem:[%s1168_s29 + $0x8] sm:$0xff] %vm493_vm4, %v671_v28 }
 0x1c7   : > { %v865_v4 = vpop.eup %864 }
 0x1c8   : > { %v867_v8 = vpop.eup %866  ;;  %v643_v1 = vmul.f32 0.6931472, %v865_v4  ;;  %v625_v9 = vpop.xlane.xlu0 %624 }
 0x1c9   : > { %v869_v13 = vpop.eup %868  ;;  %v657_v15 = vmul.f32 0.6931472, %v867_v8  ;;  %v610_v17 = vpop.xlane.xlu1 %609  ;;  %870 = vlog2.f32 %v625_v9 }
 0x1ca   : > { %v659_v36 = vmul.f32 0.6931472, %v869_v13  ;;  %v672_v18 = vsub.f32 %v1109_v41, %v643_v1  ;;  %872 = vlog2.f32 %v610_v17 }
 0x1cb   : > { %v679_v38 = vsub.f32 %v1119_v50, %v657_v15 }
 0x1cc   : > { %v680_v19 = vsub.f32 %v1116_v48, %v659_v36  ;;  %688 = vst.msk [vmem:[%s1168_s29 + $0x10] sm:$0xff] %vm493_vm4, %v672_v18 }
 0x1cd   : > { %695 = vst.msk [vmem:[%s1168_s29 + $0x48] sm:$0xff] %vm493_vm4, %v679_v38 }
 0x1ce   : > { %696 = vst.msk [vmem:[%s1168_s29 + $0x50] sm:$0xff] %vm493_vm4, %v680_v19 }
 0x1cf   : > { %v871_v22 = vpop.eup %870 }
 0x1d0   : > { %v873_v24 = vpop.eup %872  ;;  %v661_v10 = vmul.f32 0.6931472, %v871_v22  ;;  %v613_v12 = vpop.xlane.xlu2 %612 }
 0x1d1   : > { %v634_v25 = vpop.xlane.xlu0 %633  ;;  %v651_v29 = vmul.f32 0.6931472, %v873_v24  ;;  %874 = vlog2.f32 %v613_v12  ;;  %v601_v41 = vpop.xlane.xlu1 %600 }
 0x1d2   : > { %v681_v50 = vsub.f32 %v1126_v59, %v661_v10  ;;  %876 = vlog2.f32 %v601_v41 }
 0x1d3   : > { %v676_v48 = vsub.f32 %v1130_v63, %v651_v29  ;;  %878 = vlog2.f32 %v634_v25 }
 0x1d4   : > { %697 = vst.msk [vmem:[%s1168_s29 + $0x58] sm:$0xff] %vm493_vm4, %v681_v50 }
 0x1d5   : > { %692 = vst.msk [vmem:[%s1168_s29 + $0x30] sm:$0xff] %vm493_vm4, %v676_v48 }
 0x1d7   : > { %v875_v31 = vpop.eup %874 }
 0x1d8   : > { %v877_v32 = vpop.eup %876  ;;  %v653_v26 = vmul.f32 0.6931472, %v875_v31  ;;  %v631_v11 = vpop.xlane.xlu2 %630 }
 0x1d9   : > { %v879_v33 = vpop.eup %878  ;;  %v645_v34 = vmul.f32 0.6931472, %v877_v32  ;;  %880 = vlog2.f32 %v631_v11  ;;  %v637_v59 = vpop.xlane.xlu1 %636 }
 0x1da   : > { %v677_v63 = vsub.f32 %v1144_v14, %v653_v26  ;;  %v667_v35 = vmul.f32 0.6931472, %v879_v33  ;;  %882 = vlog2.f32 %v637_v59 }
 0x1db   : > { %v673_v37 = vsub.f32 %v1133_v3, %v645_v34 }
 0x1dc   : > { %693 = vst.msk [vmem:[%s1168_s29 + $0x38] sm:$0xff] %vm493_vm4, %v677_v63  ;;  %v684_v16 = vsub.f32 %v1141_v2, %v667_v35 }
 0x1dd   : > { %689 = vst.msk [vmem:[%s1168_s29 + $0x18] sm:$0xff] %vm493_vm4, %v673_v37 }
 0x1de   : > { %700 = vst.msk [vmem:[%s1168_s29 + $0x70] sm:$0xff] %vm493_vm4, %v684_v16 }
 0x1df   : > { %v881_v39 = vpop.eup %880 }
 0x1e0   : > { %v883_v40 = vpop.eup %882  ;;  %v665_v42 = vmul.f32 0.6931472, %v881_v39 }
 0x1e1   : > { %v669_v43 = vmul.f32 0.6931472, %v883_v40 }
 0x1e2   : > { %v683_v44 = vsub.f32 %v1155_v30, %v665_v42 }
 0x1e3   : > { %v685_v14 = vsub.f32 %v1149_v23, %v669_v43 }
 0x1e4   : > { %699 = vst.msk [vmem:[%s1168_s29 + $0x68] sm:$0xff] %vm493_vm4, %v683_v44 }
 0x1e5   : > { %701 = vst.msk [vmem:[%s1168_s29 + $0x78] sm:$0xff] %vm493_vm4, %v685_v14 }
 0x1e6 PF: > { %s17_s24 = sadd.s32 1, %s890_s24  }
 0x1e7   : > { %p14_p4 = scmp.ge.s32.totalorder %s17_s24, 4  }
 0x1e9   :  { %16 = sbr.rel (!%p14_p4) target bundleno = 1 (0x1), region = 78 }

</bundles_post_ra>
